<compile_context>
chip_gen: v6e
topology: v6e:2x2x1
jax: 0.10.0
libtpu: 0.0.40
codegen_flags: <defaults>
</compile_context>

<pallas_src>
import jax
import jax.numpy as jnp
import numpy as np
from jax.experimental import pallas as pl
from jax.experimental.pallas import tpu as pltpu

NEG_SLOPE = 0.01   # F.leaky_relu default
L2_EPS = 1e-12     # F.normalize default eps
_TN = (((0,), (0,)), ((), ()))   # contract over axis 0 of both operands (a.T @ b)


# ----------------------------- small math helpers -----------------------------
def _mm(a, b):
    """2-D matmul on the MXU: bf16 inputs, f32 accumulation."""
    return jnp.dot(a.astype(jnp.bfloat16), b.astype(jnp.bfloat16),
                   preferred_element_type=jnp.float32)


def _mm_tn(a, b):
    """a.T @ b without materializing the transpose (lhs-transposed contraction)."""
    return jax.lax.dot_general(a.astype(jnp.bfloat16), b.astype(jnp.bfloat16),
                               _TN, preferred_element_type=jnp.float32)


def _bmm(a, b):
    """Batched matmul (b,n,m) @ (b,m,c) -> (b,n,c), bf16 in / f32 accumulate."""
    return jnp.einsum('bnm,bmc->bnc', a.astype(jnp.bfloat16), b.astype(jnp.bfloat16),
                      preferred_element_type=jnp.float32)


def _leaky(x):
    return jnp.where(x >= 0, x, NEG_SLOPE * x)


def _l2norm(x):
    ss = jnp.sum(x * x, axis=-1, keepdims=True)
    return x * jax.lax.rsqrt(jnp.maximum(ss, L2_EPS * L2_EPS))


def _softmax(x):
    m = jnp.max(x, axis=-1, keepdims=True)
    e = jnp.exp(x - m)
    return e / jnp.sum(e, axis=-1, keepdims=True)


def _sigmoid(x):
    return 1.0 / (1.0 + jnp.exp(-x))


# ------------------------------- block forward --------------------------------
def _forward_block(x, adj, mask,
                   w1r, w1o, b1, wp1, bp1,
                   w3r, w3o, b3, wp2, bp2,
                   w5r, w5o, b5, wt1, bt1, wt2, bt2, wf, bf):
    """Forward for BLK graphs: x (BLK,N,Cin), adj (BLK,N,N), mask (BLK,N,1) -> (1,BLK).

    The weight arguments may be Pallas Refs (kernel path) or plain arrays
    (reference path); they are indexed with [...] at the point of use.
    """
    BLK, N, Cin = x.shape

    # ---- sage1: batched neighbor aggregation + flat node-wise linear ----
    agg = _bmm(adj, x)                                               # (BLK,N,Cin)
    deg = jnp.maximum(jnp.sum(adj, axis=-1, keepdims=True), 1.0)
    aggf = (agg / deg).reshape(BLK * N, Cin)
    xf = x.reshape(BLK * N, Cin)
    h = _mm(aggf, w1r[...]) + _mm(xf, w1o[...]) + b1[...]
    h = _leaky(_l2norm(h))                                           # (BLK*N, C1)

    # ---- diff-pool #1 assignment (batched linear + softmax) ----
    s = _softmax(_mm(h, wp1[...]) + bp1[...])                        # (BLK*N, P1)

    lane = jax.lax.broadcasted_iota(jnp.int32, (1, BLK), 1)
    outs = jnp.zeros((1, BLK), jnp.float32)

    # ---- remaining stages are per-graph (adjacency-coupled, few nodes) ----
    for g in range(BLK):
        a_g = adj[g]                                                 # (N, N)
        m_g = mask[g]                                                # (N, 1)
        h_g = h[g * N:(g + 1) * N] * m_g                             # (N, C1)
        s_g = s[g * N:(g + 1) * N] * m_g                             # (N, P1)

        # dense_diff_pool #1:  s^T h , s^T A s  (TN contractions, no explicit .T)
        hp = _mm_tn(s_g, h_g)                                        # (P1, C1)
        ap = _mm(_mm_tn(s_g, a_g), s_g)                              # (P1, P1)

        # sage3 + leaky_relu
        agg3 = _mm(ap, hp) / jnp.maximum(jnp.sum(ap, axis=-1, keepdims=True), 1.0)
        h3 = _mm(agg3, w3r[...]) + _mm(hp, w3o[...]) + b3[...]
        h3 = _leaky(_l2norm(h3))                                     # (P1, C3)

        # dense_diff_pool #2 (no mask)
        s2 = _softmax(_mm(h3, wp2[...]) + bp2[...])                  # (P1, P2)
        hp2 = _mm_tn(s2, h3)                                         # (P2, C3)
        ap2 = _mm(_mm_tn(s2, ap), s2)                                # (P2, P2)

        # sage5 + leaky_relu
        agg5 = _mm(ap2, hp2) / jnp.maximum(jnp.sum(ap2, axis=-1, keepdims=True), 1.0)
        h5 = _mm(agg5, w5r[...]) + _mm(hp2, w5o[...]) + b5[...]
        h5 = _leaky(_l2norm(h5))                                     # (P2, C5)

        # tr1, tr2 (leaky after each), squeeze(2) + fin + sigmoid
        h6 = _leaky(_mm(h5, wt1[...]) + bt1[...])                    # (P2, C6)
        h7 = _leaky(_mm(h6, wt2[...]) + bt2[...])                    # (P2, 1)
        val = jnp.sum(h7 * wf[...], axis=0, keepdims=True) + bf[...]  # (1, 1)
        val = _sigmoid(val)

        outs = outs + jnp.where(lane == g, val, 0.0)                 # write lane g
    return outs                                                      # (1, BLK)


# --------------------------------- kernel --------------------------------------
def graph_class_kernel(x_ref, adj_ref, mask_ref, *rest):
    *w_refs, out_ref = rest
    res = _forward_block(x_ref[...], adj_ref[...], mask_ref[...], *w_refs)  # (1, BLK)
    out_ref[...] = res.reshape(1, 1, -1)


def graph_class_forward(x, adj, mask, weights, blk=None):
    """x: (B,N,Cin), adj: (B,N,N), mask: (B,N,1) float32 -> (B,1) float32."""
    B, N, Cin = x.shape
    if blk is None:
        # largest power-of-two batch block (<=8) that divides B; amortizes
        # per-grid-step overhead while keeping blocks small enough for VMEM.
        blk = max(d for d in (1, 2, 4, 8) if B % d == 0)
    grid = (B // blk,)

    def data_spec(shape):
        nd = len(shape)
        return pl.BlockSpec((blk,) + tuple(shape[1:]),
                            lambda g, nd=nd: (g,) + (0,) * (nd - 1))

    def weight_spec(w):
        nd = w.ndim
        return pl.BlockSpec(w.shape, lambda g, nd=nd: (0,) * nd)

    in_specs = [data_spec(x.shape), data_spec(adj.shape), data_spec(mask.shape)]
    in_specs += [weight_spec(w) for w in weights]

    out = pl.pallas_call(
        graph_class_kernel,
        out_shape=jax.ShapeDtypeStruct((B // blk, 1, blk), jnp.float32),
        grid=grid,
        in_specs=in_specs,
        out_specs=pl.BlockSpec((1, 1, blk), lambda g: (g, 0, 0)),
        compiler_params=pltpu.CompilerParams(
            dimension_semantics=("parallel",),
            vmem_limit_bytes=32 * 1024 * 1024,
        ),
    )(x, adj, mask, *weights)
    return out.reshape(B, 1)


# ------------------------------- parameters ------------------------------------
def init_params(key, in_channels, c1, c3, c5, c6, p1=50, p2=15):
    """Deterministic parameter init; Linear weights stored as (in, out)."""
    keys = jax.random.split(key, 24)     # generous: 19 are consumed
    it = iter(keys)

    def w(shape):
        return jax.random.normal(next(it), shape, jnp.float32) * 0.1

    params = [
        # sage1: lin_rel (no bias), lin_root (bias)
        w((in_channels, c1)), w((in_channels, c1)), w((1, c1)),
        # poolit1
        w((c1, p1)), w((1, p1)),
        # sage3
        w((c1, c3)), w((c1, c3)), w((1, c3)),
        # poolit2
        w((c3, p2)), w((1, p2)),
        # sage5
        w((c3, c5)), w((c3, c5)), w((1, c5)),
        # tr1, tr2
        w((c5, c6)), w((1, c6)),
        w((c6, 1)), w((1, 1)),
        # fin: Linear(15, 1)
        w((p2, 1)), w((1, 1)),
    ]
    return params


if __name__ == "__main__":
    # Small, shape-consistent problem: B=2 graphs, maxnodes N=16, in_channels=8,
    # out_channels1/3/5 = 32, out_channels6 = 16.  Pool sizes 50 and 15 are
    # fixed by the module definition (poolit1 -> 50, poolit2 -> 15).
    B, N, CIN = 2, 16, 8
    C1, C3, C5, C6 = 32, 32, 32, 16

    root = jax.random.PRNGKey(0)
    kx, kadj, klen, kparam = jax.random.split(root, 4)

    x = jax.random.normal(kx, (B, N, CIN), jnp.float32)
    adj_raw = (jax.random.uniform(kadj, (B, N, N)) > 0.5).astype(jnp.float32)
    adj = jnp.maximum(adj_raw, jnp.transpose(adj_raw, (0, 2, 1)))   # symmetric 0/1 adj
    lengs = jax.random.randint(klen, (B,), 8, N + 1)
    mask = (jnp.arange(N)[None, :] < lengs[:, None]).astype(jnp.float32)[..., None]

    weights = init_params(kparam, CIN, C1, C3, C5, C6)

    # Pallas kernel
    out = graph_class_forward(x, adj, mask, weights)
    out = jax.block_until_ready(out)

    # Pure-JAX reference: the same batched forward evaluated outside Pallas.
    ref = _forward_block(x, adj, mask, *weights)                    # (1, B)
    ref = jax.block_until_ready(ref).reshape(B, 1)

    np.testing.assert_allclose(np.asarray(out), np.asarray(ref), rtol=2e-3, atol=2e-3)
    assert out.shape == (B, 1)
    print("KERNEL_OK")
</pallas_src>

<mosaic_0001>
module attributes {stable_mosaic.version = 11 : i64} {
  func.func @graph_class_kernel(%arg0: i32, %arg1: memref<2x16x8xf32, #tpu.memory_space<vmem>>, %arg2: memref<2x16x16xf32, #tpu.memory_space<vmem>>, %arg3: memref<2x16x1xf32, #tpu.memory_space<vmem>>, %arg4: memref<8x32xf32, #tpu.memory_space<vmem>>, %arg5: memref<8x32xf32, #tpu.memory_space<vmem>>, %arg6: memref<1x32xf32, #tpu.memory_space<vmem>>, %arg7: memref<32x50xf32, #tpu.memory_space<vmem>>, %arg8: memref<1x50xf32, #tpu.memory_space<vmem>>, %arg9: memref<32x32xf32, #tpu.memory_space<vmem>>, %arg10: memref<32x32xf32, #tpu.memory_space<vmem>>, %arg11: memref<1x32xf32, #tpu.memory_space<vmem>>, %arg12: memref<32x15xf32, #tpu.memory_space<vmem>>, %arg13: memref<1x15xf32, #tpu.memory_space<vmem>>, %arg14: memref<32x32xf32, #tpu.memory_space<vmem>>, %arg15: memref<32x32xf32, #tpu.memory_space<vmem>>, %arg16: memref<1x32xf32, #tpu.memory_space<vmem>>, %arg17: memref<32x16xf32, #tpu.memory_space<vmem>>, %arg18: memref<1x16xf32, #tpu.memory_space<vmem>>, %arg19: memref<16x1xf32, #tpu.memory_space<vmem>>, %arg20: memref<1x1xf32, #tpu.memory_space<vmem>>, %arg21: memref<15x1xf32, #tpu.memory_space<vmem>>, %arg22: memref<1x1xf32, #tpu.memory_space<vmem>>, %arg23: memref<1x1x2xf32, #tpu.memory_space<vmem>>) attributes {dimension_semantics = [#tpu.dimension_semantics<parallel>], iteration_bounds = array<i64: 1>, scalar_prefetch = 0 : i64, scratch_operands = 0 : i64, tpu.core_type = #tpu.core_type<tc>, window_params = [{transform_indices = @transform_0, window_bounds = array<i64: 2, 16, 8>}, {transform_indices = @transform_1, window_bounds = array<i64: 2, 16, 16>}, {transform_indices = @transform_2, window_bounds = array<i64: 2, 16, 1>}, {pipeline_mode = #tpu.pipeline_mode<synchronous>, transform_indices = @transform_3, window_bounds = array<i64: 8, 32>}, {pipeline_mode = #tpu.pipeline_mode<synchronous>, transform_indices = @transform_4, window_bounds = array<i64: 8, 32>}, {pipeline_mode = #tpu.pipeline_mode<synchronous>, transform_indices = @transform_5, window_bounds = array<i64: 1, 32>}, {pipeline_mode = #tpu.pipeline_mode<synchronous>, transform_indices = @transform_6, window_bounds = array<i64: 32, 50>}, {pipeline_mode = #tpu.pipeline_mode<synchronous>, transform_indices = @transform_7, window_bounds = array<i64: 1, 50>}, {pipeline_mode = #tpu.pipeline_mode<synchronous>, transform_indices = @transform_8, window_bounds = array<i64: 32, 32>}, {pipeline_mode = #tpu.pipeline_mode<synchronous>, transform_indices = @transform_9, window_bounds = array<i64: 32, 32>}, {pipeline_mode = #tpu.pipeline_mode<synchronous>, transform_indices = @transform_10, window_bounds = array<i64: 1, 32>}, {pipeline_mode = #tpu.pipeline_mode<synchronous>, transform_indices = @transform_11, window_bounds = array<i64: 32, 15>}, {pipeline_mode = #tpu.pipeline_mode<synchronous>, transform_indices = @transform_12, window_bounds = array<i64: 1, 15>}, {pipeline_mode = #tpu.pipeline_mode<synchronous>, transform_indices = @transform_13, window_bounds = array<i64: 32, 32>}, {pipeline_mode = #tpu.pipeline_mode<synchronous>, transform_indices = @transform_14, window_bounds = array<i64: 32, 32>}, {pipeline_mode = #tpu.pipeline_mode<synchronous>, transform_indices = @transform_15, window_bounds = array<i64: 1, 32>}, {pipeline_mode = #tpu.pipeline_mode<synchronous>, transform_indices = @transform_16, window_bounds = array<i64: 32, 16>}, {pipeline_mode = #tpu.pipeline_mode<synchronous>, transform_indices = @transform_17, window_bounds = array<i64: 1, 16>}, {pipeline_mode = #tpu.pipeline_mode<synchronous>, transform_indices = @transform_18, window_bounds = array<i64: 16, 1>}, {pipeline_mode = #tpu.pipeline_mode<synchronous>, transform_indices = @transform_19, window_bounds = array<i64: 1, 1>}, {pipeline_mode = #tpu.pipeline_mode<synchronous>, transform_indices = @transform_20, window_bounds = array<i64: 15, 1>}, {pipeline_mode = #tpu.pipeline_mode<synchronous>, transform_indices = @transform_21, window_bounds = array<i64: 1, 1>}, {transform_indices = @transform_22, window_bounds = array<i64: 1, 1, 2>}]} {
    %c0 = arith.constant 0 : index
    %c0_0 = arith.constant 0 : index
    %c0_1 = arith.constant 0 : index
    %0 = vector.load %arg1[%c0, %c0_0, %c0_1] : memref<2x16x8xf32, #tpu.memory_space<vmem>>, vector<2x16x8xf32>
    %c0_2 = arith.constant 0 : index
    %c0_3 = arith.constant 0 : index
    %c0_4 = arith.constant 0 : index
    %1 = vector.load %arg2[%c0_2, %c0_3, %c0_4] : memref<2x16x16xf32, #tpu.memory_space<vmem>>, vector<2x16x16xf32>
    %c0_5 = arith.constant 0 : index
    %c0_6 = arith.constant 0 : index
    %c0_7 = arith.constant 0 : index
    %2 = vector.load %arg3[%c0_5, %c0_6, %c0_7] : memref<2x16x1xf32, #tpu.memory_space<vmem>>, vector<2x16x1xf32>
    %3 = arith.truncf %1 : vector<2x16x16xf32> to vector<2x16x16xbf16>
    %4 = arith.truncf %0 : vector<2x16x8xf32> to vector<2x16x8xbf16>
    "tpu.trace_start"() <{level = 10 : i32, message = "bnm,bmc->bnc"}> : () -> ()
    %cst = arith.constant dense<0.000000e+00> : vector<2x16x8xf32>
    %5 = tpu.matmul %3, %4, %cst {dimension_numbers = #tpu.dot_dimension_numbers<[2], [1], [1], [2], [0, 0, 0, 1, 1, 2], [0], [0]>} : vector<2x16x16xbf16>, vector<2x16x8xbf16>, vector<2x16x8xf32> -> vector<2x16x8xf32>
    "tpu.trace_stop"() : () -> ()
    %cst_8 = arith.constant dense<0.000000e+00> : vector<2x16xf32>
    %6 = vector.multi_reduction <add>, %1, %cst_8 [2] : vector<2x16x16xf32> to vector<2x16xf32>
    %7 = vector.shape_cast %6 : vector<2x16xf32> to vector<2x16x1xf32>
    %cst_9 = arith.constant 1.000000e+00 : f32
    %8 = vector.broadcast %cst_9 : f32 to vector<2x16x1xf32>
    %9 = arith.maximumf %7, %8 : vector<2x16x1xf32>
    %10 = vector.broadcast %9 : vector<2x16x1xf32> to vector<2x16x8xf32>
    %11 = arith.divf %5, %10 : vector<2x16x8xf32>
    %12 = vector.shape_cast %11 : vector<2x16x8xf32> to vector<32x8xf32>
    %13 = vector.shape_cast %0 : vector<2x16x8xf32> to vector<32x8xf32>
    %c0_10 = arith.constant 0 : index
    %c0_11 = arith.constant 0 : index
    %14 = vector.load %arg4[%c0_10, %c0_11] : memref<8x32xf32, #tpu.memory_space<vmem>>, vector<8x32xf32>
    %15 = arith.truncf %12 : vector<32x8xf32> to vector<32x8xbf16>
    %16 = arith.truncf %14 : vector<8x32xf32> to vector<8x32xbf16>
    %cst_12 = arith.constant dense<0.000000e+00> : vector<32x32xf32>
    %17 = tpu.matmul %15, %16, %cst_12 {dimension_numbers = #tpu.dot_dimension_numbers<[1], [0], [0], [1], [0, 0, 1, 1], [], []>} : vector<32x8xbf16>, vector<8x32xbf16>, vector<32x32xf32> -> vector<32x32xf32>
    %c0_13 = arith.constant 0 : index
    %c0_14 = arith.constant 0 : index
    %18 = vector.load %arg5[%c0_13, %c0_14] : memref<8x32xf32, #tpu.memory_space<vmem>>, vector<8x32xf32>
    %19 = arith.truncf %13 : vector<32x8xf32> to vector<32x8xbf16>
    %20 = arith.truncf %18 : vector<8x32xf32> to vector<8x32xbf16>
    %cst_15 = arith.constant dense<0.000000e+00> : vector<32x32xf32>
    %21 = tpu.matmul %19, %20, %cst_15 {dimension_numbers = #tpu.dot_dimension_numbers<[1], [0], [0], [1], [0, 0, 1, 1], [], []>} : vector<32x8xbf16>, vector<8x32xbf16>, vector<32x32xf32> -> vector<32x32xf32>
    %22 = arith.addf %17, %21 : vector<32x32xf32>
    %c0_16 = arith.constant 0 : index
    %c0_17 = arith.constant 0 : index
    %23 = vector.load %arg6[%c0_16, %c0_17] : memref<1x32xf32, #tpu.memory_space<vmem>>, vector<1x32xf32>
    %24 = vector.broadcast %23 : vector<1x32xf32> to vector<32x32xf32>
    %25 = arith.addf %22, %24 : vector<32x32xf32>
    %26 = arith.mulf %25, %25 : vector<32x32xf32>
    %cst_18 = arith.constant dense<0.000000e+00> : vector<32xf32>
    %27 = vector.multi_reduction <add>, %26, %cst_18 [1] : vector<32x32xf32> to vector<32xf32>
    %28 = vector.shape_cast %27 : vector<32xf32> to vector<32x1xf32>
    %cst_19 = arith.constant 1.000000e-24 : f32
    %29 = vector.broadcast %cst_19 : f32 to vector<32x1xf32>
    %30 = arith.maximumf %28, %29 : vector<32x1xf32>
    %31 = math.rsqrt %30 : vector<32x1xf32>
    %32 = vector.broadcast %31 : vector<32x1xf32> to vector<32x32xf32>
    %33 = arith.mulf %25, %32 : vector<32x32xf32>
    %cst_20 = arith.constant 0.000000e+00 : f32
    %34 = vector.broadcast %cst_20 : f32 to vector<32x32xf32>
    %35 = arith.cmpf oge, %33, %34 : vector<32x32xf32>
    %cst_21 = arith.constant 0.00999999977 : f32
    %36 = vector.broadcast %cst_21 : f32 to vector<32x32xf32>
    %37 = arith.mulf %36, %33 : vector<32x32xf32>
    %38 = arith.select %35, %33, %37 : vector<32x32xi1>, vector<32x32xf32>
    %c0_22 = arith.constant 0 : index
    %c0_23 = arith.constant 0 : index
    %39 = vector.load %arg7[%c0_22, %c0_23] : memref<32x50xf32, #tpu.memory_space<vmem>>, vector<32x50xf32>
    %40 = arith.truncf %38 : vector<32x32xf32> to vector<32x32xbf16>
    %41 = arith.truncf %39 : vector<32x50xf32> to vector<32x50xbf16>
    %cst_24 = arith.constant dense<0.000000e+00> : vector<32x50xf32>
    %42 = tpu.matmul %40, %41, %cst_24 {dimension_numbers = #tpu.dot_dimension_numbers<[1], [0], [0], [1], [0, 0, 1, 1], [], []>} : vector<32x32xbf16>, vector<32x50xbf16>, vector<32x50xf32> -> vector<32x50xf32>
    %c0_25 = arith.constant 0 : index
    %c0_26 = arith.constant 0 : index
    %43 = vector.load %arg8[%c0_25, %c0_26] : memref<1x50xf32, #tpu.memory_space<vmem>>, vector<1x50xf32>
    %44 = vector.broadcast %43 : vector<1x50xf32> to vector<32x50xf32>
    %45 = arith.addf %42, %44 : vector<32x50xf32>
    %cst_27 = arith.constant dense<0xFF800000> : vector<32xf32>
    %46 = vector.multi_reduction <maximumf>, %45, %cst_27 [1] : vector<32x50xf32> to vector<32xf32>
    %47 = vector.shape_cast %46 : vector<32xf32> to vector<32x1xf32>
    %48 = vector.broadcast %47 : vector<32x1xf32> to vector<32x50xf32>
    %49 = arith.subf %45, %48 : vector<32x50xf32>
    %50 = math.exp %49 : vector<32x50xf32>
    %cst_28 = arith.constant dense<0.000000e+00> : vector<32xf32>
    %51 = vector.multi_reduction <add>, %50, %cst_28 [1] : vector<32x50xf32> to vector<32xf32>
    %52 = vector.shape_cast %51 : vector<32xf32> to vector<32x1xf32>
    %53 = vector.broadcast %52 : vector<32x1xf32> to vector<32x50xf32>
    %54 = arith.divf %50, %53 : vector<32x50xf32>
    %55 = tpu.iota {dimensions = array<i32: 1>} : vector<1x2xi32>
    %cst_29 = arith.constant 0.000000e+00 : f32
    %56 = vector.broadcast %cst_29 : f32 to vector<1x2xf32>
    %57 = vector.extract_strided_slice %1 {offsets = [0, 0, 0], sizes = [1, 16, 16], strides = [1, 1, 1]} : vector<2x16x16xf32> to vector<1x16x16xf32>
    %58 = vector.shape_cast %57 : vector<1x16x16xf32> to vector<16x16xf32>
    %59 = vector.extract_strided_slice %2 {offsets = [0, 0, 0], sizes = [1, 16, 1], strides = [1, 1, 1]} : vector<2x16x1xf32> to vector<1x16x1xf32>
    %60 = vector.shape_cast %59 : vector<1x16x1xf32> to vector<16x1xf32>
    %61 = vector.extract_strided_slice %38 {offsets = [0, 0], sizes = [16, 32], strides = [1, 1]} : vector<32x32xf32> to vector<16x32xf32>
    %62 = vector.broadcast %60 : vector<16x1xf32> to vector<16x32xf32>
    %63 = arith.mulf %61, %62 : vector<16x32xf32>
    %64 = vector.extract_strided_slice %54 {offsets = [0, 0], sizes = [16, 50], strides = [1, 1]} : vector<32x50xf32> to vector<16x50xf32>
    %65 = vector.broadcast %60 : vector<16x1xf32> to vector<16x50xf32>
    %66 = arith.mulf %64, %65 : vector<16x50xf32>
    %67 = arith.truncf %66 : vector<16x50xf32> to vector<16x50xbf16>
    %68 = arith.truncf %63 : vector<16x32xf32> to vector<16x32xbf16>
    %cst_30 = arith.constant dense<0.000000e+00> : vector<50x32xf32>
    %69 = tpu.matmul %67, %68, %cst_30 {dimension_numbers = #tpu.dot_dimension_numbers<[0], [0], [1], [1], [0, 1, 1, 1], [], []>} : vector<16x50xbf16>, vector<16x32xbf16>, vector<50x32xf32> -> vector<50x32xf32>
    %70 = arith.truncf %66 : vector<16x50xf32> to vector<16x50xbf16>
    %71 = arith.truncf %58 : vector<16x16xf32> to vector<16x16xbf16>
    %cst_31 = arith.constant dense<0.000000e+00> : vector<50x16xf32>
    %72 = tpu.matmul %70, %71, %cst_31 {dimension_numbers = #tpu.dot_dimension_numbers<[0], [0], [1], [1], [0, 1, 1, 1], [], []>} : vector<16x50xbf16>, vector<16x16xbf16>, vector<50x16xf32> -> vector<50x16xf32>
    %73 = arith.truncf %72 : vector<50x16xf32> to vector<50x16xbf16>
    %74 = arith.truncf %66 : vector<16x50xf32> to vector<16x50xbf16>
    %cst_32 = arith.constant dense<0.000000e+00> : vector<50x50xf32>
    %75 = tpu.matmul %73, %74, %cst_32 {dimension_numbers = #tpu.dot_dimension_numbers<[1], [0], [0], [1], [0, 0, 1, 1], [], []>} : vector<50x16xbf16>, vector<16x50xbf16>, vector<50x50xf32> -> vector<50x50xf32>
    %76 = arith.truncf %75 : vector<50x50xf32> to vector<50x50xbf16>
    %77 = arith.truncf %69 : vector<50x32xf32> to vector<50x32xbf16>
    %cst_33 = arith.constant dense<0.000000e+00> : vector<50x32xf32>
    %78 = tpu.matmul %76, %77, %cst_33 {dimension_numbers = #tpu.dot_dimension_numbers<[1], [0], [0], [1], [0, 0, 1, 1], [], []>} : vector<50x50xbf16>, vector<50x32xbf16>, vector<50x32xf32> -> vector<50x32xf32>
    %cst_34 = arith.constant dense<0.000000e+00> : vector<50xf32>
    %79 = vector.multi_reduction <add>, %75, %cst_34 [1] : vector<50x50xf32> to vector<50xf32>
    %80 = vector.shape_cast %79 : vector<50xf32> to vector<50x1xf32>
    %cst_35 = arith.constant 1.000000e+00 : f32
    %81 = vector.broadcast %cst_35 : f32 to vector<50x1xf32>
    %82 = arith.maximumf %80, %81 : vector<50x1xf32>
    %83 = vector.broadcast %82 : vector<50x1xf32> to vector<50x32xf32>
    %84 = arith.divf %78, %83 : vector<50x32xf32>
    %c0_36 = arith.constant 0 : index
    %c0_37 = arith.constant 0 : index
    %85 = vector.load %arg9[%c0_36, %c0_37] : memref<32x32xf32, #tpu.memory_space<vmem>>, vector<32x32xf32>
    %86 = arith.truncf %84 : vector<50x32xf32> to vector<50x32xbf16>
    %87 = arith.truncf %85 : vector<32x32xf32> to vector<32x32xbf16>
    %cst_38 = arith.constant dense<0.000000e+00> : vector<50x32xf32>
    %88 = tpu.matmul %86, %87, %cst_38 {dimension_numbers = #tpu.dot_dimension_numbers<[1], [0], [0], [1], [0, 0, 1, 1], [], []>} : vector<50x32xbf16>, vector<32x32xbf16>, vector<50x32xf32> -> vector<50x32xf32>
    %c0_39 = arith.constant 0 : index
    %c0_40 = arith.constant 0 : index
    %89 = vector.load %arg10[%c0_39, %c0_40] : memref<32x32xf32, #tpu.memory_space<vmem>>, vector<32x32xf32>
    %90 = arith.truncf %69 : vector<50x32xf32> to vector<50x32xbf16>
    %91 = arith.truncf %89 : vector<32x32xf32> to vector<32x32xbf16>
    %cst_41 = arith.constant dense<0.000000e+00> : vector<50x32xf32>
    %92 = tpu.matmul %90, %91, %cst_41 {dimension_numbers = #tpu.dot_dimension_numbers<[1], [0], [0], [1], [0, 0, 1, 1], [], []>} : vector<50x32xbf16>, vector<32x32xbf16>, vector<50x32xf32> -> vector<50x32xf32>
    %93 = arith.addf %88, %92 : vector<50x32xf32>
    %c0_42 = arith.constant 0 : index
    %c0_43 = arith.constant 0 : index
    %94 = vector.load %arg11[%c0_42, %c0_43] : memref<1x32xf32, #tpu.memory_space<vmem>>, vector<1x32xf32>
    %95 = vector.broadcast %94 : vector<1x32xf32> to vector<50x32xf32>
    %96 = arith.addf %93, %95 : vector<50x32xf32>
    %97 = arith.mulf %96, %96 : vector<50x32xf32>
    %cst_44 = arith.constant dense<0.000000e+00> : vector<50xf32>
    %98 = vector.multi_reduction <add>, %97, %cst_44 [1] : vector<50x32xf32> to vector<50xf32>
    %99 = vector.shape_cast %98 : vector<50xf32> to vector<50x1xf32>
    %cst_45 = arith.constant 1.000000e-24 : f32
    %100 = vector.broadcast %cst_45 : f32 to vector<50x1xf32>
    %101 = arith.maximumf %99, %100 : vector<50x1xf32>
    %102 = math.rsqrt %101 : vector<50x1xf32>
    %103 = vector.broadcast %102 : vector<50x1xf32> to vector<50x32xf32>
    %104 = arith.mulf %96, %103 : vector<50x32xf32>
    %cst_46 = arith.constant 0.000000e+00 : f32
    %105 = vector.broadcast %cst_46 : f32 to vector<50x32xf32>
    %106 = arith.cmpf oge, %104, %105 : vector<50x32xf32>
    %cst_47 = arith.constant 0.00999999977 : f32
    %107 = vector.broadcast %cst_47 : f32 to vector<50x32xf32>
    %108 = arith.mulf %107, %104 : vector<50x32xf32>
    %109 = arith.select %106, %104, %108 : vector<50x32xi1>, vector<50x32xf32>
    %c0_48 = arith.constant 0 : index
    %c0_49 = arith.constant 0 : index
    %110 = vector.load %arg12[%c0_48, %c0_49] : memref<32x15xf32, #tpu.memory_space<vmem>>, vector<32x15xf32>
    %111 = arith.truncf %109 : vector<50x32xf32> to vector<50x32xbf16>
    %112 = arith.truncf %110 : vector<32x15xf32> to vector<32x15xbf16>
    %cst_50 = arith.constant dense<0.000000e+00> : vector<50x15xf32>
    %113 = tpu.matmul %111, %112, %cst_50 {dimension_numbers = #tpu.dot_dimension_numbers<[1], [0], [0], [1], [0, 0, 1, 1], [], []>} : vector<50x32xbf16>, vector<32x15xbf16>, vector<50x15xf32> -> vector<50x15xf32>
    %c0_51 = arith.constant 0 : index
    %c0_52 = arith.constant 0 : index
    %114 = vector.load %arg13[%c0_51, %c0_52] : memref<1x15xf32, #tpu.memory_space<vmem>>, vector<1x15xf32>
    %115 = vector.broadcast %114 : vector<1x15xf32> to vector<50x15xf32>
    %116 = arith.addf %113, %115 : vector<50x15xf32>
    %cst_53 = arith.constant dense<0xFF800000> : vector<50xf32>
    %117 = vector.multi_reduction <maximumf>, %116, %cst_53 [1] : vector<50x15xf32> to vector<50xf32>
    %118 = vector.shape_cast %117 : vector<50xf32> to vector<50x1xf32>
    %119 = vector.broadcast %118 : vector<50x1xf32> to vector<50x15xf32>
    %120 = arith.subf %116, %119 : vector<50x15xf32>
    %121 = math.exp %120 : vector<50x15xf32>
    %cst_54 = arith.constant dense<0.000000e+00> : vector<50xf32>
    %122 = vector.multi_reduction <add>, %121, %cst_54 [1] : vector<50x15xf32> to vector<50xf32>
    %123 = vector.shape_cast %122 : vector<50xf32> to vector<50x1xf32>
    %124 = vector.broadcast %123 : vector<50x1xf32> to vector<50x15xf32>
    %125 = arith.divf %121, %124 : vector<50x15xf32>
    %126 = arith.truncf %125 : vector<50x15xf32> to vector<50x15xbf16>
    %127 = arith.truncf %109 : vector<50x32xf32> to vector<50x32xbf16>
    %cst_55 = arith.constant dense<0.000000e+00> : vector<15x32xf32>
    %128 = tpu.matmul %126, %127, %cst_55 {dimension_numbers = #tpu.dot_dimension_numbers<[0], [0], [1], [1], [0, 1, 1, 1], [], []>} : vector<50x15xbf16>, vector<50x32xbf16>, vector<15x32xf32> -> vector<15x32xf32>
    %129 = arith.truncf %125 : vector<50x15xf32> to vector<50x15xbf16>
    %130 = arith.truncf %75 : vector<50x50xf32> to vector<50x50xbf16>
    %cst_56 = arith.constant dense<0.000000e+00> : vector<15x50xf32>
    %131 = tpu.matmul %129, %130, %cst_56 {dimension_numbers = #tpu.dot_dimension_numbers<[0], [0], [1], [1], [0, 1, 1, 1], [], []>} : vector<50x15xbf16>, vector<50x50xbf16>, vector<15x50xf32> -> vector<15x50xf32>
    %132 = arith.truncf %131 : vector<15x50xf32> to vector<15x50xbf16>
    %133 = arith.truncf %125 : vector<50x15xf32> to vector<50x15xbf16>
    %cst_57 = arith.constant dense<0.000000e+00> : vector<15x15xf32>
    %134 = tpu.matmul %132, %133, %cst_57 {dimension_numbers = #tpu.dot_dimension_numbers<[1], [0], [0], [1], [0, 0, 1, 1], [], []>} : vector<15x50xbf16>, vector<50x15xbf16>, vector<15x15xf32> -> vector<15x15xf32>
    %135 = arith.truncf %134 : vector<15x15xf32> to vector<15x15xbf16>
    %136 = arith.truncf %128 : vector<15x32xf32> to vector<15x32xbf16>
    %cst_58 = arith.constant dense<0.000000e+00> : vector<15x32xf32>
    %137 = tpu.matmul %135, %136, %cst_58 {dimension_numbers = #tpu.dot_dimension_numbers<[1], [0], [0], [1], [0, 0, 1, 1], [], []>} : vector<15x15xbf16>, vector<15x32xbf16>, vector<15x32xf32> -> vector<15x32xf32>
    %cst_59 = arith.constant dense<0.000000e+00> : vector<15xf32>
    %138 = vector.multi_reduction <add>, %134, %cst_59 [1] : vector<15x15xf32> to vector<15xf32>
    %139 = vector.shape_cast %138 : vector<15xf32> to vector<15x1xf32>
    %cst_60 = arith.constant 1.000000e+00 : f32
    %140 = vector.broadcast %cst_60 : f32 to vector<15x1xf32>
    %141 = arith.maximumf %139, %140 : vector<15x1xf32>
    %142 = vector.broadcast %141 : vector<15x1xf32> to vector<15x32xf32>
    %143 = arith.divf %137, %142 : vector<15x32xf32>
    %c0_61 = arith.constant 0 : index
    %c0_62 = arith.constant 0 : index
    %144 = vector.load %arg14[%c0_61, %c0_62] : memref<32x32xf32, #tpu.memory_space<vmem>>, vector<32x32xf32>
    %145 = arith.truncf %143 : vector<15x32xf32> to vector<15x32xbf16>
    %146 = arith.truncf %144 : vector<32x32xf32> to vector<32x32xbf16>
    %cst_63 = arith.constant dense<0.000000e+00> : vector<15x32xf32>
    %147 = tpu.matmul %145, %146, %cst_63 {dimension_numbers = #tpu.dot_dimension_numbers<[1], [0], [0], [1], [0, 0, 1, 1], [], []>} : vector<15x32xbf16>, vector<32x32xbf16>, vector<15x32xf32> -> vector<15x32xf32>
    %c0_64 = arith.constant 0 : index
    %c0_65 = arith.constant 0 : index
    %148 = vector.load %arg15[%c0_64, %c0_65] : memref<32x32xf32, #tpu.memory_space<vmem>>, vector<32x32xf32>
    %149 = arith.truncf %128 : vector<15x32xf32> to vector<15x32xbf16>
    %150 = arith.truncf %148 : vector<32x32xf32> to vector<32x32xbf16>
    %cst_66 = arith.constant dense<0.000000e+00> : vector<15x32xf32>
    %151 = tpu.matmul %149, %150, %cst_66 {dimension_numbers = #tpu.dot_dimension_numbers<[1], [0], [0], [1], [0, 0, 1, 1], [], []>} : vector<15x32xbf16>, vector<32x32xbf16>, vector<15x32xf32> -> vector<15x32xf32>
    %152 = arith.addf %147, %151 : vector<15x32xf32>
    %c0_67 = arith.constant 0 : index
    %c0_68 = arith.constant 0 : index
    %153 = vector.load %arg16[%c0_67, %c0_68] : memref<1x32xf32, #tpu.memory_space<vmem>>, vector<1x32xf32>
    %154 = vector.broadcast %153 : vector<1x32xf32> to vector<15x32xf32>
    %155 = arith.addf %152, %154 : vector<15x32xf32>
    %156 = arith.mulf %155, %155 : vector<15x32xf32>
    %cst_69 = arith.constant dense<0.000000e+00> : vector<15xf32>
    %157 = vector.multi_reduction <add>, %156, %cst_69 [1] : vector<15x32xf32> to vector<15xf32>
    %158 = vector.shape_cast %157 : vector<15xf32> to vector<15x1xf32>
    %cst_70 = arith.constant 1.000000e-24 : f32
    %159 = vector.broadcast %cst_70 : f32 to vector<15x1xf32>
    %160 = arith.maximumf %158, %159 : vector<15x1xf32>
    %161 = math.rsqrt %160 : vector<15x1xf32>
    %162 = vector.broadcast %161 : vector<15x1xf32> to vector<15x32xf32>
    %163 = arith.mulf %155, %162 : vector<15x32xf32>
    %cst_71 = arith.constant 0.000000e+00 : f32
    %164 = vector.broadcast %cst_71 : f32 to vector<15x32xf32>
    %165 = arith.cmpf oge, %163, %164 : vector<15x32xf32>
    %cst_72 = arith.constant 0.00999999977 : f32
    %166 = vector.broadcast %cst_72 : f32 to vector<15x32xf32>
    %167 = arith.mulf %166, %163 : vector<15x32xf32>
    %168 = arith.select %165, %163, %167 : vector<15x32xi1>, vector<15x32xf32>
    %c0_73 = arith.constant 0 : index
    %c0_74 = arith.constant 0 : index
    %169 = vector.load %arg17[%c0_73, %c0_74] : memref<32x16xf32, #tpu.memory_space<vmem>>, vector<32x16xf32>
    %170 = arith.truncf %168 : vector<15x32xf32> to vector<15x32xbf16>
    %171 = arith.truncf %169 : vector<32x16xf32> to vector<32x16xbf16>
    %cst_75 = arith.constant dense<0.000000e+00> : vector<15x16xf32>
    %172 = tpu.matmul %170, %171, %cst_75 {dimension_numbers = #tpu.dot_dimension_numbers<[1], [0], [0], [1], [0, 0, 1, 1], [], []>} : vector<15x32xbf16>, vector<32x16xbf16>, vector<15x16xf32> -> vector<15x16xf32>
    %c0_76 = arith.constant 0 : index
    %c0_77 = arith.constant 0 : index
    %173 = vector.load %arg18[%c0_76, %c0_77] : memref<1x16xf32, #tpu.memory_space<vmem>>, vector<1x16xf32>
    %174 = vector.broadcast %173 : vector<1x16xf32> to vector<15x16xf32>
    %175 = arith.addf %172, %174 : vector<15x16xf32>
    %cst_78 = arith.constant 0.000000e+00 : f32
    %176 = vector.broadcast %cst_78 : f32 to vector<15x16xf32>
    %177 = arith.cmpf oge, %175, %176 : vector<15x16xf32>
    %cst_79 = arith.constant 0.00999999977 : f32
    %178 = vector.broadcast %cst_79 : f32 to vector<15x16xf32>
    %179 = arith.mulf %178, %175 : vector<15x16xf32>
    %180 = arith.select %177, %175, %179 : vector<15x16xi1>, vector<15x16xf32>
    %c0_80 = arith.constant 0 : index
    %c0_81 = arith.constant 0 : index
    %181 = vector.load %arg19[%c0_80, %c0_81] : memref<16x1xf32, #tpu.memory_space<vmem>>, vector<16x1xf32>
    %182 = arith.truncf %180 : vector<15x16xf32> to vector<15x16xbf16>
    %183 = arith.truncf %181 : vector<16x1xf32> to vector<16x1xbf16>
    %cst_82 = arith.constant dense<0.000000e+00> : vector<15x1xf32>
    %184 = tpu.matmul %182, %183, %cst_82 {dimension_numbers = #tpu.dot_dimension_numbers<[1], [0], [0], [1], [0, 0, 1, 1], [], []>} : vector<15x16xbf16>, vector<16x1xbf16>, vector<15x1xf32> -> vector<15x1xf32>
    %c0_83 = arith.constant 0 : index
    %c0_84 = arith.constant 0 : index
    %185 = vector.load %arg20[%c0_83, %c0_84] : memref<1x1xf32, #tpu.memory_space<vmem>>, vector<1x1xf32>
    %186 = vector.broadcast %185 : vector<1x1xf32> to vector<15x1xf32>
    %187 = arith.addf %184, %186 : vector<15x1xf32>
    %cst_85 = arith.constant 0.000000e+00 : f32
    %188 = vector.broadcast %cst_85 : f32 to vector<15x1xf32>
    %189 = arith.cmpf oge, %187, %188 : vector<15x1xf32>
    %cst_86 = arith.constant 0.00999999977 : f32
    %190 = vector.broadcast %cst_86 : f32 to vector<15x1xf32>
    %191 = arith.mulf %190, %187 : vector<15x1xf32>
    %192 = arith.select %189, %187, %191 : vector<15x1xi1>, vector<15x1xf32>
    %c0_87 = arith.constant 0 : index
    %c0_88 = arith.constant 0 : index
    %193 = vector.load %arg21[%c0_87, %c0_88] : memref<15x1xf32, #tpu.memory_space<vmem>>, vector<15x1xf32>
    %194 = arith.mulf %192, %193 : vector<15x1xf32>
    %cst_89 = arith.constant dense<0.000000e+00> : vector<1xf32>
    %195 = vector.multi_reduction <add>, %194, %cst_89 [0] : vector<15x1xf32> to vector<1xf32>
    %196 = vector.shape_cast %195 : vector<1xf32> to vector<1x1xf32>
    %c0_90 = arith.constant 0 : index
    %c0_91 = arith.constant 0 : index
    %197 = vector.load %arg22[%c0_90, %c0_91] : memref<1x1xf32, #tpu.memory_space<vmem>>, vector<1x1xf32>
    %198 = arith.addf %196, %197 : vector<1x1xf32>
    %cst_92 = arith.constant 0.000000e+00 : f32
    %199 = vector.broadcast %cst_92 : f32 to vector<1x1xf32>
    %200 = arith.subf %199, %198 : vector<1x1xf32>
    %201 = math.exp %200 : vector<1x1xf32>
    %cst_93 = arith.constant 1.000000e+00 : f32
    %202 = vector.broadcast %cst_93 : f32 to vector<1x1xf32>
    %203 = arith.addf %202, %201 : vector<1x1xf32>
    %cst_94 = arith.constant 1.000000e+00 : f32
    %204 = vector.broadcast %cst_94 : f32 to vector<1x1xf32>
    %205 = arith.divf %204, %203 : vector<1x1xf32>
    %c0_i32 = arith.constant 0 : i32
    %206 = vector.broadcast %c0_i32 : i32 to vector<1x2xi32>
    %207 = arith.cmpi eq, %55, %206 : vector<1x2xi32>
    %cst_95 = arith.constant 0.000000e+00 : f32
    %208 = vector.shape_cast %205 : vector<1x1xf32> to vector<1x1xf32>
    %209 = vector.broadcast %208 : vector<1x1xf32> to vector<1x2xf32>
    %210 = vector.broadcast %cst_95 : f32 to vector<1x2xf32>
    %211 = arith.select %207, %209, %210 : vector<1x2xi1>, vector<1x2xf32>
    %212 = arith.addf %56, %211 : vector<1x2xf32>
    %213 = vector.extract_strided_slice %1 {offsets = [1, 0, 0], sizes = [1, 16, 16], strides = [1, 1, 1]} : vector<2x16x16xf32> to vector<1x16x16xf32>
    %214 = vector.shape_cast %213 : vector<1x16x16xf32> to vector<16x16xf32>
    %215 = vector.extract_strided_slice %2 {offsets = [1, 0, 0], sizes = [1, 16, 1], strides = [1, 1, 1]} : vector<2x16x1xf32> to vector<1x16x1xf32>
    %216 = vector.shape_cast %215 : vector<1x16x1xf32> to vector<16x1xf32>
    %217 = vector.extract_strided_slice %38 {offsets = [16, 0], sizes = [16, 32], strides = [1, 1]} : vector<32x32xf32> to vector<16x32xf32>
    %218 = vector.broadcast %216 : vector<16x1xf32> to vector<16x32xf32>
    %219 = arith.mulf %217, %218 : vector<16x32xf32>
    %220 = vector.extract_strided_slice %54 {offsets = [16, 0], sizes = [16, 50], strides = [1, 1]} : vector<32x50xf32> to vector<16x50xf32>
    %221 = vector.broadcast %216 : vector<16x1xf32> to vector<16x50xf32>
    %222 = arith.mulf %220, %221 : vector<16x50xf32>
    %223 = arith.truncf %222 : vector<16x50xf32> to vector<16x50xbf16>
    %224 = arith.truncf %219 : vector<16x32xf32> to vector<16x32xbf16>
    %cst_96 = arith.constant dense<0.000000e+00> : vector<50x32xf32>
    %225 = tpu.matmul %223, %224, %cst_96 {dimension_numbers = #tpu.dot_dimension_numbers<[0], [0], [1], [1], [0, 1, 1, 1], [], []>} : vector<16x50xbf16>, vector<16x32xbf16>, vector<50x32xf32> -> vector<50x32xf32>
    %226 = arith.truncf %222 : vector<16x50xf32> to vector<16x50xbf16>
    %227 = arith.truncf %214 : vector<16x16xf32> to vector<16x16xbf16>
    %cst_97 = arith.constant dense<0.000000e+00> : vector<50x16xf32>
    %228 = tpu.matmul %226, %227, %cst_97 {dimension_numbers = #tpu.dot_dimension_numbers<[0], [0], [1], [1], [0, 1, 1, 1], [], []>} : vector<16x50xbf16>, vector<16x16xbf16>, vector<50x16xf32> -> vector<50x16xf32>
    %229 = arith.truncf %228 : vector<50x16xf32> to vector<50x16xbf16>
    %230 = arith.truncf %222 : vector<16x50xf32> to vector<16x50xbf16>
    %cst_98 = arith.constant dense<0.000000e+00> : vector<50x50xf32>
    %231 = tpu.matmul %229, %230, %cst_98 {dimension_numbers = #tpu.dot_dimension_numbers<[1], [0], [0], [1], [0, 0, 1, 1], [], []>} : vector<50x16xbf16>, vector<16x50xbf16>, vector<50x50xf32> -> vector<50x50xf32>
    %232 = arith.truncf %231 : vector<50x50xf32> to vector<50x50xbf16>
    %233 = arith.truncf %225 : vector<50x32xf32> to vector<50x32xbf16>
    %cst_99 = arith.constant dense<0.000000e+00> : vector<50x32xf32>
    %234 = tpu.matmul %232, %233, %cst_99 {dimension_numbers = #tpu.dot_dimension_numbers<[1], [0], [0], [1], [0, 0, 1, 1], [], []>} : vector<50x50xbf16>, vector<50x32xbf16>, vector<50x32xf32> -> vector<50x32xf32>
    %cst_100 = arith.constant dense<0.000000e+00> : vector<50xf32>
    %235 = vector.multi_reduction <add>, %231, %cst_100 [1] : vector<50x50xf32> to vector<50xf32>
    %236 = vector.shape_cast %235 : vector<50xf32> to vector<50x1xf32>
    %cst_101 = arith.constant 1.000000e+00 : f32
    %237 = vector.broadcast %cst_101 : f32 to vector<50x1xf32>
    %238 = arith.maximumf %236, %237 : vector<50x1xf32>
    %239 = vector.broadcast %238 : vector<50x1xf32> to vector<50x32xf32>
    %240 = arith.divf %234, %239 : vector<50x32xf32>
    %c0_102 = arith.constant 0 : index
    %c0_103 = arith.constant 0 : index
    %241 = vector.load %arg9[%c0_102, %c0_103] : memref<32x32xf32, #tpu.memory_space<vmem>>, vector<32x32xf32>
    %242 = arith.truncf %240 : vector<50x32xf32> to vector<50x32xbf16>
    %243 = arith.truncf %241 : vector<32x32xf32> to vector<32x32xbf16>
    %cst_104 = arith.constant dense<0.000000e+00> : vector<50x32xf32>
    %244 = tpu.matmul %242, %243, %cst_104 {dimension_numbers = #tpu.dot_dimension_numbers<[1], [0], [0], [1], [0, 0, 1, 1], [], []>} : vector<50x32xbf16>, vector<32x32xbf16>, vector<50x32xf32> -> vector<50x32xf32>
    %c0_105 = arith.constant 0 : index
    %c0_106 = arith.constant 0 : index
    %245 = vector.load %arg10[%c0_105, %c0_106] : memref<32x32xf32, #tpu.memory_space<vmem>>, vector<32x32xf32>
    %246 = arith.truncf %225 : vector<50x32xf32> to vector<50x32xbf16>
    %247 = arith.truncf %245 : vector<32x32xf32> to vector<32x32xbf16>
    %cst_107 = arith.constant dense<0.000000e+00> : vector<50x32xf32>
    %248 = tpu.matmul %246, %247, %cst_107 {dimension_numbers = #tpu.dot_dimension_numbers<[1], [0], [0], [1], [0, 0, 1, 1], [], []>} : vector<50x32xbf16>, vector<32x32xbf16>, vector<50x32xf32> -> vector<50x32xf32>
    %249 = arith.addf %244, %248 : vector<50x32xf32>
    %c0_108 = arith.constant 0 : index
    %c0_109 = arith.constant 0 : index
    %250 = vector.load %arg11[%c0_108, %c0_109] : memref<1x32xf32, #tpu.memory_space<vmem>>, vector<1x32xf32>
    %251 = vector.broadcast %250 : vector<1x32xf32> to vector<50x32xf32>
    %252 = arith.addf %249, %251 : vector<50x32xf32>
    %253 = arith.mulf %252, %252 : vector<50x32xf32>
    %cst_110 = arith.constant dense<0.000000e+00> : vector<50xf32>
    %254 = vector.multi_reduction <add>, %253, %cst_110 [1] : vector<50x32xf32> to vector<50xf32>
    %255 = vector.shape_cast %254 : vector<50xf32> to vector<50x1xf32>
    %cst_111 = arith.constant 1.000000e-24 : f32
    %256 = vector.broadcast %cst_111 : f32 to vector<50x1xf32>
    %257 = arith.maximumf %255, %256 : vector<50x1xf32>
    %258 = math.rsqrt %257 : vector<50x1xf32>
    %259 = vector.broadcast %258 : vector<50x1xf32> to vector<50x32xf32>
    %260 = arith.mulf %252, %259 : vector<50x32xf32>
    %cst_112 = arith.constant 0.000000e+00 : f32
    %261 = vector.broadcast %cst_112 : f32 to vector<50x32xf32>
    %262 = arith.cmpf oge, %260, %261 : vector<50x32xf32>
    %cst_113 = arith.constant 0.00999999977 : f32
    %263 = vector.broadcast %cst_113 : f32 to vector<50x32xf32>
    %264 = arith.mulf %263, %260 : vector<50x32xf32>
    %265 = arith.select %262, %260, %264 : vector<50x32xi1>, vector<50x32xf32>
    %c0_114 = arith.constant 0 : index
    %c0_115 = arith.constant 0 : index
    %266 = vector.load %arg12[%c0_114, %c0_115] : memref<32x15xf32, #tpu.memory_space<vmem>>, vector<32x15xf32>
    %267 = arith.truncf %265 : vector<50x32xf32> to vector<50x32xbf16>
    %268 = arith.truncf %266 : vector<32x15xf32> to vector<32x15xbf16>
    %cst_116 = arith.constant dense<0.000000e+00> : vector<50x15xf32>
    %269 = tpu.matmul %267, %268, %cst_116 {dimension_numbers = #tpu.dot_dimension_numbers<[1], [0], [0], [1], [0, 0, 1, 1], [], []>} : vector<50x32xbf16>, vector<32x15xbf16>, vector<50x15xf32> -> vector<50x15xf32>
    %c0_117 = arith.constant 0 : index
    %c0_118 = arith.constant 0 : index
    %270 = vector.load %arg13[%c0_117, %c0_118] : memref<1x15xf32, #tpu.memory_space<vmem>>, vector<1x15xf32>
    %271 = vector.broadcast %270 : vector<1x15xf32> to vector<50x15xf32>
    %272 = arith.addf %269, %271 : vector<50x15xf32>
    %cst_119 = arith.constant dense<0xFF800000> : vector<50xf32>
    %273 = vector.multi_reduction <maximumf>, %272, %cst_119 [1] : vector<50x15xf32> to vector<50xf32>
    %274 = vector.shape_cast %273 : vector<50xf32> to vector<50x1xf32>
    %275 = vector.broadcast %274 : vector<50x1xf32> to vector<50x15xf32>
    %276 = arith.subf %272, %275 : vector<50x15xf32>
    %277 = math.exp %276 : vector<50x15xf32>
    %cst_120 = arith.constant dense<0.000000e+00> : vector<50xf32>
    %278 = vector.multi_reduction <add>, %277, %cst_120 [1] : vector<50x15xf32> to vector<50xf32>
    %279 = vector.shape_cast %278 : vector<50xf32> to vector<50x1xf32>
    %280 = vector.broadcast %279 : vector<50x1xf32> to vector<50x15xf32>
    %281 = arith.divf %277, %280 : vector<50x15xf32>
    %282 = arith.truncf %281 : vector<50x15xf32> to vector<50x15xbf16>
    %283 = arith.truncf %265 : vector<50x32xf32> to vector<50x32xbf16>
    %cst_121 = arith.constant dense<0.000000e+00> : vector<15x32xf32>
    %284 = tpu.matmul %282, %283, %cst_121 {dimension_numbers = #tpu.dot_dimension_numbers<[0], [0], [1], [1], [0, 1, 1, 1], [], []>} : vector<50x15xbf16>, vector<50x32xbf16>, vector<15x32xf32> -> vector<15x32xf32>
    %285 = arith.truncf %281 : vector<50x15xf32> to vector<50x15xbf16>
    %286 = arith.truncf %231 : vector<50x50xf32> to vector<50x50xbf16>
    %cst_122 = arith.constant dense<0.000000e+00> : vector<15x50xf32>
    %287 = tpu.matmul %285, %286, %cst_122 {dimension_numbers = #tpu.dot_dimension_numbers<[0], [0], [1], [1], [0, 1, 1, 1], [], []>} : vector<50x15xbf16>, vector<50x50xbf16>, vector<15x50xf32> -> vector<15x50xf32>
    %288 = arith.truncf %287 : vector<15x50xf32> to vector<15x50xbf16>
    %289 = arith.truncf %281 : vector<50x15xf32> to vector<50x15xbf16>
    %cst_123 = arith.constant dense<0.000000e+00> : vector<15x15xf32>
    %290 = tpu.matmul %288, %289, %cst_123 {dimension_numbers = #tpu.dot_dimension_numbers<[1], [0], [0], [1], [0, 0, 1, 1], [], []>} : vector<15x50xbf16>, vector<50x15xbf16>, vector<15x15xf32> -> vector<15x15xf32>
    %291 = arith.truncf %290 : vector<15x15xf32> to vector<15x15xbf16>
    %292 = arith.truncf %284 : vector<15x32xf32> to vector<15x32xbf16>
    %cst_124 = arith.constant dense<0.000000e+00> : vector<15x32xf32>
    %293 = tpu.matmul %291, %292, %cst_124 {dimension_numbers = #tpu.dot_dimension_numbers<[1], [0], [0], [1], [0, 0, 1, 1], [], []>} : vector<15x15xbf16>, vector<15x32xbf16>, vector<15x32xf32> -> vector<15x32xf32>
    %cst_125 = arith.constant dense<0.000000e+00> : vector<15xf32>
    %294 = vector.multi_reduction <add>, %290, %cst_125 [1] : vector<15x15xf32> to vector<15xf32>
    %295 = vector.shape_cast %294 : vector<15xf32> to vector<15x1xf32>
    %cst_126 = arith.constant 1.000000e+00 : f32
    %296 = vector.broadcast %cst_126 : f32 to vector<15x1xf32>
    %297 = arith.maximumf %295, %296 : vector<15x1xf32>
    %298 = vector.broadcast %297 : vector<15x1xf32> to vector<15x32xf32>
    %299 = arith.divf %293, %298 : vector<15x32xf32>
    %c0_127 = arith.constant 0 : index
    %c0_128 = arith.constant 0 : index
    %300 = vector.load %arg14[%c0_127, %c0_128] : memref<32x32xf32, #tpu.memory_space<vmem>>, vector<32x32xf32>
    %301 = arith.truncf %299 : vector<15x32xf32> to vector<15x32xbf16>
    %302 = arith.truncf %300 : vector<32x32xf32> to vector<32x32xbf16>
    %cst_129 = arith.constant dense<0.000000e+00> : vector<15x32xf32>
    %303 = tpu.matmul %301, %302, %cst_129 {dimension_numbers = #tpu.dot_dimension_numbers<[1], [0], [0], [1], [0, 0, 1, 1], [], []>} : vector<15x32xbf16>, vector<32x32xbf16>, vector<15x32xf32> -> vector<15x32xf32>
    %c0_130 = arith.constant 0 : index
    %c0_131 = arith.constant 0 : index
    %304 = vector.load %arg15[%c0_130, %c0_131] : memref<32x32xf32, #tpu.memory_space<vmem>>, vector<32x32xf32>
    %305 = arith.truncf %284 : vector<15x32xf32> to vector<15x32xbf16>
    %306 = arith.truncf %304 : vector<32x32xf32> to vector<32x32xbf16>
    %cst_132 = arith.constant dense<0.000000e+00> : vector<15x32xf32>
    %307 = tpu.matmul %305, %306, %cst_132 {dimension_numbers = #tpu.dot_dimension_numbers<[1], [0], [0], [1], [0, 0, 1, 1], [], []>} : vector<15x32xbf16>, vector<32x32xbf16>, vector<15x32xf32> -> vector<15x32xf32>
    %308 = arith.addf %303, %307 : vector<15x32xf32>
    %c0_133 = arith.constant 0 : index
    %c0_134 = arith.constant 0 : index
    %309 = vector.load %arg16[%c0_133, %c0_134] : memref<1x32xf32, #tpu.memory_space<vmem>>, vector<1x32xf32>
    %310 = vector.broadcast %309 : vector<1x32xf32> to vector<15x32xf32>
    %311 = arith.addf %308, %310 : vector<15x32xf32>
    %312 = arith.mulf %311, %311 : vector<15x32xf32>
    %cst_135 = arith.constant dense<0.000000e+00> : vector<15xf32>
    %313 = vector.multi_reduction <add>, %312, %cst_135 [1] : vector<15x32xf32> to vector<15xf32>
    %314 = vector.shape_cast %313 : vector<15xf32> to vector<15x1xf32>
    %cst_136 = arith.constant 1.000000e-24 : f32
    %315 = vector.broadcast %cst_136 : f32 to vector<15x1xf32>
    %316 = arith.maximumf %314, %315 : vector<15x1xf32>
    %317 = math.rsqrt %316 : vector<15x1xf32>
    %318 = vector.broadcast %317 : vector<15x1xf32> to vector<15x32xf32>
    %319 = arith.mulf %311, %318 : vector<15x32xf32>
    %cst_137 = arith.constant 0.000000e+00 : f32
    %320 = vector.broadcast %cst_137 : f32 to vector<15x32xf32>
    %321 = arith.cmpf oge, %319, %320 : vector<15x32xf32>
    %cst_138 = arith.constant 0.00999999977 : f32
    %322 = vector.broadcast %cst_138 : f32 to vector<15x32xf32>
    %323 = arith.mulf %322, %319 : vector<15x32xf32>
    %324 = arith.select %321, %319, %323 : vector<15x32xi1>, vector<15x32xf32>
    %c0_139 = arith.constant 0 : index
    %c0_140 = arith.constant 0 : index
    %325 = vector.load %arg17[%c0_139, %c0_140] : memref<32x16xf32, #tpu.memory_space<vmem>>, vector<32x16xf32>
    %326 = arith.truncf %324 : vector<15x32xf32> to vector<15x32xbf16>
    %327 = arith.truncf %325 : vector<32x16xf32> to vector<32x16xbf16>
    %cst_141 = arith.constant dense<0.000000e+00> : vector<15x16xf32>
    %328 = tpu.matmul %326, %327, %cst_141 {dimension_numbers = #tpu.dot_dimension_numbers<[1], [0], [0], [1], [0, 0, 1, 1], [], []>} : vector<15x32xbf16>, vector<32x16xbf16>, vector<15x16xf32> -> vector<15x16xf32>
    %c0_142 = arith.constant 0 : index
    %c0_143 = arith.constant 0 : index
    %329 = vector.load %arg18[%c0_142, %c0_143] : memref<1x16xf32, #tpu.memory_space<vmem>>, vector<1x16xf32>
    %330 = vector.broadcast %329 : vector<1x16xf32> to vector<15x16xf32>
    %331 = arith.addf %328, %330 : vector<15x16xf32>
    %cst_144 = arith.constant 0.000000e+00 : f32
    %332 = vector.broadcast %cst_144 : f32 to vector<15x16xf32>
    %333 = arith.cmpf oge, %331, %332 : vector<15x16xf32>
    %cst_145 = arith.constant 0.00999999977 : f32
    %334 = vector.broadcast %cst_145 : f32 to vector<15x16xf32>
    %335 = arith.mulf %334, %331 : vector<15x16xf32>
    %336 = arith.select %333, %331, %335 : vector<15x16xi1>, vector<15x16xf32>
    %c0_146 = arith.constant 0 : index
    %c0_147 = arith.constant 0 : index
    %337 = vector.load %arg19[%c0_146, %c0_147] : memref<16x1xf32, #tpu.memory_space<vmem>>, vector<16x1xf32>
    %338 = arith.truncf %336 : vector<15x16xf32> to vector<15x16xbf16>
    %339 = arith.truncf %337 : vector<16x1xf32> to vector<16x1xbf16>
    %cst_148 = arith.constant dense<0.000000e+00> : vector<15x1xf32>
    %340 = tpu.matmul %338, %339, %cst_148 {dimension_numbers = #tpu.dot_dimension_numbers<[1], [0], [0], [1], [0, 0, 1, 1], [], []>} : vector<15x16xbf16>, vector<16x1xbf16>, vector<15x1xf32> -> vector<15x1xf32>
    %c0_149 = arith.constant 0 : index
    %c0_150 = arith.constant 0 : index
    %341 = vector.load %arg20[%c0_149, %c0_150] : memref<1x1xf32, #tpu.memory_space<vmem>>, vector<1x1xf32>
    %342 = vector.broadcast %341 : vector<1x1xf32> to vector<15x1xf32>
    %343 = arith.addf %340, %342 : vector<15x1xf32>
    %cst_151 = arith.constant 0.000000e+00 : f32
    %344 = vector.broadcast %cst_151 : f32 to vector<15x1xf32>
    %345 = arith.cmpf oge, %343, %344 : vector<15x1xf32>
    %cst_152 = arith.constant 0.00999999977 : f32
    %346 = vector.broadcast %cst_152 : f32 to vector<15x1xf32>
    %347 = arith.mulf %346, %343 : vector<15x1xf32>
    %348 = arith.select %345, %343, %347 : vector<15x1xi1>, vector<15x1xf32>
    %c0_153 = arith.constant 0 : index
    %c0_154 = arith.constant 0 : index
    %349 = vector.load %arg21[%c0_153, %c0_154] : memref<15x1xf32, #tpu.memory_space<vmem>>, vector<15x1xf32>
    %350 = arith.mulf %348, %349 : vector<15x1xf32>
    %cst_155 = arith.constant dense<0.000000e+00> : vector<1xf32>
    %351 = vector.multi_reduction <add>, %350, %cst_155 [0] : vector<15x1xf32> to vector<1xf32>
    %352 = vector.shape_cast %351 : vector<1xf32> to vector<1x1xf32>
    %c0_156 = arith.constant 0 : index
    %c0_157 = arith.constant 0 : index
    %353 = vector.load %arg22[%c0_156, %c0_157] : memref<1x1xf32, #tpu.memory_space<vmem>>, vector<1x1xf32>
    %354 = arith.addf %352, %353 : vector<1x1xf32>
    %cst_158 = arith.constant 0.000000e+00 : f32
    %355 = vector.broadcast %cst_158 : f32 to vector<1x1xf32>
    %356 = arith.subf %355, %354 : vector<1x1xf32>
    %357 = math.exp %356 : vector<1x1xf32>
    %cst_159 = arith.constant 1.000000e+00 : f32
    %358 = vector.broadcast %cst_159 : f32 to vector<1x1xf32>
    %359 = arith.addf %358, %357 : vector<1x1xf32>
    %cst_160 = arith.constant 1.000000e+00 : f32
    %360 = vector.broadcast %cst_160 : f32 to vector<1x1xf32>
    %361 = arith.divf %360, %359 : vector<1x1xf32>
    %c1_i32 = arith.constant 1 : i32
    %362 = vector.broadcast %c1_i32 : i32 to vector<1x2xi32>
    %363 = arith.cmpi eq, %55, %362 : vector<1x2xi32>
    %cst_161 = arith.constant 0.000000e+00 : f32
    %364 = vector.shape_cast %361 : vector<1x1xf32> to vector<1x1xf32>
    %365 = vector.broadcast %364 : vector<1x1xf32> to vector<1x2xf32>
    %366 = vector.broadcast %cst_161 : f32 to vector<1x2xf32>
    %367 = arith.select %363, %365, %366 : vector<1x2xi1>, vector<1x2xf32>
    %368 = arith.addf %212, %367 : vector<1x2xf32>
    %369 = vector.shape_cast %368 : vector<1x2xf32> to vector<1x1x2xf32>
    %c0_162 = arith.constant 0 : index
    %c0_163 = arith.constant 0 : index
    %c0_164 = arith.constant 0 : index
    %370 = vector.load %arg23[%c0_162, %c0_163, %c0_164] : memref<1x1x2xf32, #tpu.memory_space<vmem>>, vector<1x1x2xf32>
    tpu.vector_store %arg23[%c0_162, %c0_163, %c0_164], %369 {strides = array<i32>} : memref<1x1x2xf32, #tpu.memory_space<vmem>>, vector<1x1x2xf32>,
    return
  }
  func.func @transform_0(%arg0: i32) -> (i32, i32, i32) {
    %c0_i32 = arith.constant 0 : i32
    %c0_i32_0 = arith.constant 0 : i32
    %c0_i32_1 = arith.constant 0 : i32
    return %arg0, %c0_i32, %c0_i32_0 : i32, i32, i32
  }
  func.func @transform_1(%arg0: i32) -> (i32, i32, i32) {
    %c0_i32 = arith.constant 0 : i32
    %c0_i32_0 = arith.constant 0 : i32
    %c0_i32_1 = arith.constant 0 : i32
    return %arg0, %c0_i32, %c0_i32_0 : i32, i32, i32
  }
  func.func @transform_2(%arg0: i32) -> (i32, i32, i32) {
    %c0_i32 = arith.constant 0 : i32
    %c0_i32_0 = arith.constant 0 : i32
    %c0_i32_1 = arith.constant 0 : i32
    return %arg0, %c0_i32, %c0_i32_0 : i32, i32, i32
  }
  func.func @transform_3(%arg0: i32) -> (i32, i32) {
    %c0_i32 = arith.constant 0 : i32
    %c0_i32_0 = arith.constant 0 : i32
    %c0_i32_1 = arith.constant 0 : i32
    return %c0_i32, %c0_i32_0 : i32, i32
  }
  func.func @transform_4(%arg0: i32) -> (i32, i32) {
    %c0_i32 = arith.constant 0 : i32
    %c0_i32_0 = arith.constant 0 : i32
    %c0_i32_1 = arith.constant 0 : i32
    return %c0_i32, %c0_i32_0 : i32, i32
  }
  func.func @transform_5(%arg0: i32) -> (i32, i32) {
    %c0_i32 = arith.constant 0 : i32
    %c0_i32_0 = arith.constant 0 : i32
    %c0_i32_1 = arith.constant 0 : i32
    return %c0_i32, %c0_i32_0 : i32, i32
  }
  func.func @transform_6(%arg0: i32) -> (i32, i32) {
    %c0_i32 = arith.constant 0 : i32
    %c0_i32_0 = arith.constant 0 : i32
    %c0_i32_1 = arith.constant 0 : i32
    return %c0_i32, %c0_i32_0 : i32, i32
  }
  func.func @transform_7(%arg0: i32) -> (i32, i32) {
    %c0_i32 = arith.constant 0 : i32
    %c0_i32_0 = arith.constant 0 : i32
    %c0_i32_1 = arith.constant 0 : i32
    return %c0_i32, %c0_i32_0 : i32, i32
  }
  func.func @transform_8(%arg0: i32) -> (i32, i32) {
    %c0_i32 = arith.constant 0 : i32
    %c0_i32_0 = arith.constant 0 : i32
    %c0_i32_1 = arith.constant 0 : i32
    return %c0_i32, %c0_i32_0 : i32, i32
  }
  func.func @transform_9(%arg0: i32) -> (i32, i32) {
    %c0_i32 = arith.constant 0 : i32
    %c0_i32_0 = arith.constant 0 : i32
    %c0_i32_1 = arith.constant 0 : i32
    return %c0_i32, %c0_i32_0 : i32, i32
  }
  func.func @transform_10(%arg0: i32) -> (i32, i32) {
    %c0_i32 = arith.constant 0 : i32
    %c0_i32_0 = arith.constant 0 : i32
    %c0_i32_1 = arith.constant 0 : i32
    return %c0_i32, %c0_i32_0 : i32, i32
  }
  func.func @transform_11(%arg0: i32) -> (i32, i32) {
    %c0_i32 = arith.constant 0 : i32
    %c0_i32_0 = arith.constant 0 : i32
    %c0_i32_1 = arith.constant 0 : i32
    return %c0_i32, %c0_i32_0 : i32, i32
  }
  func.func @transform_12(%arg0: i32) -> (i32, i32) {
    %c0_i32 = arith.constant 0 : i32
    %c0_i32_0 = arith.constant 0 : i32
    %c0_i32_1 = arith.constant 0 : i32
    return %c0_i32, %c0_i32_0 : i32, i32
  }
  func.func @transform_13(%arg0: i32) -> (i32, i32) {
    %c0_i32 = arith.constant 0 : i32
    %c0_i32_0 = arith.constant 0 : i32
    %c0_i32_1 = arith.constant 0 : i32
    return %c0_i32, %c0_i32_0 : i32, i32
  }
  func.func @transform_14(%arg0: i32) -> (i32, i32) {
    %c0_i32 = arith.constant 0 : i32
    %c0_i32_0 = arith.constant 0 : i32
    %c0_i32_1 = arith.constant 0 : i32
    return %c0_i32, %c0_i32_0 : i32, i32
  }
  func.func @transform_15(%arg0: i32) -> (i32, i32) {
    %c0_i32 = arith.constant 0 : i32
    %c0_i32_0 = arith.constant 0 : i32
    %c0_i32_1 = arith.constant 0 : i32
    return %c0_i32, %c0_i32_0 : i32, i32
  }
  func.func @transform_16(%arg0: i32) -> (i32, i32) {
    %c0_i32 = arith.constant 0 : i32
    %c0_i32_0 = arith.constant 0 : i32
    %c0_i32_1 = arith.constant 0 : i32
    return %c0_i32, %c0_i32_0 : i32, i32
  }
  func.func @transform_17(%arg0: i32) -> (i32, i32) {
    %c0_i32 = arith.constant 0 : i32
    %c0_i32_0 = arith.constant 0 : i32
    %c0_i32_1 = arith.constant 0 : i32
    return %c0_i32, %c0_i32_0 : i32, i32
  }
  func.func @transform_18(%arg0: i32) -> (i32, i32) {
    %c0_i32 = arith.constant 0 : i32
    %c0_i32_0 = arith.constant 0 : i32
    %c0_i32_1 = arith.constant 0 : i32
    return %c0_i32, %c0_i32_0 : i32, i32
  }
  func.func @transform_19(%arg0: i32) -> (i32, i32) {
    %c0_i32 = arith.constant 0 : i32
    %c0_i32_0 = arith.constant 0 : i32
    %c0_i32_1 = arith.constant 0 : i32
    return %c0_i32, %c0_i32_0 : i32, i32
  }
  func.func @transform_20(%arg0: i32) -> (i32, i32) {
    %c0_i32 = arith.constant 0 : i32
    %c0_i32_0 = arith.constant 0 : i32
    %c0_i32_1 = arith.constant 0 : i32
    return %c0_i32, %c0_i32_0 : i32, i32
  }
  func.func @transform_21(%arg0: i32) -> (i32, i32) {
    %c0_i32 = arith.constant 0 : i32
    %c0_i32_0 = arith.constant 0 : i32
    %c0_i32_1 = arith.constant 0 : i32
    return %c0_i32, %c0_i32_0 : i32, i32
  }
  func.func @transform_22(%arg0: i32) -> (i32, i32, i32) {
    %c0_i32 = arith.constant 0 : i32
    %c0_i32_0 = arith.constant 0 : i32
    %c0_i32_1 = arith.constant 0 : i32
    return %arg0, %c0_i32, %c0_i32_0 : i32, i32, i32
  }
}

</mosaic_0001>

<bundles_post_ra>
// kernel: tpu_custom_call.1
= control target key start
LH: loop header
LB: loop body
LE: loop exit
PB: predicated region body
PF: predicated region fallthrough
CT: control target
= control target key end

     0   :  { %s4852_s0 = inlined_call_operand.vmem [shape: f32[2,16,8], index: 0, kind: input, shape index: {}]   ;;  %s4853_s1 = inlined_call_operand.vmem [shape: f32[2,16,16], index: 1, kind: input, shape index: {}]   ;;  %s4854_s2 = inlined_call_operand.vmem [shape: f32[2,16,1], index: 2, kind: input, shape index: {}]   ;;  %s4855_s3 = inlined_call_operand.hbm [shape: f32[8,32], index: 3, kind: input, shape index: {}]   ;;  %s4856_s4 = inlined_call_operand.hbm [shape: f32[8,32], index: 4, kind: input, shape index: {}]   ;;  %s4857_s5 = inlined_call_operand.hbm [shape: f32[1,32], index: 5, kind: input, shape index: {}]   ;;  %s4858_s6 = inlined_call_operand.vmem [shape: f32[32,50], index: 6, kind: input, shape index: {}]   ;;  %s4859_s7 = inlined_call_operand.hbm [shape: f32[1,50], index: 7, kind: input, shape index: {}]   ;;  %s4860_s8 = inlined_call_operand.vmem [shape: f32[32,32], index: 8, kind: input, shape index: {}]   ;;  %s4861_s9 = inlined_call_operand.vmem [shape: f32[32,32], index: 9, kind: input, shape index: {}]   ;;  %s4862_s10 = inlined_call_operand.hbm [shape: f32[1,32], index: 10, kind: input, shape index: {}]   ;;  %s4863_s11 = inlined_call_operand.vmem [shape: f32[32,15], index: 11, kind: input, shape index: {}]   ;;  %s4864_s12 = inlined_call_operand.hbm [shape: f32[1,15], index: 12, kind: input, shape index: {}]   ;;  %s4865_s13 = inlined_call_operand.vmem [shape: f32[32,32], index: 13, kind: input, shape index: {}]   ;;  %s4866_s14 = inlined_call_operand.vmem [shape: f32[32,32], index: 14, kind: input, shape index: {}]   ;;  %s4867_s15 = inlined_call_operand.hbm [shape: f32[1,32], index: 15, kind: input, shape index: {}]   ;;  %s4868_s16 = inlined_call_operand.vmem [shape: f32[32,16], index: 16, kind: input, shape index: {}]   ;;  %s4869_s17 = inlined_call_operand.vmem [shape: f32[1,16], index: 17, kind: input, shape index: {}]   ;;  %s4870_s18 = inlined_call_operand.vmem [shape: f32[16,1], index: 18, kind: input, shape index: {}]   ;;  %s4871_s19 = inlined_call_operand.<no memory space> [shape: f32[1,1], index: 19, kind: input, shape index: {}]   ;;  %s4872_s20 = inlined_call_operand.vmem [shape: f32[15,1], index: 20, kind: input, shape index: {}]   ;;  %s4873_s22 = inlined_call_operand.hbm [shape: f32[1,1,2], index: 22, kind: output, shape index: {}]   ;;  %s4874_s21 = inlined_call_operand.<no memory space> [shape: f32[1,1], index: 21, kind: input, shape index: {}]  }
   0x1   :  { %4879 = sst [smem:[#allocation22_spill]] %s4852_s0  ;;  %v27_v0 = vstv %s4871_s19  ;;  %v29_v1 = vstv %s4874_s21 }
   0x2   :  { %4880 = sst [smem:[#allocation23_spill]] %s4853_s1  ;;  %28 = vst [vmem:[#allocation2] sm:$0x1] %v27_v0  ;;  %30 = vst [vmem:[#allocation3] sm:$0x1] %v29_v1 }
   0x3   :  { %4881 = sst [smem:[#allocation24_spill]] %s4854_s2 }
   0x4   :  { %4882 = sst [smem:[#allocation25_spill]] %s4855_s3 }
   0x5   :  { %4883 = sst [smem:[#allocation26_spill]] %s4856_s4 }
   0x6   :  { %4884 = sst [smem:[#allocation27_spill]] %s4857_s5 }
   0x7   :  { %4885 = sst [smem:[#allocation28_spill]] %s4858_s6 }
   0x8   :  { %31 = vsyncpa [#allocation5], 0 }
   0x9   :  { %32 = vsyncpa [#allocation8], 0 }
   0xa   :  { %33 = vsyncpa [#allocation11], 0 }
   0xb   :  { %34 = vsyncpa [#allocation14], 0 }
   0xc   :  { %35 = vsyncpa [#allocation6], 0  ;;  %s4084_s4 = smov [#allocation7]   ;;  %s4085_s23 = smov [#allocation10]  }
   0xd   :  { %s58_s0 = sshll.u32 %s4084_s4, 4  ;;  %s80_s1 = sshll.u32 %s4085_s23, 4  ;;  %s59_s0 = int_to_ptr.vmem [resolvable:$true] %s58_s0  ;;  %s81_s1 = int_to_ptr.vmem [resolvable:$true] %s80_s1 }
   0xe   :  { %s3922_s5 = scalar_lea.vmem %s59_s0, 128  ;;  %p3927_p1 = scmp.lt.s32.totalorder %s59_s0, %s59_s0 }
   0xf   :  { %p3923_p0 = scmp.ne.s32.totalorder %s59_s0, %s3922_s5  ;;  %p3928_p2 = scmp.lt.s32.totalorder %s3922_s5, %s3922_s5 }
  0x11   :  { %p3929_p3 = por %p3928_p2, %p3927_p1 }
  0x13   :  { %p3930_p4 = pnand %p3929_p3, %p3923_p0 }
  0x15   :  { %3933 = shalt.err (!%p3930_p4)
}
  0x16   :  { %s4886_s24 = sld [smem:[#allocation26_spill]]  ;;  %s3942_s6 = scalar_lea.vmem %s81_s1, 16 }
  0x17   :  { %p3943_p5 = scmp.ne.s32.totalorder %s81_s1, %s3942_s6  ;;  %s3946_s25 = scalar_lea.vmem %s81_s1, 32 }
  0x18   :  { %p3947_p6 = scmp.lt.s32.totalorder %s81_s1, %s81_s1  ;;  %p3948_p7 = scmp.lt.s32.totalorder %s3946_s25, %s3942_s6 }
  0x1a   :  { %p3949_p8 = por %p3948_p7, %p3947_p6 }
  0x1c   :  { %61 = dma.hbm_to_vmem [thread:$0]  %s4886_s24, 128, %s59_s0, [#allocation8]  }
  0x1d   :  { %p3950_p9 = pnand %p3949_p8, %p3943_p5 }
  0x1f   :  { %3953 = shalt.err (!%p3950_p9)
}
  0x20   :  { %83 = dma.hbm_to_vmem [thread:$0]  %s4859_s7, 16, %s81_s1, [#allocation11]  }
  0x21   :  { %s4086_s27 = smov [#allocation13]   ;;  %s4087_s28 = smov [#allocation4]  }
  0x22   :  { %s106_s3 = sshll.u32 %s4086_s27, 4  ;;  %s48_s29 = sshll.u32 %s4087_s28, 4  ;;  %s107_s3 = int_to_ptr.vmem [resolvable:$true] %s106_s3  ;;  %s49_s29 = int_to_ptr.vmem [resolvable:$true] %s48_s29 }
  0x23   :  { %s3962_s30 = scalar_lea.vmem %s107_s3, 16  ;;  %s3966_s4 = scalar_lea.vmem %s107_s3, 32 }
  0x24   :  { %p3963_p10 = scmp.ne.s32.totalorder %s107_s3, %s3962_s30  ;;  %p3967_p11 = scmp.lt.s32.totalorder %s107_s3, %s107_s3 }
  0x25   :  { %p3968_p12 = scmp.lt.s32.totalorder %s3966_s4, %s3962_s30 }
  0x27   :  { %p3969_p13 = por %p3968_p12, %p3967_p11 }
  0x29   :  { %p3970_p0 = pnand %p3969_p13, %p3963_p10 }
  0x2b   :  { %3973 = shalt.err (!%p3970_p0)
}
  0x2c   :  { %109 = dma.hbm_to_vmem [thread:$0]  %s4864_s12, 16, %s107_s3, [#allocation14]  }
  0x2d   :  { %s3982_s5 = scalar_lea.vmem %s49_s29, 128  ;;  %p3987_p2 = scmp.lt.s32.totalorder %s49_s29, %s49_s29 }
  0x2e   :  { %p3983_p1 = scmp.ne.s32.totalorder %s49_s29, %s3982_s5  ;;  %p3988_p3 = scmp.lt.s32.totalorder %s3982_s5, %s3982_s5 }
  0x30   :  { %p3989_p4 = por %p3988_p3, %p3987_p2 }
  0x32   :  { %p3990_p5 = pnand %p3989_p4, %p3983_p1 }
  0x34   :  { %3993 = shalt.err (!%p3990_p5)
}
  0x35   :  { %s4887_s19 = sld [smem:[#allocation25_spill]]  ;;  %s4088_s21 = smov [#allocation9]  }
  0x36   :  { %s68_s24 = sshll.u32 %s4088_s21, 4  ;;  %s4089_s6 = smov [#allocation12]   ;;  %s69_s24 = int_to_ptr.vmem [resolvable:$true] %s68_s24 }
  0x37   :  { %s94_s25 = sshll.u32 %s4089_s6, 4  ;;  %s4002_s26 = scalar_lea.vmem %s69_s24, 16  ;;  %s95_s25 = int_to_ptr.vmem [resolvable:$true] %s94_s25 }
  0x38   :  { %p4003_p6 = scmp.ne.s32.totalorder %s69_s24, %s4002_s26  ;;  %s4006_s12 = scalar_lea.vmem %s69_s24, 32 }
  0x39   :  { %p4007_p7 = scmp.lt.s32.totalorder %s69_s24, %s69_s24  ;;  %p4008_p8 = scmp.lt.s32.totalorder %s4006_s12, %s4002_s26 }
  0x3b   :  { %51 = dma.hbm_to_vmem [thread:$0]  %s4887_s19, 128, %s49_s29, [#allocation5]  }
  0x3c   :  { %p4009_p9 = por %p4008_p8, %p4007_p7 }
  0x3e   :  { %p4010_p10 = pnand %p4009_p9, %p4003_p6 }
  0x40   :  { %4013 = shalt.err (!%p4010_p10)
}
  0x41   :  { %s4888_s3 = sld [smem:[#allocation27_spill]]  ;;  %s4022_s28 = scalar_lea.vmem %s95_s25, 16 }
  0x42   :  { %p4023_p11 = scmp.ne.s32.totalorder %s95_s25, %s4022_s28  ;;  %s4026_s29 = scalar_lea.vmem %s95_s25, 32 }
  0x43   :  { %p4027_p12 = scmp.lt.s32.totalorder %s95_s25, %s95_s25  ;;  %p4028_p13 = scmp.lt.s32.totalorder %s4026_s29, %s4022_s28 }
  0x45   :  { %p4029_p0 = por %p4028_p13, %p4027_p12 }
  0x47   :  { %71 = dma.hbm_to_vmem [thread:$0]  %s4888_s3, 16, %s69_s24, [#allocation8]  }
  0x48   :  { %p4030_p1 = pnand %p4029_p0, %p4023_p11 }
  0x4a   :  { %4033 = shalt.err (!%p4030_p1)
}
  0x4b   :  { %97 = dma.hbm_to_vmem [thread:$0]  %s4862_s10, 16, %s95_s25, [#allocation11]  }
  0x4c   :  { %s4090_s0 = smov [#allocation15]  }
  0x4d   :  { %s120_s23 = sshll.u32 %s4090_s0, 4  ;;  %s121_s23 = int_to_ptr.vmem [resolvable:$true] %s120_s23 }
  0x4e   :  { %s4042_s5 = scalar_lea.vmem %s121_s23, 16  ;;  %s4046_s7 = scalar_lea.vmem %s121_s23, 32 }
  0x4f   :  { %p4043_p2 = scmp.ne.s32.totalorder %s121_s23, %s4042_s5  ;;  %p4047_p3 = scmp.lt.s32.totalorder %s121_s23, %s121_s23 }
  0x50   :  { %p4048_p4 = scmp.lt.s32.totalorder %s4046_s7, %s4042_s5 }
  0x52   :  { %p4049_p5 = por %p4048_p4, %p4047_p3 }
  0x54   :  { %p4050_p6 = pnand %p4049_p5, %p4043_p2 }
  0x56   :  { %4053 = shalt.err (!%p4050_p6)
}
  0x57   :  { %123 = dma.hbm_to_vmem [thread:$0]  %s4867_s15, 16, %s121_s23, [#allocation14]  }
  0x58   :  { %4074 = dma.done.wait [#allocation5], 128  }
  0x59   :  { %4075 = vsyncadd [#allocation5], 4294967168 }
  0x5a   :  { %4076 = dma.done.wait [#allocation8], 144  }
  0x5b   :  { %4077 = vsyncadd [#allocation8], 4294967152 }
  0x5c   :  { %4078 = dma.done.wait [#allocation11], 32  }
  0x5d   :  { %4079 = vsyncadd [#allocation11], 4294967264 }
  0x5e   :  { %4080 = dma.done.wait [#allocation14], 32  }
  0x5f   :  { %4081 = vsyncadd [#allocation14], 4294967264  ;;  %v4091_v2 = vmov 0.0   ;;  %vm4092_vm0 = vmmov 0   ;;  %s4889_s21 = sld [smem:[#allocation22_spill]]  ;;  %vm174_vm1 = vcmask 130048  }
  0x60   :  { %3381 = vmatprep.subr.bf16.mxu0 %v4091_v2  ;;  %3387 = vmatprep.subr.bf16.mxu1 %v4091_v2  ;;  %s4890_s28 = sld [smem:[#allocation23_spill]]  ;;  %v291_v19 = vld [vmem:[#allocation7] sm:$0xff]  ;;  %vm300_vm2 = vcmask 1043456   ;;  %v287_v22 = vld [vmem:[#allocation4] sm:$0xff]  ;;  %vm293_vm3 = vcmask 64512   ;;  %vm426_vm4 = vcmask 261120  }
  0x61   :  { %3383 = vmatprep.mubr.msk.bf16.mxu0 %vm4092_vm0, %v4091_v2  ;;  %3389 = vmatprep.mubr.msk.bf16.mxu1 %vm4092_vm0, %v4091_v2  ;;  %v292_v20 = vpack.c.bf16 %v291_v19, %v291_v19  ;;  %v290_v23 = vpack.c.bf16 %v287_v22, %v287_v22  ;;  %v3148_v56 = vld [vmem:[#allocation9] ss:$0 sm:$0xff]  ;;  %s4891_s19 = sld [smem:[#allocation28_spill]]  ;;  %vm533_vm9 = vcmask 408576   ;;  %vm852_vm10 = vcmask 1040384  }
  0x62   :  { %s4892_s2 = sld [smem:[#allocation24_spill]]  ;;  %vm938_vm11 = vcmask 402432   ;;  %vm1169_vm12 = vcmask 254976  }
  0x63   :  { %v302_v21 = vsel %vm300_vm2, %v292_v20, 0  ;;  %v360_v24 = vsel %vm300_vm2, %v290_v23, 0 }
  0x65   :  { %v158_v3 = vld [vmem:[%s4889_s21] sm:$0xff]  ;;  %v159_v4 = vld [vmem:[%s4889_s21 + $0x8] sm:$0xff]  ;;  %v160_v5 = vld [vmem:[%s4889_s21 + $0x10] sm:$0xff] }
  0x66   :  { %v172_v6 = vpack.c.bf16 %v159_v4, %v158_v3  ;;  %v161_v7 = vld [vmem:[%s4889_s21 + $0x18] sm:$0xff]  ;;  %v162_v8 = vld [vmem:[%s4890_s28] sm:$0xff]  ;;  %v163_v9 = vld [vmem:[%s4890_s28 + $0x8] sm:$0xff] }
  0x67   :  { %v173_v10 = vpack.c.bf16 %v161_v7, %v160_v5  ;;  %v4262_v11 = vpack.c.bf16 %v163_v9, %v162_v8  ;;  %v164_v12 = vld [vmem:[%s4890_s28 + $0x10] sm:$0xff]  ;;  %v165_v13 = vld [vmem:[%s4890_s28 + $0x18] sm:$0xff]  ;;  %v263_v14 = vsel %vm174_vm1, %v162_v8, 0.0  ;;  %v266_v17 = vsel %vm174_vm1, %v163_v9, 0.0  ;;  %v464_v19 = vld [vmem:[%s4891_s19 + $0x8] sm:$0xff] }
  0x68   :  { %3382 = vmatpush3.bf16.msra.mxu0 %v172_v6  ;;  %v4271_v15 = vpack.c.bf16 %v165_v13, %v164_v12  ;;  %v269_v16 = vsel %vm174_vm1, %v164_v12, 0.0  ;;  %264 = vadd.xlane.f32.xlu0 %v263_v14  ;;  %v272_v18 = vsel %vm174_vm1, %v165_v13, 0.0  ;;  %v465_v14 = vld [vmem:[%s4891_s19 + $0x10] sm:$0xff] }
  0x69   :  { %3388 = vmatpush3.bf16.msra.mxu1 %v173_v10  ;;  %270 = vadd.xlane.f32.xlu1 %v269_v16  ;;  %v466_v16 = vld [vmem:[%s4891_s19 + $0x18] sm:$0xff] }
  0x6a   :  { %3721 = vmatprep.subr.msk.bf16.mxu0 %vm300_vm2, %v292_v20  ;;  %3722 = vmatprep.subr.msk.bf16.mxu1 %vm300_vm2, %v290_v23 }
  0x6b   :  { %3384 = vmatmul.mubr.msk.bf16.vlgmr.msra.gmra.mxu0 %vm174_vm1, %v4262_v11 }
  0x6c   :  { %3390 = vmatmul.mubr.msk.bf16.vlgmr.msra.gmra.mxu1 %vm174_vm1, %v4271_v15  ;;  %267 = vadd.xlane.f32.xlu0 %v266_v17  ;;  %v470_v17 = vpack.c.bf16 %v466_v16, %v465_v14 }
  0x6d   :  { %273 = vadd.xlane.f32.xlu1 %v272_v18  ;;  %3394 = vmatpush3.bf16.msra.mxu0 %v302_v21  ;;  %v463_v18 = vld [vmem:[%s4891_s19] sm:$0xff] }
  0x6e   :  { %3395 = vmatprep.mubr.msk.bf16.mxu0 %vm293_vm3, %v172_v6  ;;  %3400 = vmatpush3.bf16.msra.mxu1 %v360_v24  ;;  %v469_v20 = vpack.c.bf16 %v464_v19, %v463_v18 }
  0x6f   :  { %3405 = vmatprep.subr.bf16.mxu0 %v470_v17 }
  0x73   :  { %3396 = vmatmul.mubr.msk.bf16.vlgmr.msra.gmra.mxu0 %vm293_vm3, %v173_v10 }
  0x74   :  { %3406 = vmatpush3.bf16.msra.mxu0 %v470_v17 }
  0x75   :  { %3407 = vmatprep.subr.bf16.mxu0 %v469_v20 }
  0x78   :  { %3408 = vmatpush3.bf16.msra.mxu0 %v469_v20 }
  0x79   :  { %3423 = vmatprep.subr.bf16.mxu0 %v4262_v11 }
  0xf1   :  { %v265_v25 = vpop.xlane.xlu0 %264 }
  0xf2   :  { %v271_v26 = vpop.xlane.xlu1 %270  ;;  %v275_v28 = vmax.f32 %v265_v25, 1.0 }
  0xf3   :  { %v277_v30 = vmax.f32 %v271_v26, 1.0 }
  0xf4   :  { %3739 = vrcp.f32 %v275_v28 }
  0xf5   :  { %v268_v27 = vpop.xlane.xlu0 %267  ;;  %3741 = vrcp.f32 %v277_v30 }
  0xf6   :  { %v274_v29 = vpop.xlane.xlu1 %273  ;;  %v276_v31 = vmax.f32 %v268_v27, 1.0 }
  0xf7   :  { %v278_v32 = vmax.f32 %v274_v29, 1.0 }
  0xf8   :  { %3743 = vrcp.f32 %v276_v31 }
  0xf9   :  { %3745 = vrcp.f32 %v278_v32 }
 0x101   :  { %v3740_v33 = vpop.eup %3739 }
 0x102   :  { %v3742_v35 = vpop.eup %3741 }
 0x105   :  { %v3744_v37 = vpop.eup %3743 }
 0x106   :  { %v3746_v39 = vpop.eup %3745 }
 0x12b   :  { %v212_v34 = vpop.f32.mrf.mxu0 }
 0x12c   :  { %v256_v36 = vpop.f32.mrf.mxu1  ;;  %v280_v42 = vmul.f32 %v3740_v33, %v212_v34 }
 0x12d   :  { %v3385_v38 = vpop.f32.mrf.mxu0  ;;  %v284_v45 = vmul.f32 %v3742_v35, %v256_v36 }
 0x12e   :  { %v3391_v40 = vpop.f32.mrf.mxu1 }
 0x12f   :  { %v215_v41 = vpop.f32.mrf.mxu0 }
 0x130   :  { %v282_v43 = vmul.f32 %v3744_v37, %v215_v41  ;;  %v259_v44 = vpop.f32.mrf.mxu1 }
 0x131   :  { %v286_v46 = vmul.f32 %v3746_v39, %v259_v44  ;;  %v3386_v47 = vpop.f32.mrf.mxu0 }
 0x132   :  { %v288_v48 = vpack.c.bf16 %v282_v43, %v280_v42  ;;  %v3392_v49 = vpop.f32.mrf.mxu1  ;;  %v3149_v47 = vld [vmem:[#allocation10] ss:$0 sm:$0xff] }
 0x133   :  { %v289_v50 = vpack.c.bf16 %v286_v46, %v284_v45  ;;  %v3397_v51 = vpop.f32.mrf.mxu0 }
 0x134   :  { %3401 = vmatprep.mubr.msk.bf16.mxu1 %vm293_vm3, %v288_v48 }
 0x135   :  { %3402 = vmatmul.mubr.msk.bf16.vlgmr.msra.gmra.mxu1 %vm293_vm3, %v289_v50  ;;  %v338_v52 = vpop.f32.mrf.mxu0 }
 0x137   :  { %v3398_v55 = vpop.f32.mrf.mxu0 }
 0x139   :  { %v341_v63 = vpop.f32.mrf.mxu0 }
 0x1f5   :  { %v3403_v53 = vpop.f32.mrf.mxu1 }
 0x1f6   :  { %v405_v54 = vadd.f32 %v3403_v53, %v3397_v51 }
 0x1f7   :  { %v396_v57 = vpop.f32.mrf.mxu1 }
 0x1f8   :  { %v397_v58 = vadd.f32 %v396_v57, %v338_v52  ;;  %v420_v60 = vadd.f32 %v3148_v56, %v405_v54 }
 0x1f9   :  { %v3404_v59 = vpop.f32.mrf.mxu1 }
 0x1fa   :  { %v418_v61 = vadd.f32 %v3148_v56, %v397_v58  ;;  %v408_v62 = vadd.f32 %v3404_v59, %v3398_v55  ;;  %v424_v7 = vmul.f32 %v420_v60, %v420_v60  ;;  %v4093_v58 = vmov 0  }
 0x1fb   :  { %v399_v0 = vpop.f32.mrf.mxu1  ;;  %3738 = vset.pattern.permute.xlu1 %v4093_v58  ;;  %3737 = vset.pattern.permute.xlu0 %v4093_v58 }
 0x1fc   :  { %v400_v1 = vadd.f32 %v399_v0, %v341_v63  ;;  %v422_v3 = vmul.f32 %v418_v61, %v418_v61  ;;  %v421_v4 = vadd.f32 %v3148_v56, %v408_v62  ;;  %v433_v9 = vsel %vm426_vm4, %v424_v7, 0.0 }
 0x1fe   :  { %v419_v5 = vadd.f32 %v3148_v56, %v400_v1  ;;  %v427_v6 = vsel %vm426_vm4, %v422_v3, 0.0  ;;  %v425_v12 = vmul.f32 %v421_v4, %v421_v4 }
 0x1ff   :  { %428 = vadd.xlane.f32.xlu0 %v427_v6  ;;  %v166_v6 = vld [vmem:[%s4892_s2] sm:$0xff] }
 0x200   :  { %v423_v8 = vmul.f32 %v419_v5, %v419_v5  ;;  %v436_v13 = vsel %vm426_vm4, %v425_v12, 0.0 }
 0x202   :  { %v430_v10 = vsel %vm426_vm4, %v423_v8, 0.0 }
 0x203   :  { %434 = vadd.xlane.f32.xlu0 %v433_v9  ;;  %431 = vadd.xlane.f32.xlu1 %v430_v10 }
 0x207   :  { %437 = vadd.xlane.f32.xlu1 %v436_v13 }
 0x288   :  { %v429_v21 = vpop.xlane.xlu0 %428 }
 0x289   :  { %v439_v22 = vmax.f32 %v429_v21, 1e-24 }
 0x28b   :  { %3747 = vrsqrt.f32 %v439_v22 }
 0x28c   :  { %v435_v23 = vpop.xlane.xlu0 %434  ;;  %v432_v24 = vpop.xlane.xlu1 %431 }
 0x28d   :  { %v441_v25 = vmax.f32 %v435_v23, 1e-24  ;;  %v440_v26 = vmax.f32 %v432_v24, 1e-24 }
 0x28f   :  { %3749 = vrsqrt.f32 %v441_v25 }
 0x290   :  { %3751 = vrsqrt.f32 %v440_v26  ;;  %v438_v27 = vpop.xlane.xlu1 %437 }
 0x291   :  { %v442_v28 = vmax.f32 %v438_v27, 1e-24  ;;  %v975_v27 = vld [vmem:[%s4861_s9 + $0x10] sm:$0xff] }
 0x293   :  { %3753 = vrsqrt.f32 %v442_v28  ;;  %v976_v28 = vld [vmem:[%s4861_s9 + $0x18] sm:$0xff] }
 0x298   :  { %v3748_v29 = vpop.eup %3747 }
 0x299   :  { %v447_v30 = vmul.f32 %v3748_v29, %v418_v61  ;;  %v4338_v29 = vpack.c.bf16 %v976_v28, %v975_v27  ;;  %v966_v27 = vld [vmem:[%s4860_s8 + $0x18] sm:$0xff] }
 0x29b   :  { %v455_v35 = vmul.f32 0.01, %v447_v30  ;;  %vm451_vm5 = vcmp.ge.f32.partialorder %v447_v30, 0.0 }
 0x29c   :  { %v3750_v31 = vpop.eup %3749 }
 0x29d   :  { %v3752_v32 = vpop.eup %3751  ;;  %v449_v33 = vmul.f32 %v3750_v31, %v420_v60  ;;  %v459_v40 = vsel %vm451_vm5, %v447_v30, %v455_v35 }
 0x29e   :  { %v448_v34 = vmul.f32 %v3752_v32, %v419_v5  ;;  %v167_v5 = vld [vmem:[%s4892_s2 + $0x8] sm:$0xff] }
 0x29f   :  { %v457_v39 = vmul.f32 0.01, %v449_v33  ;;  %vm453_vm7 = vcmp.ge.f32.partialorder %v449_v33, 0.0 }
 0x2a0   :  { %v3754_v36 = vpop.eup %3753  ;;  %vm452_vm6 = vcmp.ge.f32.partialorder %v448_v34, 0.0  ;;  %v456_v37 = vmul.f32 0.01, %v448_v34 }
 0x2a1   :  { %v450_v38 = vmul.f32 %v3754_v36, %v421_v4  ;;  %v4302_v44 = vsel %vm453_vm7, %v449_v33, %v457_v39  ;;  %v973_v36 = vld [vmem:[%s4861_s9] sm:$0xff]  ;;  %vm1308_vm7 = vcmask 121856  }
 0x2a2   :  { %v460_v41 = vsel %vm452_vm6, %v448_v34, %v456_v37  ;;  %v974_v37 = vld [vmem:[%s4861_s9 + $0x8] sm:$0xff] }
 0x2a3   :  { %v467_v42 = vpack.c.bf16 %v460_v41, %v459_v40  ;;  %vm454_vm8 = vcmp.ge.f32.partialorder %v450_v38, 0.0  ;;  %v458_v43 = vmul.f32 0.01, %v450_v38 }
 0x2a5   :  { %3409 = vmatprep.mubr.msk.bf16.mxu0 %vm426_vm4, %v467_v42  ;;  %v4304_v45 = vsel %vm454_vm8, %v450_v38, %v458_v43  ;;  %vm1327_vm8 = vcmask 115712  }
 0x2a6   :  { %v468_v46 = vpack.c.bf16 %v4304_v45, %v4302_v44 }
 0x2a8   :  { %3410 = vmatmul.mubr.msk.bf16.vlgmr.msra.gmra.mxu0 %vm426_vm4, %v468_v46  ;;  %v4347_v46 = vpack.c.bf16 %v974_v37, %v973_v36 }
 0x2a9   :  { %3424 = vmatpush3.bf16.msra.mxu0 %v4262_v11 }
 0x368   :  { %v3411_v48 = vpop.f32.mrf.mxu0 }
 0x369   :  { %v4310_v49 = vadd.f32 %v3411_v48, %v3149_v47 }
 0x36a   :  { %v518_v50 = vpop.f32.mrf.mxu0 }
 0x36b   :  { %v519_v51 = vadd.f32 %v3149_v47, %v518_v50 }
 0x36c   :  { %v3412_v52 = vpop.f32.mrf.mxu0 }
 0x36d   :  { %v4312_v53 = vadd.f32 %v3412_v52, %v3149_v47  ;;  %v534_v54 = vsel %vm533_vm9, %v519_v51, -inf }
 0x36e   :  { %v521_v55 = vpop.f32.mrf.mxu0  ;;  %535 = vmax.xlane.f32.xlu0 %v534_v54 }
 0x36f   :  { %v522_v56 = vadd.f32 %v3149_v47, %v521_v55 }
 0x371   :  { %v537_v57 = vsel %vm533_vm9, %v522_v56, -inf }
 0x372   :  { %538 = vmax.xlane.f32.xlu1 %v537_v57 }
 0x3f7   :  { %v536_v11 = vpop.xlane.xlu0 %535 }
 0x3f8   :  { %v546_v59 = vsub.f32 %v519_v51, %v536_v11 }
 0x3fa   :  { %v550_v60 = vmul.f32 1.442695, %v546_v59 }
 0x3fb   :  { %v539_v61 = vpop.xlane.xlu1 %538 }
 0x3fc   :  { %3755 = vpow2.f32 %v550_v60  ;;  %v547_v62 = vsub.f32 %v522_v56, %v539_v61 }
 0x3fe   :  { %v552_v63 = vmul.f32 1.442695, %v547_v62 }
 0x400   :  { %3757 = vpow2.f32 %v552_v63 }
 0x409   :  { %v3756_v0 = vpop.eup %3755 }
 0x40a   :  { %v558_v1 = vsel %vm533_vm9, %v3756_v0, 0.0 }
 0x40b   :  { %559 = vadd.xlane.f32.xlu0 %v558_v1 }
 0x40d   :  { %v3758_v3 = vpop.eup %3757 }
 0x40e   :  { %v561_v4 = vsel %vm533_vm9, %v3758_v3, 0.0 }
 0x40f   :  { %562 = vadd.xlane.f32.xlu1 %v561_v4 }
 0x420   :  { %587 = vperm.xlu1 %3738, %v167_v5  }
 0x421   :  { %582 = vperm.xlu0 %3737, %v166_v6  }
 0x494   :  { %v560_v7 = vpop.xlane.xlu0 %559 }
 0x495   :  { %3759 = vrcp.f32 %v560_v7 }
 0x498   :  { %v563_v8 = vpop.xlane.xlu1 %562 }
 0x499   :  { %3761 = vrcp.f32 %v563_v8 }
 0x49c   :  { %v588_v9 = vpop.permute.xlu1 %587  ;;  %v583_v10 = vpop.permute.xlu0 %582 }
 0x49d   :  { %v591_v12 = vmul.f32 %v588_v9, %v460_v41  ;;  %v590_v13 = vmul.f32 %v583_v10, %v459_v40 }
 0x49f   :  { %v595_v14 = vpack.c.bf16 %v591_v12, %v590_v13 }
 0x4a1   :  { %3413 = vmatprep.subr.bf16.mxu1 %v595_v14 }
 0x4a2   :  { %v3760_v16 = vpop.eup %3759  ;;  %3414 = vmatpush3.bf16.msra.mxu1 %v595_v14 }
 0x4a3   :  { %v571_v17 = vmul.f32 %v3760_v16, %v3756_v0 }
 0x4a5   :  { %v592_v21 = vmul.f32 %v583_v10, %v571_v17 }
 0x4a6   :  { %v3762_v18 = vpop.eup %3761 }
 0x4a7   :  { %v573_v19 = vmul.f32 %v3762_v18, %v3758_v3 }
 0x4a9   :  { %v593_v20 = vmul.f32 %v588_v9, %v573_v19 }
 0x4ab   :  { %v594_v22 = vpack.c.bf16 %v593_v20, %v592_v21 }
 0x4ad   :  { %596 = vxpose.xlu1.c.b16.start.end [1/1] (short) (narrow) %v594_v22, 64  ;;  %3433 = vmatprep.subr.bf16.mxu1 %v594_v22 }
 0x50f   :  { %v604_v23 = vpop.trf.xlu1 }
 0x510   :  { %3415 = vmatprep.mubr.msk.bf16.mxu1 %vm174_vm1, %v604_v23  ;;  %3425 = vmatprep.mubr.msk.bf16.mxu0 %vm174_vm1, %v604_v23 }
 0x513   :  { %v605_v24 = vpop.trf.xlu1 }
 0x514   :  { %3416 = vmatmul.mubr.msk.bf16.vlgmr.msra.gmra.mxu1 %vm174_vm1, %v605_v24  ;;  %3426 = vmatmul.mubr.msk.bf16.vlgmr.msra.gmra.mxu0 %vm174_vm1, %v605_v24 }
 0x515   :  { %3434 = vmatpush3.bf16.msra.mxu1 %v594_v22 }
 0x516   :  { %3459 = vmatprep.subr.bf16.mxu1 %v4338_v29 }
 0x517   :  { %v606_v25 = vpop.trf.xlu1 }
 0x518   :  { %3429 = vmatprep.mubr.msk.bf16.mxu0 %vm174_vm1, %v606_v25  ;;  %3419 = vmatprep.mubr.msk.bf16.mxu1 %vm174_vm1, %v606_v25 }
 0x51b   :  { %v607_v26 = vpop.trf.xlu1 }
 0x51c   :  { %3420 = vmatmul.mubr.msk.bf16.gmra.mxu1 %vm174_vm1, %v607_v26  ;;  %3430 = vmatmul.mubr.msk.bf16.gmra.mxu0 %vm174_vm1, %v607_v26  ;;  %v965_v26 = vld [vmem:[%s4860_s8 + $0x10] sm:$0xff] }
 0x51d   :  { %v4403_v28 = vpack.c.bf16 %v966_v27, %v965_v26 }
 0x5d4   :  { %v3417_v30 = vpop.f32.mrf.mxu1  ;;  %v3427_v31 = vpop.f32.mrf.mxu0 }
 0x5d6   :  { %v658_v32 = vpop.f32.mrf.mxu1  ;;  %v722_v33 = vpop.f32.mrf.mxu0 }
 0x5d8   :  { %v3418_v34 = vpop.f32.mrf.mxu1  ;;  %v3428_v35 = vpop.f32.mrf.mxu0 }
 0x5d9   :  { %v753_v41 = vpack.c.bf16 %v3428_v35, %v3427_v31  ;;  %v837_v59 = vpack.c.bf16 %v3418_v34, %v3417_v30  ;;  %v963_v30 = vld [vmem:[%s4860_s8] sm:$0xff]  ;;  %v964_v31 = vld [vmem:[%s4860_s8 + $0x8] sm:$0xff] }
 0x5da   :  { %v661_v38 = vpop.f32.mrf.mxu1  ;;  %v725_v39 = vpop.f32.mrf.mxu0 }
 0x5db   :  { %v752_v40 = vpack.c.bf16 %v725_v39, %v722_v33  ;;  %v836_v60 = vpack.c.bf16 %v661_v38, %v658_v32  ;;  %v4413_v32 = vpack.c.bf16 %v964_v31, %v963_v30  ;;  %v3176_v30 = vld [vmem:[#allocation12] ss:$0 sm:$0xff] }
 0x5dc   :  { %v3421_v42 = vpop.f32.mrf.mxu1  ;;  %v3431_v43 = vpop.f32.mrf.mxu0 }
 0x5dd   :  { %v839_v47 = vpack.c.bf16 %v3421_v42, %v3421_v42  ;;  %3435 = vmatprep.mubr.msk.bf16.mxu1 %vm174_vm1, %v752_v40  ;;  %v755_v11 = vpack.c.bf16 %v3431_v43, %v3431_v43 }
 0x5de   :  { %v674_v48 = vpop.f32.mrf.mxu1  ;;  %v738_v50 = vpop.f32.mrf.mxu0  ;;  %3436 = vmatmul.mubr.msk.bf16.vlgmr.msra.gmra.mxu1 %vm174_vm1, %v753_v41 }
 0x5df   :  { %3723 = vmatprep.subr.msk.bf16.mxu0 %vm852_vm10, %v839_v47  ;;  %v854_v51 = vsel %vm852_vm10, %v839_v47, 0  ;;  %3460 = vmatpush3.bf16.msra.mxu1 %v4338_v29 }
 0x5e0   :  { %v3422_v52 = vpop.f32.mrf.mxu1  ;;  %v3432_v54 = vpop.f32.mrf.mxu0  ;;  %3444 = vmatpush3.bf16.msra.mxu0 %v854_v51  ;;  %3461 = vmatprep.subr.bf16.mxu1 %v4347_v46 }
 0x5e2   :  { %v677_v55 = vpop.f32.mrf.mxu1  ;;  %v741_v56 = vpop.f32.mrf.mxu0 }
 0x5e3   :  { %v838_v57 = vpack.c.bf16 %v677_v55, %v674_v48  ;;  %v754_v58 = vpack.c.bf16 %v741_v56, %v738_v50  ;;  %3462 = vmatpush3.bf16.msra.mxu1 %v4347_v46 }
 0x5e5   :  { %3439 = vmatprep.mubr.msk.bf16.mxu1 %vm174_vm1, %v754_v58  ;;  %3445 = vmatprep.subr.bf16.mxu0 %v838_v57 }
 0x5e6   :  { %3440 = vmatmul.mubr.msk.bf16.gmra.mxu1 %vm174_vm1, %v755_v11  ;;  %3446 = vmatpush3.bf16.msra.mxu0 %v838_v57 }
 0x5e7   :  { %3447 = vmatprep.subr.bf16.mxu0 %v837_v59  ;;  %3463 = vmatprep.mubr.msk.bf16.mxu1 %vm426_vm4, %v836_v60 }
 0x5ea   :  { %3448 = vmatpush3.bf16.msra.mxu0 %v837_v59 }
 0x5eb   :  { %3449 = vmatprep.subr.bf16.mxu0 %v836_v60 }
 0x5ee   :  { %3450 = vmatpush3.bf16.msra.mxu0 %v836_v60  ;;  %3464 = vmatmul.mubr.msk.bf16.vlgmr.msra.gmra.mxu1 %vm426_vm4, %v837_v59 }
 0x5ef   :  { %3467 = vmatprep.mubr.msk.bf16.mxu1 %vm426_vm4, %v838_v57  ;;  %3471 = vmatprep.subr.bf16.mxu0 %v4403_v28 }
 0x5f6   :  { %3468 = vmatmul.mubr.msk.bf16.gmra.mxu1 %vm426_vm4, %v839_v47 }
 0x69e   :  { %v3437_v61 = vpop.f32.mrf.mxu1 }
 0x69f   :  { %v926_v4 = vsel %vm533_vm9, %v3437_v61, 0.0 }
 0x6a0   :  { %v802_v62 = vpop.f32.mrf.mxu1 }
 0x6a1   :  { %v920_v63 = vsel %vm533_vm9, %v802_v62, 0.0 }
 0x6a2   :  { %921 = vadd.xlane.f32.xlu0 %v920_v63  ;;  %v3438_v0 = vpop.f32.mrf.mxu1 }
 0x6a3   :  { %v4367_v6 = vpack.c.bf16 %v3438_v0, %v3437_v61  ;;  %v929_v9 = vsel %vm533_vm9, %v3438_v0, 0.0 }
 0x6a4   :  { %v805_v1 = vpop.f32.mrf.mxu1 }
 0x6a5   :  { %v4363_v3 = vpack.c.bf16 %v805_v1, %v802_v62  ;;  %v923_v5 = vsel %vm533_vm9, %v805_v1, 0.0 }
 0x6a6   :  { %927 = vadd.xlane.f32.xlu0 %v926_v4  ;;  %924 = vadd.xlane.f32.xlu1 %v923_v5  ;;  %v3441_v7 = vpop.f32.mrf.mxu1 }
 0x6a7   :  { %3451 = vmatprep.mubr.msk.bf16.mxu0 %vm533_vm9, %v4363_v3  ;;  %v939_v16 = vsel %vm938_vm11, %v3441_v7, 0.0  ;;  %v4379_v18 = vpack.c.bf16 %v3441_v7, %v3441_v7 }
 0x6a8   :  { %v818_v8 = vpop.f32.mrf.mxu1  ;;  %3452 = vmatmul.mubr.msk.bf16.vlgmr.msra.gmra.mxu0 %vm533_vm9, %v4367_v6 }
 0x6a9   :  { %v932_v10 = vsel %vm533_vm9, %v818_v8, 0.0  ;;  %3472 = vmatpush3.bf16.msra.mxu0 %v4403_v28 }
 0x6aa   :  { %930 = vadd.xlane.f32.xlu1 %v929_v9  ;;  %933 = vadd.xlane.f32.xlu0 %v932_v10  ;;  %v3442_v12 = vpop.f32.mrf.mxu1 }
 0x6ab   :  { %3473 = vmatprep.subr.bf16.mxu0 %v4413_v32 }
 0x6ac   :  { %v821_v13 = vpop.f32.mrf.mxu1 }
 0x6ad   :  { %v4375_v14 = vpack.c.bf16 %v821_v13, %v818_v8  ;;  %v935_v17 = vsel %vm533_vm9, %v821_v13, 0.0  ;;  %3474 = vmatpush3.bf16.msra.mxu0 %v4413_v32 }
 0x6ae   :  { %940 = vadd.xlane.f32.xlu0 %v939_v16  ;;  %v4381_v19 = vpop.f32.mrf.mxu1  ;;  %936 = vadd.xlane.f32.xlu1 %v935_v17 }
 0x6af   :  { %3455 = vmatprep.mubr.msk.bf16.mxu0 %vm533_vm9, %v4375_v14  ;;  %3495 = vmatprep.subr.bf16.mxu0 %v4091_v2 }
 0x6b0   :  { %3456 = vmatmul.mubr.msk.bf16.gmra.mxu0 %vm533_vm9, %v4379_v18  ;;  %v4387_v20 = vpop.f32.mrf.mxu1 }
 0x6b2   :  { %v4389_v21 = vpop.f32.mrf.mxu1 }
 0x6b4   :  { %v4391_v22 = vpop.f32.mrf.mxu1 }
 0x6b6   :  { %v4393_v23 = vpop.f32.mrf.mxu1 }
 0x6b8   :  { %v4395_v24 = vpop.f32.mrf.mxu1 }
 0x6ba   :  { %v3470_v25 = vpop.f32.mrf.mxu1 }
 0x72b   :  { %v922_v33 = vpop.xlane.xlu0 %921 }
 0x72c   :  { %v942_v37 = vmax.f32 %v922_v33, 1.0 }
 0x72e   :  { %3763 = vrcp.f32 %v942_v37 }
 0x72f   :  { %v925_v34 = vpop.xlane.xlu1 %924  ;;  %v928_v35 = vpop.xlane.xlu0 %927 }
 0x730   :  { %v943_v40 = vmax.f32 %v925_v34, 1.0  ;;  %v944_v41 = vmax.f32 %v928_v35, 1.0 }
 0x733   :  { %v931_v36 = vpop.xlane.xlu1 %930  ;;  %v934_v38 = vpop.xlane.xlu0 %933 }
 0x734   :  { %v945_v39 = vmax.f32 %v931_v36, 1.0  ;;  %v946_v47 = vmax.f32 %v934_v38, 1.0 }
 0x736   :  { %3765 = vrcp.f32 %v945_v39 }
 0x737   :  { %3767 = vrcp.f32 %v943_v40  ;;  %v941_v42 = vpop.xlane.xlu0 %940  ;;  %v937_v43 = vpop.xlane.xlu1 %936 }
 0x738   :  { %3769 = vrcp.f32 %v944_v41  ;;  %v948_v48 = vmax.f32 %v941_v42, 1.0  ;;  %v947_v50 = vmax.f32 %v937_v43, 1.0 }
 0x739   :  { %3771 = vrcp.f32 %v946_v47 }
 0x73a   :  { %3773 = vrcp.f32 %v948_v48 }
 0x73b   :  { %3775 = vrcp.f32 %v947_v50  ;;  %v3764_v54 = vpop.eup %3763 }
 0x743   :  { %v3766_v56 = vpop.eup %3765 }
 0x744   :  { %v3768_v57 = vpop.eup %3767 }
 0x745   :  { %v3770_v59 = vpop.eup %3769 }
 0x746   :  { %v3772_v5 = vpop.eup %3771 }
 0x747   :  { %v3774_v8 = vpop.eup %3773 }
 0x748   :  { %v3776_v9 = vpop.eup %3775 }
 0x768   :  { %v3453_v51 = vpop.f32.mrf.mxu0 }
 0x769   :  { %v954_v62 = vmul.f32 %v3770_v59, %v3453_v51 }
 0x76a   :  { %v890_v52 = vpop.f32.mrf.mxu0 }
 0x76b   :  { %v950_v60 = vmul.f32 %v3764_v54, %v890_v52 }
 0x76c   :  { %v3454_v55 = vpop.f32.mrf.mxu0 }
 0x76d   :  { %v956_v58 = vmul.f32 %v3766_v56, %v3454_v55  ;;  %v1043_v56 = vpop.f32.mrf.mxu1 }
 0x76e   :  { %v893_v11 = vpop.f32.mrf.mxu0 }
 0x76f   :  { %v952_v61 = vmul.f32 %v3768_v57, %v893_v11  ;;  %v968_v1 = vpack.c.bf16 %v956_v58, %v954_v62 }
 0x770   :  { %v3457_v63 = vpop.f32.mrf.mxu0 }
 0x771   :  { %v967_v0 = vpack.c.bf16 %v952_v61, %v950_v60  ;;  %v962_v10 = vmul.f32 %v3774_v8, %v3457_v63  ;;  %v1216_v8 = vld [vmem:[%s4863_s11 + $0x8] sm:$0xff] }
 0x772   :  { %v906_v4 = vpop.f32.mrf.mxu0 }
 0x773   :  { %3475 = vmatprep.mubr.msk.bf16.mxu0 %vm426_vm4, %v967_v0  ;;  %v958_v13 = vmul.f32 %v3772_v5, %v906_v4  ;;  %v970_v25 = vpack.c.bf16 %v962_v10, %v962_v10  ;;  %v1218_v4 = vld [vmem:[%s4863_s11 + $0x18] sm:$0xff] }
 0x774   :  { %v3458_v7 = vpop.f32.mrf.mxu0  ;;  %3476 = vmatmul.mubr.msk.bf16.vlgmr.msra.gmra.mxu0 %vm426_vm4, %v968_v1  ;;  %v1217_v1 = vld [vmem:[%s4863_s11 + $0x10] sm:$0xff] }
 0x775   :  { %v4471_v5 = vpack.c.bf16 %v1218_v4, %v1217_v1  ;;  %v1215_v7 = vld [vmem:[%s4863_s11] sm:$0xff] }
 0x776   :  { %v909_v12 = vpop.f32.mrf.mxu0 }
 0x777   :  { %v960_v16 = vmul.f32 %v3776_v9, %v909_v12  ;;  %3483 = vmatprep.subr.bf16.mxu1 %v4471_v5  ;;  %v4481_v9 = vpack.c.bf16 %v1216_v8, %v1215_v7 }
 0x778   :  { %3484 = vmatpush3.bf16.msra.mxu1 %v4471_v5 }
 0x779   :  { %v969_v17 = vpack.c.bf16 %v960_v16, %v958_v13  ;;  %3485 = vmatprep.subr.bf16.mxu1 %v4481_v9 }
 0x77b   :  { %3479 = vmatprep.mubr.msk.bf16.mxu0 %vm426_vm4, %v969_v17 }
 0x77c   :  { %3480 = vmatmul.mubr.msk.bf16.gmra.mxu0 %vm426_vm4, %v970_v25  ;;  %3486 = vmatpush3.bf16.msra.mxu1 %v4481_v9 }
 0x77d   :  { %3503 = vmatprep.mubr.msk.bf16.mxu0 %vm4092_vm0, %v4091_v2  ;;  %3507 = vmatprep.subr.bf16.mxu1 %v4091_v2 }
 0x834   :  { %v3477_v26 = vpop.f32.mrf.mxu0 }
 0x835   :  { %v1109_v27 = vadd.f32 %v3477_v26, %v4381_v19 }
 0x836   :  { %v1100_v31 = vpop.f32.mrf.mxu0 }
 0x837   :  { %v1101_v33 = vadd.f32 %v1100_v31, %v4387_v20  ;;  %v4426_v34 = vadd.f32 %v3176_v30, %v1109_v27 }
 0x838   :  { %v3478_v35 = vpop.f32.mrf.mxu0 }
 0x839   :  { %v4428_v36 = vadd.f32 %v3176_v30, %v1101_v33  ;;  %v1112_v37 = vadd.f32 %v3478_v35, %v4389_v21  ;;  %v1146_v19 = vmul.f32 %v4426_v34, %v4426_v34 }
 0x83a   :  { %v1103_v38 = vpop.f32.mrf.mxu0 }
 0x83b   :  { %v1104_v39 = vadd.f32 %v1103_v38, %v4391_v22  ;;  %v1144_v40 = vmul.f32 %v4428_v36, %v4428_v36  ;;  %v4436_v42 = vadd.f32 %v3176_v30, %v1112_v37  ;;  %v1157_v51 = vsel %vm426_vm4, %v1146_v19, 0.0 }
 0x83c   :  { %v3481_v41 = vpop.f32.mrf.mxu0 }
 0x83d   :  { %v4438_v20 = vadd.f32 %v3176_v30, %v1104_v39  ;;  %v1125_v43 = vadd.f32 %v3481_v41, %v4393_v23  ;;  %v1151_v47 = vsel %vm426_vm4, %v1144_v40, 0.0  ;;  %v1147_v23 = vmul.f32 %v4436_v42, %v4436_v42 }
 0x83e   :  { %1152 = vadd.xlane.f32.xlu1 %v1151_v47  ;;  %v1116_v21 = vpop.f32.mrf.mxu0 }
 0x83f   :  { %v1117_v48 = vadd.f32 %v1116_v21, %v4395_v24  ;;  %v1145_v22 = vmul.f32 %v4438_v20, %v4438_v20  ;;  %v4446_v52 = vadd.f32 %v3176_v30, %v1125_v43  ;;  %v1160_v59 = vsel %vm426_vm4, %v1147_v23, 0.0 }
 0x840   :  { %v3482_v50 = vpop.f32.mrf.mxu0 }
 0x841   :  { %v4448_v54 = vadd.f32 %v3176_v30, %v1117_v48  ;;  %v1154_v55 = vsel %vm426_vm4, %v1145_v22, 0.0  ;;  %v1150_v61 = vmul.f32 %v4446_v52, %v4446_v52 }
 0x842   :  { %1155 = vadd.xlane.f32.xlu0 %v1154_v55  ;;  %1158 = vadd.xlane.f32.xlu1 %v1157_v51  ;;  %v1119_v57 = vpop.f32.mrf.mxu0 }
 0x843   :  { %v1120_v24 = vadd.f32 %v1119_v57, %v1043_v56  ;;  %v1148_v58 = vmul.f32 %v4448_v54, %v4448_v54  ;;  %v1170_v0 = vsel %vm1169_vm12, %v1150_v61, 0.0 }
 0x845   :  { %v4455_v11 = vadd.f32 %v3176_v30, %v1120_v24  ;;  %v1163_v60 = vsel %vm426_vm4, %v1148_v58, 0.0 }
 0x846   :  { %1161 = vadd.xlane.f32.xlu0 %v1160_v59  ;;  %1164 = vadd.xlane.f32.xlu1 %v1163_v60 }
 0x847   :  { %v1149_v62 = vmul.f32 %v4455_v11, %v4455_v11 }
 0x849   :  { %v1166_v63 = vsel %vm426_vm4, %v1149_v62, 0.0 }
 0x84a   :  { %1167 = vadd.xlane.f32.xlu0 %v1166_v63  ;;  %1171 = vadd.xlane.f32.xlu1 %v1170_v0 }
 0x8c7   :  { %v1153_v10 = vpop.xlane.xlu1 %1152 }
 0x8c8   :  { %v1173_v12 = vmax.f32 %v1153_v10, 1e-24 }
 0x8ca   :  { %3777 = vrsqrt.f32 %v1173_v12 }
 0x8cb   :  { %v1156_v13 = vpop.xlane.xlu0 %1155  ;;  %v1159_v16 = vpop.xlane.xlu1 %1158 }
 0x8cc   :  { %v1174_v17 = vmax.f32 %v1156_v13, 1e-24  ;;  %v1175_v25 = vmax.f32 %v1159_v16, 1e-24 }
 0x8ce   :  { %3779 = vrsqrt.f32 %v1174_v17 }
 0x8cf   :  { %3781 = vrsqrt.f32 %v1175_v25  ;;  %v1162_v26 = vpop.xlane.xlu0 %1161  ;;  %v1165_v27 = vpop.xlane.xlu1 %1164 }
 0x8d0   :  { %v1176_v30 = vmax.f32 %v1162_v26, 1e-24  ;;  %v1177_v31 = vmax.f32 %v1165_v27, 1e-24 }
 0x8d2   :  { %3783 = vrsqrt.f32 %v1176_v30 }
 0x8d3   :  { %3785 = vrsqrt.f32 %v1177_v31  ;;  %v1168_v33 = vpop.xlane.xlu0 %1167  ;;  %v1172_v35 = vpop.xlane.xlu1 %1171 }
 0x8d4   :  { %v1178_v37 = vmax.f32 %v1168_v33, 1e-24  ;;  %v1179_v38 = vmax.f32 %v1172_v35, 1e-24 }
 0x8d6   :  { %3787 = vrsqrt.f32 %v1178_v37 }
 0x8d7   :  { %v3778_v39 = vpop.eup %3777  ;;  %3789 = vrsqrt.f32 %v1179_v38 }
 0x8d8   :  { %v1187_v40 = vmul.f32 %v3778_v39, %v4428_v36 }
 0x8da   :  { %v1201_v47 = vmul.f32 0.01, %v1187_v40  ;;  %vm1194_vm13 = vcmp.ge.f32.partialorder %v1187_v40, 0.0 }
 0x8db   :  { %v3780_v41 = vpop.eup %3779 }
 0x8dc   :  { %v3782_v19 = vpop.eup %3781  ;;  %v1188_v43 = vmul.f32 %v3780_v41, %v4438_v20  ;;  %v1208_v23 = vsel %vm1194_vm13, %v1187_v40, %v1201_v47  ;;  %vm1549_vm13 = vcmask 1046528  }
 0x8dd   :  { %v1189_v21 = vmul.f32 %v3782_v19, %v4426_v34 }
 0x8de   :  { %vm1195_vm14 = vcmp.ge.f32.partialorder %v1188_v43, 0.0  ;;  %v1202_v48 = vmul.f32 0.01, %v1188_v43 }
 0x8df   :  { %v3784_v22 = vpop.eup %3783  ;;  %v1203_v51 = vmul.f32 0.01, %v1189_v21  ;;  %vm1196_vm15 = vcmp.ge.f32.partialorder %v1189_v21, 0.0 }
 0x8e0   :  { %v3786_v50 = vpop.eup %3785  ;;  %v1190_v55 = vmul.f32 %v3784_v22, %v4436_v42  ;;  %v1209_v56 = vsel %vm1195_vm14, %v1188_v43, %v1202_v48  ;;  %vm1550_vm14 = vcmask 1047552  }
 0x8e1   :  { %v1219_v57 = vpack.c.bf16 %v1209_v56, %v1208_v23  ;;  %v1191_v36 = vmul.f32 %v3786_v50, %v4448_v54  ;;  %v1210_v58 = vsel %vm1196_vm15, %v1189_v21, %v1203_v51  ;;  %v1453_v54 = vsel %vm852_vm10, %v4379_v18, 0 }
 0x8e2   :  { %vm1197_vm2 = vcmp.ge.f32.partialorder %v1190_v55, 0.0  ;;  %v1204_v24 = vmul.f32 0.01, %v1190_v55  ;;  %vm1600_vm15 = vcmask 120832  }
 0x8e3   :  { %v3788_v20 = vpop.eup %3787  ;;  %3487 = vmatprep.mubr.msk.bf16.mxu1 %vm426_vm4, %v1219_v57  ;;  %v1205_v61 = vmul.f32 0.01, %v1191_v36  ;;  %vm1198_vm3 = vcmp.ge.f32.partialorder %v1191_v36, 0.0 }
 0x8e4   :  { %v3790_v34 = vpop.eup %3789  ;;  %v1211_v59 = vsel %vm1197_vm2, %v1190_v55, %v1204_v24  ;;  %v1192_v60 = vmul.f32 %v3788_v20, %v4455_v11  ;;  %vm1724_vm2 = vcmask 260096  }
 0x8e5   :  { %v1220_v62 = vpack.c.bf16 %v1211_v59, %v1210_v58  ;;  %v1193_v42 = vmul.f32 %v3790_v34, %v4446_v52  ;;  %v1212_v1 = vsel %vm1198_vm3, %v1191_v36, %v1205_v61 }
 0x8e6   :  { %vm1199_vm5 = vcmp.ge.f32.partialorder %v1192_v60, 0.0  ;;  %v1206_v63 = vmul.f32 0.01, %v1192_v60 }
 0x8e7   :  { %3488 = vmatmul.mubr.msk.bf16.vlgmr.msra.gmra.mxu1 %vm426_vm4, %v1220_v62  ;;  %vm1200_vm6 = vcmp.ge.f32.partialorder %v1193_v42, 0.0  ;;  %v1207_v0 = vmul.f32 0.01, %v1193_v42 }
 0x8e8   :  { %3508 = vmatpush3.bf16.msra.mxu1 %v1453_v54  ;;  %v1213_v4 = vsel %vm1199_vm5, %v1192_v60, %v1206_v63 }
 0x8e9   :  { %3509 = vmatprep.subr.bf16.mxu1 %v4091_v2  ;;  %v1221_v11 = vpack.c.bf16 %v1213_v4, %v1212_v1  ;;  %v1214_v7 = vsel %vm1200_vm6, %v1193_v42, %v1207_v0 }
 0x8ea   :  { %v1222_v8 = vpack.c.bf16 %v1214_v7, %v1214_v7 }
 0x8eb   :  { %3491 = vmatprep.mubr.msk.bf16.mxu1 %vm426_vm4, %v1221_v11 }
 0x8ec   :  { %3510 = vmatpush3.bf16.msra.mxu1 %v4375_v14  ;;  %v1410_v52 = vsel %vm852_vm10, %v1222_v8, 0  ;;  %v3177_v14 = vld [vmem:[#allocation13] ss:$0 sm:$0xff] }
 0x8ed   :  { %3496 = vmatpush3.bf16.msra.mxu0 %v1410_v52  ;;  %3511 = vmatprep.subr.bf16.mxu1 %v4091_v2 }
 0x8ee   :  { %3497 = vmatprep.subr.bf16.mxu0 %v4091_v2 }
 0x8ef   :  { %3492 = vmatmul.mubr.msk.bf16.gmra.mxu1 %vm426_vm4, %v1222_v8 }
 0x8f0   :  { %3512 = vmatpush3.bf16.msra.mxu1 %v4367_v6  ;;  %3515 = vmatprep.mubr.msk.bf16.mxu1 %vm4092_vm0, %v4091_v2 }
 0x8f1   :  { %3498 = vmatpush3.bf16.msra.mxu0 %v1221_v11  ;;  %3513 = vmatprep.subr.bf16.mxu1 %v4091_v2 }
 0x8f2   :  { %3499 = vmatprep.subr.bf16.mxu0 %v4091_v2 }
 0x8f4   :  { %3514 = vmatpush3.bf16.msra.mxu1 %v4363_v3 }
 0x8f5   :  { %3500 = vmatpush3.bf16.msra.mxu0 %v1220_v62  ;;  %3531 = vmatprep.subr.bf16.mxu1 %v4091_v2 }
 0x8f6   :  { %3501 = vmatprep.subr.bf16.mxu0 %v4091_v2 }
 0x8f9   :  { %3502 = vmatpush3.bf16.msra.mxu0 %v1219_v57 }
 0x8fa   :  { %3519 = vmatprep.subr.bf16.mxu0 %v4091_v2 }
 0x9a7   :  { %v3489_v6 = vpop.f32.mrf.mxu1 }
 0x9a8   :  { %v1287_v18 = vadd.f32 %v3489_v6, %v3177_v14 }
 0x9a9   :  { %v1278_v10 = vpop.f32.mrf.mxu1 }
 0x9aa   :  { %v1279_v12 = vadd.f32 %v3177_v14, %v1278_v10  ;;  %v1315_v13 = vsel %vm1308_vm7, %v1287_v18, -inf }
 0x9ab   :  { %v3490_v16 = vpop.f32.mrf.mxu1  ;;  %1316 = vmax.xlane.f32.xlu0 %v1315_v13 }
 0x9ac   :  { %v1290_v17 = vadd.f32 %v3490_v16, %v3177_v14  ;;  %v1309_v26 = vsel %vm1308_vm7, %v1279_v12, -inf }
 0x9ad   :  { %v1281_v3 = vpop.f32.mrf.mxu1 }
 0x9ae   :  { %v1282_v25 = vadd.f32 %v3177_v14, %v1281_v3  ;;  %v1318_v27 = vsel %vm1308_vm7, %v1290_v17, -inf }
 0x9af   :  { %1310 = vmax.xlane.f32.xlu0 %v1309_v26  ;;  %1319 = vmax.xlane.f32.xlu1 %v1318_v27  ;;  %v3493_v30 = vpop.f32.mrf.mxu1 }
 0x9b0   :  { %v1312_v35 = vsel %vm1308_vm7, %v1282_v25, -inf  ;;  %v1303_v38 = vadd.f32 %v3493_v30, %v3177_v14 }
 0x9b1   :  { %v1294_v31 = vpop.f32.mrf.mxu1 }
 0x9b2   :  { %v1295_v33 = vadd.f32 %v3177_v14, %v1294_v31  ;;  %v1328_v43 = vsel %vm1327_vm8, %v1303_v38, -inf }
 0x9b3   :  { %1313 = vmax.xlane.f32.xlu1 %v1312_v35  ;;  %v3494_v37 = vpop.f32.mrf.mxu1 }
 0x9b4   :  { %v1321_v39 = vsel %vm1308_vm7, %v1295_v33, -inf }
 0x9b5   :  { %v1297_v40 = vpop.f32.mrf.mxu1  ;;  %1322 = vmax.xlane.f32.xlu0 %v1321_v39 }
 0x9b6   :  { %v1298_v41 = vadd.f32 %v3177_v14, %v1297_v40 }
 0x9b8   :  { %v1324_v19 = vsel %vm1308_vm7, %v1298_v41, -inf }
 0x9b9   :  { %1325 = vmax.xlane.f32.xlu1 %v1324_v19  ;;  %1329 = vmax.xlane.f32.xlu0 %v1328_v43 }
 0xa34   :  { %v1317_v47 = vpop.xlane.xlu0 %1316 }
 0xa35   :  { %v1333_v21 = vsub.f32 %v1287_v18, %v1317_v47 }
 0xa37   :  { %v1342_v48 = vmul.f32 1.442695, %v1333_v21 }
 0xa38   :  { %v1311_v22 = vpop.xlane.xlu0 %1310  ;;  %v1320_v50 = vpop.xlane.xlu1 %1319 }
 0xa39   :  { %3791 = vpow2.f32 %v1342_v48  ;;  %v1331_v51 = vsub.f32 %v1279_v12, %v1311_v22  ;;  %v1334_v55 = vsub.f32 %v1290_v17, %v1320_v50 }
 0xa3b   :  { %v1338_v23 = vmul.f32 1.442695, %v1331_v51  ;;  %v1344_v56 = vmul.f32 1.442695, %v1334_v55 }
 0xa3c   :  { %v1314_v57 = vpop.xlane.xlu1 %1313 }
 0xa3d   :  { %3793 = vpow2.f32 %v1338_v23  ;;  %v1332_v36 = vsub.f32 %v1282_v25, %v1314_v57 }
 0xa3e   :  { %3795 = vpow2.f32 %v1344_v56  ;;  %v1323_v24 = vpop.xlane.xlu0 %1322 }
 0xa3f   :  { %v1340_v20 = vmul.f32 1.442695, %v1332_v36  ;;  %v1335_v34 = vsub.f32 %v1295_v33, %v1323_v24 }
 0xa41   :  { %3797 = vpow2.f32 %v1340_v20  ;;  %v1346_v58 = vmul.f32 1.442695, %v1335_v34  ;;  %v4094_v20 = vmov 65535  }
 0xa42   :  { %v1330_v59 = vpop.xlane.xlu0 %1329  ;;  %v1326_v60 = vpop.xlane.xlu1 %1325  ;;  %v1551_v34 = vsel %vm1549_vm13, 4294967295, %v4094_v20 }
 0xa43   :  { %3799 = vpow2.f32 %v1346_v58  ;;  %v1337_v61 = vsub.f32 %v1303_v38, %v1330_v59  ;;  %v1336_v62 = vsub.f32 %v1298_v41, %v1326_v60  ;;  %v1619_v58 = vld [vmem:[%s4866_s14 + $0x10] sm:$0xff]  ;;  %v1620_v59 = vld [vmem:[%s4866_s14 + $0x18] sm:$0xff] }
 0xa45   :  { %v1350_v42 = vmul.f32 1.442695, %v1337_v61  ;;  %v1348_v63 = vmul.f32 1.442695, %v1336_v62 }
 0xa46   :  { %v3792_v54 = vpop.eup %3791 }
 0xa47   :  { %3801 = vpow2.f32 %v1350_v42  ;;  %v1358_v0 = vsel %vm1308_vm7, %v3792_v54, 0.0  ;;  %v4544_v42 = vsel %vm1550_vm14, %v1551_v34, 0 }
 0xa48   :  { %3803 = vpow2.f32 %v1348_v63  ;;  %1359 = vadd.xlane.f32.xlu1 %v1358_v0 }
 0xa4a   :  { %v3794_v1 = vpop.eup %3793 }
 0xa4b   :  { %v3796_v4 = vpop.eup %3795  ;;  %v1352_v11 = vsel %vm1308_vm7, %v3794_v1, 0.0 }
 0xa4c   :  { %1353 = vadd.xlane.f32.xlu1 %v1352_v11  ;;  %v1361_v7 = vsel %vm1308_vm7, %v3796_v4, 0.0  ;;  %v1618_v11 = vld [vmem:[%s4866_s14 + $0x8] sm:$0xff] }
 0xa4d   :  { %1362 = vadd.xlane.f32.xlu0 %v1361_v7 }
 0xa4e   :  { %v3798_v8 = vpop.eup %3797 }
 0xa4f   :  { %v1355_v52 = vsel %vm1308_vm7, %v3798_v8, 0.0 }
 0xa50   :  { %v3800_v14 = vpop.eup %3799 }
 0xa51   :  { %1356 = vadd.xlane.f32.xlu0 %v1355_v52  ;;  %v1364_v6 = vsel %vm1308_vm7, %v3800_v14, 0.0 }
 0xa52   :  { %1365 = vadd.xlane.f32.xlu1 %v1364_v6 }
 0xa54   :  { %v3802_v18 = vpop.eup %3801 }
 0xa55   :  { %v3804_v10 = vpop.eup %3803  ;;  %v1370_v12 = vsel %vm1327_vm8, %v3802_v18, 0.0 }
 0xa56   :  { %1371 = vadd.xlane.f32.xlu1 %v1370_v12  ;;  %v1367_v13 = vsel %vm1308_vm7, %v3804_v10, 0.0 }
 0xa57   :  { %1368 = vadd.xlane.f32.xlu0 %v1367_v13 }
 0xad1   :  { %v1360_v16 = vpop.xlane.xlu1 %1359 }
 0xad5   :  { %v1354_v3 = vpop.xlane.xlu1 %1353 }
 0xad6   :  { %v1363_v17 = vpop.xlane.xlu0 %1362  ;;  %3805 = vrcp.f32 %v1354_v3 }
 0xad7   :  { %3807 = vrcp.f32 %v1363_v17 }
 0xada   :  { %v1357_v25 = vpop.xlane.xlu0 %1356 }
 0xadb   :  { %3809 = vrcp.f32 %v1357_v25  ;;  %v1366_v26 = vpop.xlane.xlu1 %1365 }
 0xadc   :  { %3811 = vrcp.f32 %v1360_v16 }
 0xadd   :  { %3813 = vrcp.f32 %v1366_v26 }
 0xadf   :  { %v1372_v30 = vpop.xlane.xlu1 %1371 }
 0xae0   :  { %v1369_v27 = vpop.xlane.xlu0 %1368 }
 0xae1   :  { %3815 = vrcp.f32 %v1369_v27 }
 0xae2   :  { %3817 = vrcp.f32 %v1372_v30  ;;  %v1612_v30 = vld [vmem:[%s4865_s13 + $0x10] sm:$0xff] }
 0xae3   :  { %v3806_v31 = vpop.eup %3805 }
 0xae4   :  { %v3808_v33 = vpop.eup %3807  ;;  %v1374_v37 = vmul.f32 %v3806_v31, %v3794_v1  ;;  %v1613_v31 = vld [vmem:[%s4865_s13 + $0x18] sm:$0xff] }
 0xae5   :  { %v1380_v41 = vmul.f32 %v3808_v33, %v3796_v4  ;;  %v1617_v4 = vld [vmem:[%s4866_s14] sm:$0xff]  ;;  %v4579_v33 = vpack.c.bf16 %v1613_v31, %v1612_v30 }
 0xae8   :  { %v3810_v35 = vpop.eup %3809 }
 0xae9   :  { %v1376_v38 = vmul.f32 %v3810_v35, %v3798_v8  ;;  %v3812_v39 = vpop.eup %3811  ;;  %v1610_v35 = vld [vmem:[%s4865_s13] sm:$0xff] }
 0xaea   :  { %v3814_v19 = vpop.eup %3813  ;;  %v1378_v43 = vmul.f32 %v3812_v39, %v3792_v54  ;;  %v4546_v54 = vpack.c.bf16 %v1620_v59, %v1619_v58 }
 0xaeb   :  { %v1387_v40 = vpack.c.bf16 %v1376_v38, %v1374_v37  ;;  %v1382_v50 = vmul.f32 %v3814_v19, %v3800_v14  ;;  %v4557_v14 = vpack.c.bf16 %v1618_v11, %v1617_v4  ;;  %v1611_v37 = vld [vmem:[%s4865_s13 + $0x8] sm:$0xff]  ;;  %v543_v4 = vsel %vm533_vm9, %v4312_v53, -inf  ;;  %v1742_v11 = vld [vmem:[%s4868_s16 + $0x10] sm:$0xff] }
 0xaec   :  { %v1388_v21 = vpack.c.bf16 %v1380_v41, %v1378_v43  ;;  %v4589_v38 = vpack.c.bf16 %v1611_v37, %v1610_v35 }
 0xaed   :  { %1391 = vxpose.xlu0.c.b16.start [1/4] (short) (narrow) %v1387_v40, 16 }
 0xaee   :  { %v3816_v47 = vpop.eup %3815 }
 0xaef   :  { %v1384_v48 = vmul.f32 %v3816_v47, %v3804_v10  ;;  %v3818_v22 = vpop.eup %3817 }
 0xaf0   :  { %v1386_v55 = vmul.f32 %v3818_v22, %v3802_v18 }
 0xaf1   :  { %1392 = vxpose.xlu0.c.b16.cont [2/4] (short) (narrow) %v1388_v21, 16  ;;  %v1389_v51 = vpack.c.bf16 %v1384_v48, %v1382_v50 }
 0xaf2   :  { %v1390_v23 = vpack.c.bf16 %v1386_v55, %v1386_v55 }
 0xaf4   :  { %v1501_v57 = vsel %vm852_vm10, %v1390_v23, 0 }
 0xaf5   :  { %1393 = vxpose.xlu0.c.b16.cont [3/4] (short) (narrow) %v1389_v51, 16 }
 0xaf9   :  { %1394 = vxpose.xlu0.c.b16.end [4/4] (short) (narrow) %v1390_v23, 16 }
 0xb4f   :  { %v1399_v56 = vpop.trf.xlu0 }
 0xb50   :  { %3504 = vmatmul.mubr.msk.bf16.vlgmr.msra.gmra.mxu0 %vm533_vm9, %v1399_v56  ;;  %3516 = vmatmul.mubr.msk.bf16.vlgmr.msra.gmra.mxu1 %vm533_vm9, %v1399_v56 }
 0xb51   :  { %3520 = vmatpush3.bf16.msra.mxu0 %v1501_v57  ;;  %3527 = vmatprep.mubr.msk.bf16.mxu0 %vm4092_vm0, %v4091_v2  ;;  %v3188_v57 = vld [vmem:[#allocation15] ss:$0 sm:$0xff] }
 0xb52   :  { %3521 = vmatprep.subr.bf16.mxu0 %v4091_v2  ;;  %3533 = vmatprep.mubr.msk.bf16.mxu1 %vm4092_vm0, %v4091_v2 }
 0xb55   :  { %3522 = vmatpush3.bf16.msra.mxu0 %v1389_v51 }
 0xb56   :  { %3523 = vmatprep.subr.bf16.mxu0 %v4091_v2 }
 0xb59   :  { %3524 = vmatpush3.bf16.msra.mxu0 %v1388_v21 }
 0xb5a   :  { %3525 = vmatprep.subr.bf16.mxu0 %v4091_v2 }
 0xb5d   :  { %3526 = vmatpush3.bf16.msra.mxu0 %v1387_v40 }
 0xb5e   :  { %3537 = vmatprep.subr.bf16.mxu0 %v4091_v2 }
 0xc10   :  { %v1446_v36 = vpop.f32.mrf.mxu0  ;;  %v1489_v24 = vpop.f32.mrf.mxu1 }
 0xc12   :  { %v3505_v60 = vpop.f32.mrf.mxu0  ;;  %v3517_v61 = vpop.f32.mrf.mxu1 }
 0xc14   :  { %v1449_v62 = vpop.f32.mrf.mxu0  ;;  %v1492_v63 = vpop.f32.mrf.mxu1 }
 0xc15   :  { %v1545_v0 = vpack.c.bf16 %v1449_v62, %v1446_v36  ;;  %v1496_v1 = vpack.c.bf16 %v1492_v63, %v1489_v24 }
 0xc16   :  { %v3506_v7 = vpop.f32.mrf.mxu0  ;;  %v3518_v8 = vpop.f32.mrf.mxu1 }
 0xc17   :  { %v1554_v52 = vand.u32 %v4544_v42, %v1545_v0  ;;  %3528 = vmatmul.mubr.msk.bf16.vlgmr.msra.gmra.mxu0 %vm533_vm9, %v1496_v1  ;;  %v540_v1 = vsel %vm533_vm9, %v4310_v49, -inf  ;;  %v1743_v7 = vld [vmem:[%s4868_s16 + $0x18] sm:$0xff] }
 0xc18   :  { %3538 = vmatpush3.bf16.msra.mxu0 %v4546_v54  ;;  %3541 = vmatprep.mubr.msk.bf16.mxu0 %vm4092_vm0, %v4091_v2  ;;  %v4608_v8 = vpack.c.bf16 %v1743_v7, %v1742_v11 }
 0xc19   :  { %3532 = vmatpush3.bf16.msra.mxu1 %v1554_v52  ;;  %3539 = vmatprep.subr.bf16.mxu0 %v4091_v2  ;;  %v1740_v52 = vld [vmem:[%s4868_s16] sm:$0xff] }
 0xc1a   :  { %3545 = vmatprep.subr.bf16.mxu1 %v4091_v2 }
 0xc1c   :  { %3540 = vmatpush3.bf16.msra.mxu0 %v4557_v14 }
 0xc1d   :  { %3553 = vmatprep.subr.bf16.mxu0 %v4091_v2 }
 0xc1f   :  { %3542 = vmatmul.mubr.msk.bf16.vlgmr.msra.gmra.mxu0 %vm426_vm4, %v1545_v0 }
 0xc20   :  { %3557 = vmatprep.mubr.msk.bf16.mxu0 %vm4092_vm0, %v4091_v2  ;;  %3554 = vmatpush3.bf16.msra.mxu0 %v4608_v8 }
 0xc21   :  { %3555 = vmatprep.subr.bf16.mxu0 %v4091_v2 }
 0xcd7   :  { %v1537_v6 = vpop.f32.mrf.mxu0 }
 0xcd8   :  { %v1597_v18 = vsel %vm1308_vm7, %v1537_v6, 0.0 }
 0xcd9   :  { %1598 = vadd.xlane.f32.xlu1 %v1597_v18  ;;  %v3529_v10 = vpop.f32.mrf.mxu0 }
 0xcdb   :  { %v1540_v12 = vpop.f32.mrf.mxu0 }
 0xcdc   :  { %v1544_v13 = vpack.c.bf16 %v1540_v12, %v1537_v6  ;;  %v1601_v16 = vsel %vm1600_vm15, %v1540_v12, 0.0  ;;  %v1741_v6 = vld [vmem:[%s4868_s16 + $0x8] sm:$0xff] }
 0xcdd   :  { %1602 = vadd.xlane.f32.xlu1 %v1601_v16  ;;  %v3530_v17 = vpop.f32.mrf.mxu0  ;;  %v4617_v18 = vpack.c.bf16 %v1741_v6, %v1740_v52 }
 0xcde   :  { %3534 = vmatmul.mubr.msk.bf16.vlgmr.msra.gmra.mxu1 %vm1308_vm7, %v1544_v13 }
 0xcdf   :  { %v1659_v3 = vpop.f32.mrf.mxu0  ;;  %3549 = vmatprep.mubr.msk.bf16.mxu1 %vm4092_vm0, %v4091_v2  ;;  %3546 = vmatpush3.bf16.msra.mxu1 %v4579_v33 }
 0xce0   :  { %3547 = vmatprep.subr.bf16.mxu1 %v4091_v2  ;;  %3556 = vmatpush3.bf16.msra.mxu0 %v4617_v18 }
 0xce1   :  { %v3543_v25 = vpop.f32.mrf.mxu0 }
 0xce3   :  { %v1662_v26 = vpop.f32.mrf.mxu0  ;;  %3548 = vmatpush3.bf16.msra.mxu1 %v4589_v38 }
 0xce4   :  { %3561 = vmatprep.subr.bf16.mxu1 %v4091_v2 }
 0xce5   :  { %v3544_v27 = vpop.f32.mrf.mxu0 }
 0xd62   :  { %v1599_v39 = vpop.xlane.xlu1 %1598 }
 0xd63   :  { %v1604_v41 = vmax.f32 %v1599_v39, 1.0 }
 0xd65   :  { %3819 = vrcp.f32 %v1604_v41 }
 0xd66   :  { %v1603_v40 = vpop.xlane.xlu1 %1602 }
 0xd67   :  { %v1605_v19 = vmax.f32 %v1603_v40, 1.0 }
 0xd69   :  { %3821 = vrcp.f32 %v1605_v19 }
 0xd72   :  { %v3820_v21 = vpop.eup %3819 }
 0xd76   :  { %v3822_v48 = vpop.eup %3821 }
 0xd9e   :  { %v1590_v43 = vpop.f32.mrf.mxu1 }
 0xd9f   :  { %v1607_v50 = vmul.f32 %v3820_v21, %v1590_v43 }
 0xda0   :  { %v3535_v47 = vpop.f32.mrf.mxu1 }
 0xda2   :  { %v1593_v22 = vpop.f32.mrf.mxu1 }
 0xda3   :  { %v1609_v51 = vmul.f32 %v3822_v48, %v1593_v22  ;;  %v168_v22 = vld [vmem:[%s4892_s2 + $0x10] sm:$0xff] }
 0xda4   :  { %v3536_v55 = vpop.f32.mrf.mxu1 }
 0xda5   :  { %v1614_v23 = vpack.c.bf16 %v1609_v51, %v1607_v50  ;;  %v169_v50 = vld [vmem:[%s4892_s2 + $0x18] sm:$0xff]  ;;  %v1804_v51 = vld [vmem:[%s4870_s18] sm:$0xff]  ;;  %v1805_v55 = vld [vmem:[%s4870_s18 + $0x8] sm:$0xff] }
 0xda7   :  { %3550 = vmatmul.mubr.msk.bf16.vlgmr.msra.gmra.mxu1 %vm426_vm4, %v1614_v23  ;;  %v4638_v23 = vpack.c.bf16 %v1805_v55, %v1804_v51 }
 0xda8   :  { %3563 = vmatprep.mubr.msk.bf16.mxu1 %vm4092_vm0, %v4091_v2 }
 0xda9   :  { %3562 = vmatpush3.bf16.msra.mxu1 %v4638_v23 }
 0xdaa   :  { %3577 = vmatprep.subr.bf16.mxu1 %v4271_v15 }
 0xe67   :  { %v1703_v56 = vpop.f32.mrf.mxu1 }
 0xe68   :  { %v1704_v36 = vadd.f32 %v1703_v56, %v1659_v3 }
 0xe69   :  { %v3551_v24 = vpop.f32.mrf.mxu1 }
 0xe6a   :  { %v1717_v20 = vadd.f32 %v3188_v57, %v1704_v36 }
 0xe6b   :  { %v1706_v34 = vpop.f32.mrf.mxu1 }
 0xe6c   :  { %v1707_v58 = vadd.f32 %v1706_v34, %v1662_v26  ;;  %v1719_v59 = vmul.f32 %v1717_v20, %v1717_v20 }
 0xe6d   :  { %v3552_v60 = vpop.f32.mrf.mxu1 }
 0xe6e   :  { %v1718_v61 = vadd.f32 %v3188_v57, %v1707_v58  ;;  %v1721_v62 = vsel %vm426_vm4, %v1719_v59, 0.0 }
 0xe6f   :  { %1722 = vadd.xlane.f32.xlu1 %v1721_v62 }
 0xe70   :  { %v1720_v63 = vmul.f32 %v1718_v61, %v1718_v61 }
 0xe72   :  { %v1725_v0 = vsel %vm1724_vm2, %v1720_v63, 0.0 }
 0xe73   :  { %1726 = vadd.xlane.f32.xlu1 %v1725_v0 }
 0xe77   :  { %541 = vmax.xlane.f32.xlu1 %v540_v1 }
 0xe7b   :  { %544 = vmax.xlane.f32.xlu1 %v543_v4  ;;  %v3189_v4 = vld [vmem:[%s4869_s17] ss:$0 sm:$0xff] }
 0xef8   :  { %v1723_v10 = vpop.xlane.xlu1 %1722 }
 0xef9   :  { %v1728_v12 = vmax.f32 %v1723_v10, 1e-24 }
 0xefb   :  { %3823 = vrsqrt.f32 %v1728_v12 }
 0xefc   :  { %v1727_v13 = vpop.xlane.xlu1 %1726 }
 0xefd   :  { %v1729_v16 = vmax.f32 %v1727_v13, 1e-24 }
 0xeff   :  { %3825 = vrsqrt.f32 %v1729_v16 }
 0xf00   :  { %v542_v17 = vpop.xlane.xlu1 %541 }
 0xf01   :  { %v548_v3 = vsub.f32 %v4310_v49, %v542_v17 }
 0xf03   :  { %v554_v25 = vmul.f32 1.442695, %v548_v3 }
 0xf04   :  { %v545_v26 = vpop.xlane.xlu1 %544 }
 0xf05   :  { %3827 = vpow2.f32 %v554_v25  ;;  %v549_v27 = vsub.f32 %v4312_v53, %v545_v26 }
 0xf07   :  { %v556_v30 = vmul.f32 1.442695, %v549_v27 }
 0xf08   :  { %v3824_v31 = vpop.eup %3823 }
 0xf09   :  { %v1732_v35 = vmul.f32 %v3824_v31, %v1717_v20  ;;  %3829 = vpow2.f32 %v556_v30 }
 0xf0b   :  { %v1736_v40 = vmul.f32 0.01, %v1732_v35  ;;  %vm1734_vm3 = vcmp.ge.f32.partialorder %v1732_v35, 0.0 }
 0xf0c   :  { %v3826_v37 = vpop.eup %3825 }
 0xf0d   :  { %v1733_v39 = vmul.f32 %v3826_v37, %v1718_v61  ;;  %v1738_v19 = vsel %vm1734_vm3, %v1732_v35, %v1736_v40 }
 0xf0f   :  { %vm1735_vm5 = vcmp.ge.f32.partialorder %v1733_v39, 0.0  ;;  %v1737_v41 = vmul.f32 0.01, %v1733_v39 }
 0xf11   :  { %v1739_v43 = vsel %vm1735_vm5, %v1733_v39, %v1737_v41  ;;  %v1865_v41 = vld [vmem:[%s4872_s20] sm:$0xff]  ;;  %vm1869_vm5 = vcmask 7168  }
 0xf12   :  { %v3828_v47 = vpop.eup %3827  ;;  %v1744_v21 = vpack.c.bf16 %v1739_v43, %v1738_v19 }
 0xf13   :  { %v564_v49 = vsel %vm533_vm9, %v3828_v47, 0.0 }
 0xf14   :  { %3558 = vmatmul.mubr.msk.bf16.vlgmr.msra.gmra.mxu0 %vm426_vm4, %v1744_v21  ;;  %565 = vadd.xlane.f32.xlu1 %v564_v49  ;;  %v1866_v21 = vld [vmem:[%s4872_s20 + $0x8] sm:$0x7f] }
 0xf16   :  { %v3830_v53 = vpop.eup %3829 }
 0xf17   :  { %v567_v48 = vsel %vm533_vm9, %v3830_v53, 0.0 }
 0xf18   :  { %568 = vadd.xlane.f32.xlu1 %v567_v48 }
 0xf29   :  { %1898 = vperm.xlu1 %3738, %v168_v22  }
 0xf2d   :  { %1903 = vperm.xlu1 %3738, %v169_v50  }
 0xf9d   :  { %v566_v56 = vpop.xlane.xlu1 %565 }
 0xf9e   :  { %3831 = vrcp.f32 %v566_v56 }
 0xfa1   :  { %v569_v57 = vpop.xlane.xlu1 %568 }
 0xfa2   :  { %3833 = vrcp.f32 %v569_v57 }
 0xfa5   :  { %v1899_v36 = vpop.permute.xlu1 %1898 }
 0xfa6   :  { %v1906_v20 = vmul.f32 %v1899_v36, %v4302_v44 }
 0xfa9   :  { %v1904_v24 = vpop.permute.xlu1 %1903 }
 0xfaa   :  { %v1907_v34 = vmul.f32 %v1904_v24, %v4304_v45 }
 0xfab   :  { %v3832_v58 = vpop.eup %3831 }
 0xfac   :  { %v1911_v59 = vpack.c.bf16 %v1907_v34, %v1906_v20  ;;  %v575_v60 = vmul.f32 %v3832_v58, %v3828_v47 }
 0xfae   :  { %3567 = vmatprep.subr.bf16.mxu0 %v1911_v59  ;;  %v1908_v63 = vmul.f32 %v1899_v36, %v575_v60 }
 0xfaf   :  { %v3834_v61 = vpop.eup %3833  ;;  %3568 = vmatpush3.bf16.msra.mxu0 %v1911_v59 }
 0xfb0   :  { %v577_v62 = vmul.f32 %v3834_v61, %v3830_v53 }
 0xfb2   :  { %v1909_v0 = vmul.f32 %v1904_v24, %v577_v62 }
 0xfb4   :  { %v1910_v1 = vpack.c.bf16 %v1909_v0, %v1908_v63 }
 0xfb6   :  { %1912 = vxpose.xlu1.c.b16.start.end [1/1] (short) (narrow) %v1910_v1, 64  ;;  %3587 = vmatprep.subr.bf16.mxu0 %v1910_v1 }
 0xfd4   :  { %v1791_v11 = vpop.f32.mrf.mxu0 }
 0xfd5   :  { %v1792_v44 = vadd.f32 %v3189_v4, %v1791_v11 }
 0xfd6   :  { %v3559_v7 = vpop.f32.mrf.mxu0 }
 0xfd7   :  { %v1800_v52 = vmul.f32 0.01, %v1792_v44  ;;  %vm1798_vm6 = vcmp.ge.f32.partialorder %v1792_v44, 0.0 }
 0xfd8   :  { %v1794_v45 = vpop.f32.mrf.mxu0 }
 0xfd9   :  { %v1795_v6 = vadd.f32 %v3189_v4, %v1794_v45  ;;  %v1802_v13 = vsel %vm1798_vm6, %v1792_v44, %v1800_v52  ;;  %vm1871_vm6 = vcmask 6144  }
 0xfda   :  { %v3560_v10 = vpop.f32.mrf.mxu0 }
 0xfdb   :  { %vm1799_vm13 = vcmp.ge.f32.partialorder %v1795_v6, 0.0  ;;  %v1801_v12 = vmul.f32 0.01, %v1795_v6 }
 0xfdd   :  { %v1803_v16 = vsel %vm1799_vm13, %v1795_v6, %v1801_v12 }
 0xfde   :  { %v1806_v17 = vpack.c.bf16 %v1803_v16, %v1802_v13 }
 0xfe0   :  { %3564 = vmatmul.mubr.msk.bf16.vlgmr.msra.gmra.mxu1 %vm174_vm1, %v1806_v17 }
 0xfe1   :  { %3578 = vmatpush3.bf16.msra.mxu1 %v4271_v15  ;;  %v3191_v15 = vld [vmem:[#allocation2] ss:$0 sm:$0xff] }
0x1018   :  { %v1920_v3 = vpop.trf.xlu1 }
0x1019   :  { %3569 = vmatprep.mubr.msk.bf16.mxu0 %vm174_vm1, %v1920_v3  ;;  %3579 = vmatprep.mubr.msk.bf16.mxu1 %vm174_vm1, %v1920_v3 }
0x101c   :  { %v1921_v25 = vpop.trf.xlu1 }
0x101d   :  { %3570 = vmatmul.mubr.msk.bf16.vlgmr.msra.gmra.mxu0 %vm174_vm1, %v1921_v25  ;;  %3580 = vmatmul.mubr.msk.bf16.vlgmr.msra.gmra.mxu1 %vm174_vm1, %v1921_v25 }
0x101e   :  { %3588 = vmatpush3.bf16.msra.mxu0 %v1910_v1 }
0x101f   :  { %3613 = vmatprep.subr.bf16.mxu0 %v4338_v29 }
0x1020   :  { %v1922_v26 = vpop.trf.xlu1 }
0x1021   :  { %3573 = vmatprep.mubr.msk.bf16.mxu0 %vm174_vm1, %v1922_v26  ;;  %3583 = vmatprep.mubr.msk.bf16.mxu1 %vm174_vm1, %v1922_v26 }
0x1024   :  { %v1923_v27 = vpop.trf.xlu1 }
0x1025   :  { %3574 = vmatmul.mubr.msk.bf16.gmra.mxu0 %vm174_vm1, %v1923_v27  ;;  %3584 = vmatmul.mubr.msk.bf16.gmra.mxu1 %vm174_vm1, %v1923_v27 }
0x10a0   :  { %v1852_v30 = vpop.f32.mrf.mxu1 }
0x10a1   :  { %v1853_v31 = vadd.f32 %v3191_v15, %v1852_v30 }
0x10a2   :  { %v3565_v35 = vpop.f32.mrf.mxu1 }
0x10a3   :  { %vm1859_vm14 = vcmp.ge.f32.partialorder %v1853_v31, 0.0  ;;  %v1861_v37 = vmul.f32 0.01, %v1853_v31 }
0x10a4   :  { %v1855_v39 = vpop.f32.mrf.mxu1 }
0x10a5   :  { %v1863_v40 = vsel %vm1859_vm14, %v1853_v31, %v1861_v37  ;;  %v1856_v19 = vadd.f32 %v3191_v15, %v1855_v39 }
0x10a6   :  { %v3566_v43 = vpop.f32.mrf.mxu1  ;;  %v1867_v49 = vmul.f32 %v1865_v41, %v1863_v40 }
0x10a7   :  { %vm1860_vm3 = vcmp.ge.f32.partialorder %v1856_v19, 0.0  ;;  %v1862_v47 = vmul.f32 0.01, %v1856_v19 }
0x10a8   :  { %v1870_v22 = vsel %vm1869_vm5, %v1867_v49, 0.0 }
0x10a9   :  { %v1864_v53 = vsel %vm1860_vm3, %v1856_v19, %v1862_v47 }
0x10aa   :  { %v1868_v48 = vmul.f32 %v1866_v21, %v1864_v53 }
0x10ac   :  { %v1872_v50 = vsel %vm1871_vm6, %v1868_v48, 0.0 }
0x10ad   :  { %v4666_v51 = vadd.f32 %v1872_v50, %v1870_v22 }
0x10dd   :  { %v3571_v55 = vpop.f32.mrf.mxu0  ;;  %v3581_v56 = vpop.f32.mrf.mxu1 }
0x10df   :  { %v1974_v57 = vpop.f32.mrf.mxu0  ;;  %v2038_v36 = vpop.f32.mrf.mxu1 }
0x10e1   :  { %v3572_v24 = vpop.f32.mrf.mxu0  ;;  %v3582_v20 = vpop.f32.mrf.mxu1 }
0x10e2   :  { %v2069_v60 = vpack.c.bf16 %v3582_v20, %v3581_v56  ;;  %v2153_v12 = vpack.c.bf16 %v3572_v24, %v3571_v55 }
0x10e3   :  { %v1977_v34 = vpop.f32.mrf.mxu0  ;;  %v2041_v58 = vpop.f32.mrf.mxu1 }
0x10e4   :  { %v2068_v59 = vpack.c.bf16 %v2041_v58, %v2038_v36  ;;  %v2152_v13 = vpack.c.bf16 %v1977_v34, %v1974_v57 }
0x10e5   :  { %v3575_v61 = vpop.f32.mrf.mxu0  ;;  %v3585_v62 = vpop.f32.mrf.mxu1 }
0x10e6   :  { %v2155_v63 = vpack.c.bf16 %v3575_v61, %v3575_v61  ;;  %3589 = vmatprep.mubr.msk.bf16.mxu0 %vm174_vm1, %v2068_v59  ;;  %v2071_v10 = vpack.c.bf16 %v3585_v62, %v3585_v62 }
0x10e7   :  { %v1990_v0 = vpop.f32.mrf.mxu0  ;;  %v2054_v1 = vpop.f32.mrf.mxu1  ;;  %3590 = vmatmul.mubr.msk.bf16.vlgmr.msra.gmra.mxu0 %vm174_vm1, %v2069_v60 }
0x10e8   :  { %3724 = vmatprep.subr.msk.bf16.mxu1 %vm852_vm10, %v2155_v63  ;;  %v2169_v4 = vsel %vm852_vm10, %v2155_v63, 0  ;;  %3614 = vmatpush3.bf16.msra.mxu0 %v4338_v29 }
0x10e9   :  { %v3576_v11 = vpop.f32.mrf.mxu0  ;;  %v3586_v44 = vpop.f32.mrf.mxu1  ;;  %3598 = vmatpush3.bf16.msra.mxu1 %v2169_v4  ;;  %3615 = vmatprep.subr.bf16.mxu0 %v4347_v46 }
0x10eb   :  { %v1993_v7 = vpop.f32.mrf.mxu0  ;;  %v2057_v45 = vpop.f32.mrf.mxu1 }
0x10ec   :  { %v2154_v52 = vpack.c.bf16 %v1993_v7, %v1990_v0  ;;  %v2070_v6 = vpack.c.bf16 %v2057_v45, %v2054_v1  ;;  %3616 = vmatpush3.bf16.msra.mxu0 %v4347_v46 }
0x10ed   :  { %3637 = vmatprep.subr.bf16.mxu0 %v4471_v5 }
0x10ee   :  { %3593 = vmatprep.mubr.msk.bf16.mxu0 %vm174_vm1, %v2070_v6  ;;  %3599 = vmatprep.subr.bf16.mxu1 %v2154_v52 }
0x10ef   :  { %3594 = vmatmul.mubr.msk.bf16.gmra.mxu0 %vm174_vm1, %v2071_v10  ;;  %3600 = vmatpush3.bf16.msra.mxu1 %v2154_v52 }
0x10f0   :  { %3601 = vmatprep.subr.bf16.mxu1 %v2153_v12  ;;  %3617 = vmatprep.mubr.msk.bf16.mxu0 %vm426_vm4, %v2152_v13 }
0x10f3   :  { %3602 = vmatpush3.bf16.msra.mxu1 %v2153_v12 }
0x10f4   :  { %3603 = vmatprep.subr.bf16.mxu1 %v2152_v13 }
0x10f7   :  { %3604 = vmatpush3.bf16.msra.mxu1 %v2152_v13  ;;  %3618 = vmatmul.mubr.msk.bf16.vlgmr.msra.gmra.mxu0 %vm426_vm4, %v2153_v12 }
0x10f8   :  { %3621 = vmatprep.mubr.msk.bf16.mxu0 %vm426_vm4, %v2154_v52  ;;  %3625 = vmatprep.subr.bf16.mxu1 %v4403_v28 }
0x10f9   :  { %3638 = vmatpush3.bf16.msra.mxu0 %v4471_v5 }
0x10fa   :  { %3639 = vmatprep.subr.bf16.mxu0 %v4481_v9 }
0x10fd   :  { %3640 = vmatpush3.bf16.msra.mxu0 %v4481_v9 }
0x10fe   :  { %3661 = vmatprep.subr.bf16.mxu0 %v4091_v2 }
0x10ff   :  { %3622 = vmatmul.mubr.msk.bf16.gmra.mxu0 %vm426_vm4, %v2155_v63 }
0x11a7   :  { %v3591_v29 = vpop.f32.mrf.mxu0 }
0x11a8   :  { %v2241_v46 = vsel %vm533_vm9, %v3591_v29, 0.0 }
0x11a9   :  { %2242 = vadd.xlane.f32.xlu0 %v2241_v46  ;;  %v2118_v16 = vpop.f32.mrf.mxu0 }
0x11aa   :  { %v2235_v3 = vsel %vm533_vm9, %v2118_v16, 0.0 }
0x11ab   :  { %v3592_v17 = vpop.f32.mrf.mxu0 }
0x11ac   :  { %v4691_v5 = vpack.c.bf16 %v3592_v17, %v3591_v29  ;;  %v2244_v9 = vsel %vm533_vm9, %v3592_v17, 0.0 }
0x11ad   :  { %2236 = vadd.xlane.f32.xlu0 %v2235_v3  ;;  %v2121_v25 = vpop.f32.mrf.mxu0 }
0x11ae   :  { %v4689_v26 = vpack.c.bf16 %v2121_v25, %v2118_v16  ;;  %v2238_v31 = vsel %vm533_vm9, %v2121_v25, 0.0 }
0x11af   :  { %v3595_v27 = vpop.f32.mrf.mxu0 }
0x11b0   :  { %3605 = vmatprep.mubr.msk.bf16.mxu1 %vm533_vm9, %v4689_v26  ;;  %v4704_v39 = vpack.c.bf16 %v3595_v27, %v3595_v27  ;;  %v2253_v21 = vsel %vm938_vm11, %v3595_v27, 0.0 }
0x11b1   :  { %2245 = vadd.xlane.f32.xlu0 %v2244_v9  ;;  %v2134_v15 = vpop.f32.mrf.mxu0  ;;  %3606 = vmatmul.mubr.msk.bf16.vlgmr.msra.gmra.mxu1 %vm533_vm9, %v4691_v5 }
0x11b2   :  { %3626 = vmatpush3.bf16.msra.mxu1 %v4403_v28  ;;  %v2247_v28 = vsel %vm533_vm9, %v2134_v15, 0.0 }
0x11b3   :  { %v3596_v30 = vpop.f32.mrf.mxu0  ;;  %3627 = vmatprep.subr.bf16.mxu1 %v4413_v32 }
0x11b5   :  { %2239 = vadd.xlane.f32.xlu0 %v2238_v31  ;;  %v2137_v35 = vpop.f32.mrf.mxu0 }
0x11b6   :  { %v4701_v37 = vpack.c.bf16 %v2137_v35, %v2134_v15  ;;  %3628 = vmatpush3.bf16.msra.mxu1 %v4413_v32  ;;  %v2250_v32 = vsel %vm533_vm9, %v2137_v35, 0.0 }
0x11b7   :  { %v4706_v40 = vpop.f32.mrf.mxu0  ;;  %3649 = vmatprep.subr.bf16.mxu1 %v4091_v2 }
0x11b8   :  { %3609 = vmatprep.mubr.msk.bf16.mxu1 %vm533_vm9, %v4701_v37 }
0x11b9   :  { %2248 = vadd.xlane.f32.xlu0 %v2247_v28  ;;  %3610 = vmatmul.mubr.msk.bf16.gmra.mxu1 %vm533_vm9, %v4704_v39  ;;  %v4714_v41 = vpop.f32.mrf.mxu0 }
0x11bb   :  { %v4716_v19 = vpop.f32.mrf.mxu0 }
0x11bd   :  { %v4719_v43 = vpop.f32.mrf.mxu0  ;;  %2251 = vadd.xlane.f32.xlu0 %v2250_v32 }
0x11bf   :  { %v4721_v47 = vpop.f32.mrf.mxu0 }
0x11c1   :  { %v4724_v49 = vpop.f32.mrf.mxu0  ;;  %2254 = vadd.xlane.f32.xlu0 %v2253_v21 }
0x11c3   :  { %v3624_v53 = vpop.f32.mrf.mxu0 }
0x11c4   :  { %v3907_v53 = vld [vmem:[#allocation12] ss:$0 sm:$0xff] }
0x1232   :  { %v2243_v48 = vpop.xlane.xlu0 %2242 }
0x1233   :  { %v2258_v34 = vmax.f32 %v2243_v48, 1.0 }
0x1236   :  { %v2237_v22 = vpop.xlane.xlu0 %2236 }
0x1237   :  { %v2256_v57 = vmax.f32 %v2237_v22, 1.0 }
0x1239   :  { %3835 = vrcp.f32 %v2256_v57 }
0x123a   :  { %v2246_v50 = vpop.xlane.xlu0 %2245 }
0x123b   :  { %v2259_v24 = vmax.f32 %v2246_v50, 1.0 }
0x123d   :  { %3837 = vrcp.f32 %v2259_v24 }
0x123e   :  { %v2240_v55 = vpop.xlane.xlu0 %2239 }
0x123f   :  { %v2257_v20 = vmax.f32 %v2240_v55, 1.0 }
0x1241   :  { %3839 = vrcp.f32 %v2257_v20 }
0x1242   :  { %v2249_v56 = vpop.xlane.xlu0 %2248  ;;  %3841 = vrcp.f32 %v2258_v34 }
0x1243   :  { %v2260_v59 = vmax.f32 %v2249_v56, 1.0 }
0x1245   :  { %3843 = vrcp.f32 %v2260_v59 }
0x1246   :  { %v2252_v36 = vpop.xlane.xlu0 %2251  ;;  %v3836_v0 = vpop.eup %3835 }
0x1247   :  { %v2261_v61 = vmax.f32 %v2252_v36, 1.0 }
0x124a   :  { %v2255_v58 = vpop.xlane.xlu0 %2254  ;;  %v3838_v4 = vpop.eup %3837 }
0x124b   :  { %v2262_v60 = vmax.f32 %v2255_v58, 1.0 }
0x124d   :  { %3845 = vrcp.f32 %v2262_v60 }
0x124e   :  { %3847 = vrcp.f32 %v2261_v61  ;;  %v3840_v11 = vpop.eup %3839 }
0x124f   :  { %v3842_v45 = vpop.eup %3841 }
0x1252   :  { %v3844_v16 = vpop.eup %3843 }
0x125a   :  { %v3846_v3 = vpop.eup %3845 }
0x125b   :  { %v3848_v25 = vpop.eup %3847 }
0x1271   :  { %v3607_v62 = vpop.f32.mrf.mxu1 }
0x1272   :  { %v2268_v10 = vmul.f32 %v3842_v45, %v3607_v62 }
0x1273   :  { %v2205_v63 = vpop.f32.mrf.mxu1 }
0x1274   :  { %v2264_v52 = vmul.f32 %v3836_v0, %v2205_v63 }
0x1275   :  { %v3608_v1 = vpop.f32.mrf.mxu1 }
0x1276   :  { %v2270_v44 = vmul.f32 %v3838_v4, %v3608_v1 }
0x1277   :  { %v2208_v7 = vpop.f32.mrf.mxu1 }
0x1278   :  { %v2266_v6 = vmul.f32 %v3840_v11, %v2208_v7  ;;  %v2278_v29 = vpack.c.bf16 %v2270_v44, %v2268_v10 }
0x1279   :  { %v3611_v12 = vpop.f32.mrf.mxu1 }
0x127a   :  { %v2277_v13 = vpack.c.bf16 %v2266_v6, %v2264_v52  ;;  %v2276_v27 = vmul.f32 %v3846_v3, %v3611_v12 }
0x127b   :  { %v2221_v46 = vpop.f32.mrf.mxu1 }
0x127c   :  { %3629 = vmatprep.mubr.msk.bf16.mxu1 %vm426_vm4, %v2277_v13  ;;  %v2272_v15 = vmul.f32 %v3844_v16, %v2221_v46  ;;  %v2280_v35 = vpack.c.bf16 %v2276_v27, %v2276_v27 }
0x127d   :  { %v3612_v17 = vpop.f32.mrf.mxu1  ;;  %3630 = vmatmul.mubr.msk.bf16.vlgmr.msra.gmra.mxu1 %vm426_vm4, %v2278_v29 }
0x127f   :  { %v2224_v9 = vpop.f32.mrf.mxu1 }
0x1280   :  { %v2274_v30 = vmul.f32 %v3848_v25, %v2224_v9 }
0x1282   :  { %v2279_v31 = vpack.c.bf16 %v2274_v30, %v2272_v15 }
0x1284   :  { %3633 = vmatprep.mubr.msk.bf16.mxu1 %vm426_vm4, %v2279_v31 }
0x1285   :  { %3634 = vmatmul.mubr.msk.bf16.gmra.mxu1 %vm426_vm4, %v2280_v35 }
0x1286   :  { %3657 = vmatprep.mubr.msk.bf16.mxu1 %vm4092_vm0, %v4091_v2 }
0x133d   :  { %v3631_v28 = vpop.f32.mrf.mxu1 }
0x133e   :  { %v2411_v32 = vadd.f32 %v3631_v28, %v4706_v40 }
0x133f   :  { %v2402_v21 = vpop.f32.mrf.mxu1 }
0x1340   :  { %v4733_v48 = vadd.f32 %v3907_v53, %v2411_v32  ;;  %v2403_v22 = vadd.f32 %v2402_v21, %v4714_v41 }
0x1341   :  { %v3632_v50 = vpop.f32.mrf.mxu1 }
0x1342   :  { %v2432_v55 = vadd.f32 %v3907_v53, %v2403_v22  ;;  %v2414_v56 = vadd.f32 %v3632_v50, %v4716_v19  ;;  %v2441_v57 = vmul.f32 %v4733_v48, %v4733_v48 }
0x1343   :  { %v2405_v36 = vpop.f32.mrf.mxu1 }
0x1344   :  { %v2435_v24 = vadd.f32 %v3907_v53, %v2414_v56  ;;  %v2406_v20 = vadd.f32 %v2405_v36, %v4719_v43  ;;  %v2452_v34 = vsel %vm426_vm4, %v2441_v57, 0.0  ;;  %v2439_v40 = vmul.f32 %v2432_v55, %v2432_v55  ;;  %v2345_v43 = vpop.f32.mrf.mxu0 }
0x1345   :  { %2453 = vadd.xlane.f32.xlu0 %v2452_v34  ;;  %v3635_v58 = vpop.f32.mrf.mxu1 }
0x1346   :  { %v2433_v59 = vadd.f32 %v3907_v53, %v2406_v20  ;;  %v2446_v60 = vsel %vm426_vm4, %v2439_v40, 0.0  ;;  %v2442_v41 = vmul.f32 %v2435_v24, %v2435_v24  ;;  %v2427_v11 = vadd.f32 %v3635_v58, %v4721_v47 }
0x1347   :  { %2447 = vadd.xlane.f32.xlu1 %v2446_v60  ;;  %v2418_v61 = vpop.f32.mrf.mxu1 }
0x1348   :  { %v2419_v19 = vadd.f32 %v2418_v61, %v4724_v49  ;;  %v2455_v62 = vsel %vm426_vm4, %v2442_v41, 0.0  ;;  %v2440_v63 = vmul.f32 %v2433_v59, %v2433_v59  ;;  %v4746_v6 = vadd.f32 %v3907_v53, %v2427_v11 }
0x1349   :  { %2456 = vadd.xlane.f32.xlu0 %v2455_v62  ;;  %v3636_v0 = vpop.f32.mrf.mxu1 }
0x134a   :  { %v2436_v1 = vadd.f32 %v3907_v53, %v2419_v19  ;;  %v2449_v7 = vsel %vm426_vm4, %v2440_v63, 0.0  ;;  %v2445_v13 = vmul.f32 %v4746_v6, %v4746_v6 }
0x134b   :  { %v2421_v4 = vpop.f32.mrf.mxu1 }
0x134c   :  { %v2422_v44 = vadd.f32 %v2421_v4, %v2345_v43  ;;  %v2443_v45 = vmul.f32 %v2436_v1, %v2436_v1  ;;  %v2464_v47 = vsel %vm1169_vm12, %v2445_v13, 0.0 }
0x134d   :  { %2450 = vadd.xlane.f32.xlu0 %v2449_v7 }
0x134e   :  { %v2437_v52 = vadd.f32 %v3907_v53, %v2422_v44  ;;  %v2458_v49 = vsel %vm426_vm4, %v2443_v45, 0.0 }
0x1350   :  { %v2444_v10 = vmul.f32 %v2437_v52, %v2437_v52 }
0x1351   :  { %2459 = vadd.xlane.f32.xlu0 %v2458_v49 }
0x1352   :  { %v2461_v12 = vsel %vm426_vm4, %v2444_v10, 0.0 }
0x1355   :  { %2462 = vadd.xlane.f32.xlu0 %v2461_v12 }
0x1359   :  { %2465 = vadd.xlane.f32.xlu0 %v2464_v47 }
0x13ce   :  { %v2454_v29 = vpop.xlane.xlu0 %2453 }
0x13cf   :  { %v2469_v46 = vmax.f32 %v2454_v29, 1e-24 }
0x13d0   :  { %v2448_v16 = vpop.xlane.xlu1 %2447 }
0x13d1   :  { %v2467_v17 = vmax.f32 %v2448_v16, 1e-24 }
0x13d2   :  { %v2457_v3 = vpop.xlane.xlu0 %2456 }
0x13d3   :  { %3849 = vrsqrt.f32 %v2467_v17  ;;  %v2470_v25 = vmax.f32 %v2457_v3, 1e-24 }
0x13d4   :  { %3851 = vrsqrt.f32 %v2469_v46 }
0x13d5   :  { %3853 = vrsqrt.f32 %v2470_v25 }
0x13d6   :  { %v2451_v27 = vpop.xlane.xlu0 %2450 }
0x13d7   :  { %v2468_v9 = vmax.f32 %v2451_v27, 1e-24 }
0x13d9   :  { %3855 = vrsqrt.f32 %v2468_v9 }
0x13da   :  { %v2460_v15 = vpop.xlane.xlu0 %2459 }
0x13db   :  { %v2471_v30 = vmax.f32 %v2460_v15, 1e-24 }
0x13dd   :  { %3857 = vrsqrt.f32 %v2471_v30 }
0x13de   :  { %v2463_v31 = vpop.xlane.xlu0 %2462 }
0x13df   :  { %v2472_v35 = vmax.f32 %v2463_v31, 1e-24 }
0x13e0   :  { %v3850_v28 = vpop.eup %3849 }
0x13e1   :  { %v3852_v32 = vpop.eup %3851  ;;  %3859 = vrsqrt.f32 %v2472_v35  ;;  %v2481_v56 = vmul.f32 %v3850_v28, %v2432_v55 }
0x13e2   :  { %v3854_v21 = vpop.eup %3853  ;;  %v2466_v53 = vpop.xlane.xlu0 %2465  ;;  %v2483_v57 = vmul.f32 %v3852_v32, %v4733_v48 }
0x13e3   :  { %v2484_v22 = vmul.f32 %v3854_v21, %v2435_v24  ;;  %v2473_v50 = vmax.f32 %v2466_v53, 1e-24  ;;  %v2495_v40 = vmul.f32 0.01, %v2481_v56  ;;  %vm2488_vm12 = vcmp.ge.f32.partialorder %v2481_v56, 0.0 }
0x13e4   :  { %v2497_v58 = vmul.f32 0.01, %v2483_v57  ;;  %vm2490_vm13 = vcmp.ge.f32.partialorder %v2483_v57, 0.0 }
0x13e5   :  { %3861 = vrsqrt.f32 %v2473_v50  ;;  %v2498_v20 = vmul.f32 0.01, %v2484_v22  ;;  %vm2491_vm11 = vcmp.ge.f32.partialorder %v2484_v22, 0.0  ;;  %v2502_v19 = vsel %vm2488_vm12, %v2481_v56, %v2495_v40 }
0x13e6   :  { %v3856_v36 = vpop.eup %3855  ;;  %v2504_v55 = vsel %vm2490_vm13, %v2483_v57, %v2497_v58 }
0x13e7   :  { %v2482_v34 = vmul.f32 %v3856_v36, %v2433_v59  ;;  %v2505_v61 = vsel %vm2491_vm11, %v2484_v22, %v2498_v20  ;;  %v2732_v59 = vsel %vm852_vm10, %v4704_v39, 0 }
0x13e8   :  { %v2510_v0 = vpack.c.bf16 %v2505_v61, %v2504_v55 }
0x13e9   :  { %vm2489_vm14 = vcmp.ge.f32.partialorder %v2482_v34, 0.0  ;;  %v2496_v60 = vmul.f32 0.01, %v2482_v34 }
0x13ea   :  { %v3858_v41 = vpop.eup %3857 }
0x13eb   :  { %v2503_v62 = vsel %vm2489_vm14, %v2482_v34, %v2496_v60  ;;  %v2485_v24 = vmul.f32 %v3858_v41, %v2436_v1 }
0x13ec   :  { %v2509_v63 = vpack.c.bf16 %v2503_v62, %v2502_v19 }
0x13ed   :  { %v2499_v4 = vmul.f32 0.01, %v2485_v24  ;;  %vm2492_vm3 = vcmp.ge.f32.partialorder %v2485_v24, 0.0 }
0x13ee   :  { %v3860_v48 = vpop.eup %3859  ;;  %3641 = vmatprep.mubr.msk.bf16.mxu0 %vm426_vm4, %v2509_v63 }
0x13ef   :  { %3642 = vmatmul.mubr.msk.bf16.vlgmr.msra.gmra.mxu0 %vm426_vm4, %v2510_v0  ;;  %v2486_v43 = vmul.f32 %v3860_v48, %v2437_v52  ;;  %v2506_v44 = vsel %vm2492_vm3, %v2485_v24, %v2499_v4 }
0x13f0   :  { %3662 = vmatpush3.bf16.msra.mxu0 %v2732_v59 }
0x13f1   :  { %3663 = vmatprep.subr.bf16.mxu0 %v4091_v2  ;;  %vm2493_vm11 = vcmp.ge.f32.partialorder %v2486_v43, 0.0  ;;  %v2500_v11 = vmul.f32 0.01, %v2486_v43 }
0x13f2   :  { %v3862_v1 = vpop.eup %3861 }
0x13f3   :  { %v2507_v7 = vsel %vm2493_vm11, %v2486_v43, %v2500_v11  ;;  %v2487_v45 = vmul.f32 %v3862_v1, %v4746_v6 }
0x13f4   :  { %3664 = vmatpush3.bf16.msra.mxu0 %v4701_v37  ;;  %v2511_v49 = vpack.c.bf16 %v2507_v7, %v2506_v44  ;;  %v3908_v37 = vld [vmem:[#allocation13] ss:$0 sm:$0xff] }
0x13f5   :  { %3665 = vmatprep.subr.bf16.mxu0 %v4091_v2  ;;  %vm2494_vm12 = vcmp.ge.f32.partialorder %v2487_v45, 0.0  ;;  %v2501_v39 = vmul.f32 0.01, %v2487_v45 }
0x13f6   :  { %3645 = vmatprep.mubr.msk.bf16.mxu0 %vm426_vm4, %v2511_v49 }
0x13f7   :  { %v2508_v52 = vsel %vm2494_vm12, %v2487_v45, %v2501_v39 }
0x13f8   :  { %3666 = vmatpush3.bf16.msra.mxu0 %v4691_v5  ;;  %v2512_v10 = vpack.c.bf16 %v2508_v52, %v2508_v52 }
0x13f9   :  { %3667 = vmatprep.subr.bf16.mxu0 %v4091_v2 }
0x13fa   :  { %3646 = vmatmul.mubr.msk.bf16.gmra.mxu0 %vm426_vm4, %v2512_v10  ;;  %v2689_v12 = vsel %vm852_vm10, %v2512_v10, 0 }
0x13fb   :  { %3650 = vmatpush3.bf16.msra.mxu1 %v2689_v12  ;;  %3669 = vmatprep.mubr.msk.bf16.mxu0 %vm4092_vm0, %v4091_v2 }
0x13fc   :  { %3668 = vmatpush3.bf16.msra.mxu0 %v4689_v26  ;;  %3651 = vmatprep.subr.bf16.mxu1 %v4091_v2 }
0x13fd   :  { %3685 = vmatprep.subr.bf16.mxu0 %v4091_v2 }
0x13ff   :  { %3652 = vmatpush3.bf16.msra.mxu1 %v2511_v49 }
0x1400   :  { %3653 = vmatprep.subr.bf16.mxu1 %v4091_v2 }
0x1403   :  { %3654 = vmatpush3.bf16.msra.mxu1 %v2510_v0 }
0x1404   :  { %3655 = vmatprep.subr.bf16.mxu1 %v4091_v2 }
0x1407   :  { %3656 = vmatpush3.bf16.msra.mxu1 %v2509_v63 }
0x1408   :  { %3673 = vmatprep.subr.bf16.mxu1 %v4091_v2 }
0x14af   :  { %v3643_v5 = vpop.f32.mrf.mxu0 }
0x14b0   :  { %v2568_v6 = vadd.f32 %v3908_v37, %v3643_v5 }
0x14b1   :  { %v2559_v13 = vpop.f32.mrf.mxu0 }
0x14b2   :  { %v2560_v47 = vadd.f32 %v3908_v37, %v2559_v13  ;;  %v2595_v26 = vsel %vm1308_vm7, %v2568_v6, -inf }
0x14b3   :  { %2596 = vmax.xlane.f32.xlu1 %v2595_v26  ;;  %v3644_v29 = vpop.f32.mrf.mxu0 }
0x14b4   :  { %v2571_v46 = vadd.f32 %v3908_v37, %v3644_v29  ;;  %v2589_v3 = vsel %vm1308_vm7, %v2560_v47, -inf }
0x14b5   :  { %v2562_v16 = vpop.f32.mrf.mxu0 }
0x14b6   :  { %v2563_v17 = vadd.f32 %v3908_v37, %v2562_v16  ;;  %v2598_v25 = vsel %vm1308_vm7, %v2571_v46, -inf }
0x14b7   :  { %2590 = vmax.xlane.f32.xlu1 %v2589_v3  ;;  %2599 = vmax.xlane.f32.xlu0 %v2598_v25 }
0x14b8   :  { %v2592_v9 = vsel %vm1308_vm7, %v2563_v17, -inf }
0x14ba   :  { %v3647_v27 = vpop.f32.mrf.mxu0 }
0x14bb   :  { %2593 = vmax.xlane.f32.xlu0 %v2592_v9  ;;  %v2584_v35 = vadd.f32 %v3908_v37, %v3647_v27 }
0x14bc   :  { %v2575_v15 = vpop.f32.mrf.mxu0 }
0x14bd   :  { %v2576_v30 = vadd.f32 %v3908_v37, %v2575_v15  ;;  %v2607_v22 = vsel %vm1327_vm8, %v2584_v35, -inf }
0x14be   :  { %v3648_v31 = vpop.f32.mrf.mxu0 }
0x14bf   :  { %v2601_v28 = vsel %vm1308_vm7, %v2576_v30, -inf }
0x14c0   :  { %v2578_v32 = vpop.f32.mrf.mxu0  ;;  %2602 = vmax.xlane.f32.xlu1 %v2601_v28 }
0x14c1   :  { %v2579_v21 = vadd.f32 %v3908_v37, %v2578_v32 }
0x14c3   :  { %v2604_v53 = vsel %vm1308_vm7, %v2579_v21, -inf }
0x14c4   :  { %2605 = vmax.xlane.f32.xlu0 %v2604_v53  ;;  %2608 = vmax.xlane.f32.xlu1 %v2607_v22 }
0x153c   :  { %v2597_v50 = vpop.xlane.xlu1 %2596 }
0x153d   :  { %v2612_v56 = vsub.f32 %v2568_v6, %v2597_v50 }
0x153f   :  { %v2621_v57 = vmul.f32 1.442695, %v2612_v56 }
0x1540   :  { %v2591_v36 = vpop.xlane.xlu1 %2590  ;;  %v2600_v20 = vpop.xlane.xlu0 %2599 }
0x1541   :  { %3863 = vpow2.f32 %v2621_v57  ;;  %v2610_v34 = vsub.f32 %v2560_v47, %v2591_v36  ;;  %v2613_v40 = vsub.f32 %v2571_v46, %v2600_v20 }
0x1543   :  { %v2617_v58 = vmul.f32 1.442695, %v2610_v34  ;;  %v2623_v60 = vmul.f32 1.442695, %v2613_v40 }
0x1544   :  { %v2594_v41 = vpop.xlane.xlu0 %2593 }
0x1545   :  { %3865 = vpow2.f32 %v2617_v58  ;;  %v2611_v61 = vsub.f32 %v2563_v17, %v2594_v41 }
0x1546   :  { %3867 = vpow2.f32 %v2623_v60 }
0x1547   :  { %v2619_v19 = vmul.f32 1.442695, %v2611_v61 }
0x1549   :  { %3869 = vpow2.f32 %v2619_v19  ;;  %v2603_v62 = vpop.xlane.xlu1 %2602 }
0x154a   :  { %v2614_v24 = vsub.f32 %v2576_v30, %v2603_v62 }
0x154c   :  { %v2625_v63 = vmul.f32 1.442695, %v2614_v24 }
0x154d   :  { %v2609_v55 = vpop.xlane.xlu1 %2608  ;;  %v2606_v0 = vpop.xlane.xlu0 %2605 }
0x154e   :  { %v3864_v48 = vpop.eup %3863  ;;  %3871 = vpow2.f32 %v2625_v63  ;;  %v2616_v59 = vsub.f32 %v2584_v35, %v2609_v55  ;;  %v2615_v43 = vsub.f32 %v2579_v21, %v2606_v0 }
0x154f   :  { %v2637_v4 = vsel %vm1308_vm7, %v3864_v48, 0.0 }
0x1550   :  { %v2629_v11 = vmul.f32 1.442695, %v2616_v59  ;;  %v2627_v1 = vmul.f32 1.442695, %v2615_v43  ;;  %2638 = vadd.xlane.f32.xlu0 %v2637_v4 }
0x1552   :  { %v3866_v44 = vpop.eup %3865  ;;  %3873 = vpow2.f32 %v2629_v11 }
0x1553   :  { %v3868_v7 = vpop.eup %3867  ;;  %3875 = vpow2.f32 %v2627_v1  ;;  %v2631_v45 = vsel %vm1308_vm7, %v3866_v44, 0.0 }
0x1554   :  { %2632 = vadd.xlane.f32.xlu0 %v2631_v45  ;;  %v2640_v49 = vsel %vm1308_vm7, %v3868_v7, 0.0 }
0x1555   :  { %2641 = vadd.xlane.f32.xlu1 %v2640_v49 }
0x1556   :  { %v3870_v39 = vpop.eup %3869 }
0x1557   :  { %v2634_v52 = vsel %vm1308_vm7, %v3870_v39, 0.0 }
0x1559   :  { %2635 = vadd.xlane.f32.xlu1 %v2634_v52 }
0x155b   :  { %v3872_v10 = vpop.eup %3871 }
0x155c   :  { %v2643_v12 = vsel %vm1308_vm7, %v3872_v10, 0.0 }
0x155d   :  { %2644 = vadd.xlane.f32.xlu0 %v2643_v12 }
0x155f   :  { %v3874_v5 = vpop.eup %3873 }
0x1560   :  { %v3876_v37 = vpop.eup %3875  ;;  %v2649_v6 = vsel %vm1327_vm8, %v3874_v5, 0.0 }
0x1561   :  { %2650 = vadd.xlane.f32.xlu0 %v2649_v6  ;;  %v2646_v13 = vsel %vm1308_vm7, %v3876_v37, 0.0 }
0x1562   :  { %2647 = vadd.xlane.f32.xlu1 %v2646_v13 }
0x15d9   :  { %v2639_v47 = vpop.xlane.xlu0 %2638 }
0x15dd   :  { %v2633_v29 = vpop.xlane.xlu0 %2632 }
0x15de   :  { %v2642_v26 = vpop.xlane.xlu1 %2641  ;;  %3877 = vrcp.f32 %v2633_v29 }
0x15df   :  { %3879 = vrcp.f32 %v2642_v26 }
0x15e2   :  { %v2636_v46 = vpop.xlane.xlu1 %2635 }
0x15e3   :  { %3881 = vrcp.f32 %v2636_v46 }
0x15e4   :  { %3883 = vrcp.f32 %v2639_v47 }
0x15e6   :  { %v2645_v16 = vpop.xlane.xlu0 %2644 }
0x15e7   :  { %3885 = vrcp.f32 %v2645_v16 }
0x15ea   :  { %v2651_v17 = vpop.xlane.xlu0 %2650 }
0x15eb   :  { %v2648_v3 = vpop.xlane.xlu1 %2647  ;;  %3887 = vrcp.f32 %v2651_v17  ;;  %v3878_v25 = vpop.eup %3877 }
0x15ec   :  { %3889 = vrcp.f32 %v2648_v3  ;;  %v3880_v27 = vpop.eup %3879  ;;  %v2653_v15 = vmul.f32 %v3878_v25, %v3866_v44  ;;  %v4830_v25 = vld [vmem:[#allocation3] sm:$0x1] }
0x15ed   :  { %v2659_v28 = vmul.f32 %v3880_v27, %v3868_v7 }
0x15f0   :  { %v3882_v9 = vpop.eup %3881 }
0x15f1   :  { %v2655_v30 = vmul.f32 %v3882_v9, %v3870_v39  ;;  %v3884_v31 = vpop.eup %3883 }
0x15f2   :  { %v2657_v32 = vmul.f32 %v3884_v31, %v3864_v48 }
0x15f3   :  { %v2666_v35 = vpack.c.bf16 %v2655_v30, %v2653_v15 }
0x15f4   :  { %v3886_v21 = vpop.eup %3885  ;;  %v2667_v53 = vpack.c.bf16 %v2659_v28, %v2657_v32 }
0x15f5   :  { %2670 = vxpose.xlu1.c.b16.start [1/4] (short) (narrow) %v2666_v35, 16  ;;  %v2661_v56 = vmul.f32 %v3886_v21, %v3872_v10 }
0x15f8   :  { %v3888_v22 = vpop.eup %3887 }
0x15f9   :  { %v3890_v50 = vpop.eup %3889  ;;  %2671 = vxpose.xlu1.c.b16.cont [2/4] (short) (narrow) %v2667_v53, 16  ;;  %v2665_v20 = vmul.f32 %v3888_v22, %v3874_v5 }
0x15fa   :  { %v2663_v57 = vmul.f32 %v3890_v50, %v3876_v37 }
0x15fb   :  { %v2669_v34 = vpack.c.bf16 %v2665_v20, %v2665_v20 }
0x15fc   :  { %v2668_v36 = vpack.c.bf16 %v2663_v57, %v2661_v56 }
0x15fd   :  { %v2780_v58 = vsel %vm852_vm10, %v2669_v34, 0 }
0x15fe   :  { %2672 = vxpose.xlu1.c.b16.cont [3/4] (short) (narrow) %v2668_v36, 16 }
0x1602   :  { %2673 = vxpose.xlu1.c.b16.end [4/4] (short) (narrow) %v2669_v34, 16 }
0x1658   :  { %v2678_v40 = vpop.trf.xlu1 }
0x1659   :  { %3658 = vmatmul.mubr.msk.bf16.vlgmr.msra.gmra.mxu1 %vm533_vm9, %v2678_v40  ;;  %3670 = vmatmul.mubr.msk.bf16.vlgmr.msra.gmra.mxu0 %vm533_vm9, %v2678_v40 }
0x165a   :  { %3674 = vmatpush3.bf16.msra.mxu1 %v2780_v58  ;;  %3681 = vmatprep.mubr.msk.bf16.mxu1 %vm4092_vm0, %v4091_v2 }
0x165b   :  { %3675 = vmatprep.subr.bf16.mxu1 %v4091_v2  ;;  %3687 = vmatprep.mubr.msk.bf16.mxu0 %vm4092_vm0, %v4091_v2 }
0x165e   :  { %3676 = vmatpush3.bf16.msra.mxu1 %v2668_v36 }
0x165f   :  { %3677 = vmatprep.subr.bf16.mxu1 %v4091_v2 }
0x1662   :  { %3678 = vmatpush3.bf16.msra.mxu1 %v2667_v53 }
0x1663   :  { %3679 = vmatprep.subr.bf16.mxu1 %v4091_v2 }
0x1666   :  { %3680 = vmatpush3.bf16.msra.mxu1 %v2666_v35  ;;  %v3909_v35 = vld [vmem:[#allocation15] ss:$0 sm:$0xff] }
0x1667   :  { %3691 = vmatprep.subr.bf16.mxu1 %v4091_v2 }
0x1719   :  { %v2725_v60 = vpop.f32.mrf.mxu1  ;;  %v2768_v41 = vpop.f32.mrf.mxu0 }
0x171b   :  { %v3659_v61 = vpop.f32.mrf.mxu1  ;;  %v3671_v19 = vpop.f32.mrf.mxu0 }
0x171d   :  { %v2728_v62 = vpop.f32.mrf.mxu1  ;;  %v2771_v24 = vpop.f32.mrf.mxu0 }
0x171e   :  { %v2824_v63 = vpack.c.bf16 %v2728_v62, %v2725_v60  ;;  %v2775_v55 = vpack.c.bf16 %v2771_v24, %v2768_v41 }
0x171f   :  { %v3660_v0 = vpop.f32.mrf.mxu1  ;;  %v3672_v48 = vpop.f32.mrf.mxu0 }
0x1720   :  { %v2829_v59 = vand.u32 %v2824_v63, %v4544_v42  ;;  %3682 = vmatmul.mubr.msk.bf16.vlgmr.msra.gmra.mxu1 %vm533_vm9, %v2775_v55 }
0x1721   :  { %3692 = vmatpush3.bf16.msra.mxu1 %v4546_v54  ;;  %3695 = vmatprep.mubr.msk.bf16.mxu1 %vm4092_vm0, %v4091_v2 }
0x1722   :  { %3686 = vmatpush3.bf16.msra.mxu0 %v2829_v59  ;;  %3693 = vmatprep.subr.bf16.mxu1 %v4091_v2 }
0x1723   :  { %3699 = vmatprep.subr.bf16.mxu0 %v4091_v2 }
0x1725   :  { %3694 = vmatpush3.bf16.msra.mxu1 %v4557_v14 }
0x1726   :  { %3707 = vmatprep.subr.bf16.mxu1 %v4091_v2 }
0x1728   :  { %3696 = vmatmul.mubr.msk.bf16.vlgmr.msra.gmra.mxu1 %vm426_vm4, %v2824_v63 }
0x1729   :  { %3708 = vmatpush3.bf16.msra.mxu1 %v4608_v8  ;;  %3711 = vmatprep.mubr.msk.bf16.mxu1 %vm4092_vm0, %v4091_v2 }
0x172a   :  { %3709 = vmatprep.subr.bf16.mxu1 %v4091_v2 }
0x172d   :  { %3710 = vmatpush3.bf16.msra.mxu1 %v4617_v18 }
0x17e0   :  { %v2816_v42 = vpop.f32.mrf.mxu1 }
0x17e1   :  { %v2872_v54 = vsel %vm1308_vm7, %v2816_v42, 0.0 }
0x17e2   :  { %2873 = vadd.xlane.f32.xlu0 %v2872_v54  ;;  %v3683_v43 = vpop.f32.mrf.mxu1 }
0x17e4   :  { %v2819_v4 = vpop.f32.mrf.mxu1 }
0x17e5   :  { %v2823_v14 = vpack.c.bf16 %v2819_v4, %v2816_v42  ;;  %v2875_v11 = vsel %vm1600_vm15, %v2819_v4, 0.0  ;;  %v3910_v42 = vld [vmem:[%s4869_s17] ss:$0 sm:$0xff] }
0x17e6   :  { %2876 = vadd.xlane.f32.xlu0 %v2875_v11  ;;  %v3684_v1 = vpop.f32.mrf.mxu1 }
0x17e7   :  { %3688 = vmatmul.mubr.msk.bf16.vlgmr.msra.gmra.mxu0 %vm1308_vm7, %v2823_v14 }
0x17e8   :  { %v2921_v8 = vpop.f32.mrf.mxu1  ;;  %3700 = vmatpush3.bf16.msra.mxu0 %v4579_v33  ;;  %3703 = vmatprep.mubr.msk.bf16.mxu0 %vm4092_vm0, %v4091_v2 }
0x17e9   :  { %3701 = vmatprep.subr.bf16.mxu0 %v4091_v2 }
0x17ea   :  { %v3697_v18 = vpop.f32.mrf.mxu1 }
0x17ec   :  { %v2924_v44 = vpop.f32.mrf.mxu1  ;;  %3702 = vmatpush3.bf16.msra.mxu0 %v4589_v38  ;;  %v1874_v38 = vrot.slane %v4666_v51, 4 }
0x17ed   :  { %3715 = vmatprep.subr.bf16.mxu0 %v4091_v2 }
0x17ee   :  { %v3698_v7 = vpop.f32.mrf.mxu1  ;;  %v1875_v29 = vadd.f32 %v1874_v38, %v4666_v51  ;;  %v3913_v38 = vld [vmem:[%s4872_s20 + $0x8] sm:$0x7f] }
0x17f0   :  { %v1876_v46 = vrot.slane %v1875_v29, 2 }
0x17f2   :  { %v1877_v16 = vadd.f32 %v1876_v46, %v1875_v29 }
0x17f4   :  { %v1878_v17 = vrot.slane %v1877_v16, 1 }
0x17f6   :  { %v1879_v3 = vadd.f32 %v1878_v17, %v1877_v16 }
0x17f8   :  { %v1881_v27 = vadd.f32 %v4830_v25, %v1879_v3 }
0x17fa   :  { %v1882_v9 = vsub.f32 0.0, %v1881_v27 }
0x17fc   :  { %v1883_v15 = vmul.f32 1.442695, %v1882_v9 }
0x186b   :  { %v2874_v45 = vpop.xlane.xlu0 %2873 }
0x186c   :  { %v2878_v39 = vmax.f32 %v2874_v45, 1.0 }
0x186e   :  { %3891 = vrcp.f32 %v2878_v39 }
0x186f   :  { %v2877_v49 = vpop.xlane.xlu0 %2876 }
0x1870   :  { %v2879_v52 = vmax.f32 %v2877_v49, 1.0  ;;  %v3911_v49 = vld [vmem:[#allocation2] ss:$0 sm:$0xff] }
0x1872   :  { %3893 = vrcp.f32 %v2879_v52 }
0x1873   :  { %3895 = vpow2.f32 %v1883_v15 }
0x187b   :  { %v3892_v12 = vpop.eup %3891 }
0x187f   :  { %v3894_v5 = vpop.eup %3893 }
0x1880   :  { %v3896_v57 = vpop.eup %3895 }
0x1881   :  { %v1885_v36 = vadd.f32 1.0, %v3896_v57 }
0x1883   :  { %3897 = vrcp.f32 %v1885_v36 }
0x1890   :  { %v3898_v20 = vpop.eup %3897 }
0x18a7   :  { %v2865_v10 = vpop.f32.mrf.mxu0 }
0x18a8   :  { %v2881_v6 = vmul.f32 %v3892_v12, %v2865_v10 }
0x18a9   :  { %v3689_v33 = vpop.f32.mrf.mxu0 }
0x18ab   :  { %v2868_v37 = vpop.f32.mrf.mxu0 }
0x18ac   :  { %v2883_v13 = vmul.f32 %v3894_v5, %v2868_v37 }
0x18ad   :  { %v3690_v47 = vpop.f32.mrf.mxu0 }
0x18ae   :  { %v2884_v26 = vpack.c.bf16 %v2883_v13, %v2881_v6  ;;  %v3912_v13 = vld [vmem:[%s4872_s20] sm:$0xff]  ;;  %s4095_s20 = smov [#allocation16]  }
0x18af   :  { %s3130_s6 = sshll.u32 %s4095_s20, 4  ;;  %s3131_s6 = int_to_ptr.vmem [resolvable:$true] %s3130_s6 }
0x18b0   :  { %3704 = vmatmul.mubr.msk.bf16.vlgmr.msra.gmra.mxu0 %vm426_vm4, %v2884_v26  ;;  %s4054_s13 = scalar_lea.vmem %s3131_s6, 16  ;;  %s4058_s8 = scalar_lea.vmem %s3131_s6, 32 }
0x18b1   :  { %3716 = vmatpush3.bf16.msra.mxu0 %v4638_v23  ;;  %3717 = vmatprep.mubr.msk.bf16.mxu0 %vm4092_vm0, %v4091_v2  ;;  %p4055_p7 = scmp.ne.s32.totalorder %s3131_s6, %s4054_s13  ;;  %p4059_p8 = scmp.lt.s32.totalorder %s3131_s6, %s3131_s6 }
0x18b2   :  { %p4060_p9 = scmp.lt.s32.totalorder %s4058_s8, %s4054_s13 }
0x18b4   :  { %p4061_p10 = por %p4060_p9, %p4059_p8 }
0x18b6   :  { %p4062_p11 = pnand %p4061_p10, %p4055_p7 }
0x1970   :  { %v2965_v30 = vpop.f32.mrf.mxu0 }
0x1971   :  { %v2966_v23 = vadd.f32 %v2965_v30, %v2921_v8 }
0x1972   :  { %v3705_v31 = vpop.f32.mrf.mxu0 }
0x1973   :  { %v2972_v2 = vadd.f32 %v3909_v35, %v2966_v23 }
0x1974   :  { %v2968_v28 = vpop.f32.mrf.mxu0 }
0x1975   :  { %v2969_v32 = vadd.f32 %v2968_v28, %v2924_v44  ;;  %v2974_v21 = vmul.f32 %v2972_v2, %v2972_v2 }
0x1976   :  { %v3706_v51 = vpop.f32.mrf.mxu0 }
0x1977   :  { %v2973_v53 = vadd.f32 %v3909_v35, %v2969_v32  ;;  %v2976_v22 = vsel %vm426_vm4, %v2974_v21, 0.0  ;;  %v578_v51 = vlaneseq }
0x1978   :  { %2977 = vadd.xlane.f32.xlu0 %v2976_v22 }
0x1979   :  { %v2975_v50 = vmul.f32 %v2973_v53, %v2973_v53 }
0x197b   :  { %v2979_v56 = vsel %vm1724_vm2, %v2975_v50, 0.0  ;;  %vm3122_vm2 = vcmask 8192  }
0x197c   :  { %2980 = vadd.xlane.f32.xlu0 %v2979_v56 }
0x1992   :  { %1891 = vperm.xlu0 %3737, %v3898_v20  }
0x1a01   :  { %v2978_v34 = vpop.xlane.xlu0 %2977 }
0x1a02   :  { %v2982_v40 = vmax.f32 %v2978_v34, 1e-24 }
0x1a04   :  { %3899 = vrsqrt.f32 %v2982_v40 }
0x1a05   :  { %v2981_v58 = vpop.xlane.xlu0 %2980 }
0x1a06   :  { %v2983_v60 = vmax.f32 %v2981_v58, 1e-24 }
0x1a08   :  { %3901 = vrsqrt.f32 %v2983_v60 }
0x1a0d   :  { %v1892_v22 = vpop.permute.xlu0 %1891 }
0x1a11   :  { %v3900_v41 = vpop.eup %3899 }
0x1a12   :  { %v2986_v61 = vmul.f32 %v3900_v41, %v2972_v2 }
0x1a14   :  { %v2990_v24 = vmul.f32 0.01, %v2986_v61  ;;  %vm2988_vm0 = vcmp.ge.f32.partialorder %v2986_v61, 0.0 }
0x1a15   :  { %v3902_v19 = vpop.eup %3901 }
0x1a16   :  { %v2987_v62 = vmul.f32 %v3902_v19, %v2973_v53  ;;  %v2992_v55 = vsel %vm2988_vm0, %v2986_v61, %v2990_v24  ;;  %v579_v53 = vand.u32 127, %v578_v51 }
0x1a18   :  { %vm2989_vm9 = vcmp.ge.f32.partialorder %v2987_v62, 0.0  ;;  %v2991_v63 = vmul.f32 0.01, %v2987_v62  ;;  %vm3114_vm15 = vcmp.eq.s32.totalorder %v579_v53, 1 }
0x1a1a   :  { %v2993_v0 = vsel %vm2989_vm9, %v2987_v62, %v2991_v63 }
0x1a1b   :  { %v2994_v48 = vpack.c.bf16 %v2993_v0, %v2992_v55 }
0x1a1d   :  { %3712 = vmatmul.mubr.msk.bf16.vlgmr.msra.gmra.mxu1 %vm426_vm4, %v2994_v48 }
0x1add   :  { %v3032_v59 = vpop.f32.mrf.mxu1 }
0x1ade   :  { %v3033_v54 = vadd.f32 %v3910_v42, %v3032_v59 }
0x1adf   :  { %v3713_v43 = vpop.f32.mrf.mxu1 }
0x1ae0   :  { %v3041_v14 = vmul.f32 0.01, %v3033_v54  ;;  %vm3039_vm10 = vcmp.ge.f32.partialorder %v3033_v54, 0.0 }
0x1ae1   :  { %v3035_v4 = vpop.f32.mrf.mxu1 }
0x1ae2   :  { %v3036_v11 = vadd.f32 %v3910_v42, %v3035_v4  ;;  %v3043_v18 = vsel %vm3039_vm10, %v3033_v54, %v3041_v14 }
0x1ae3   :  { %v3714_v1 = vpop.f32.mrf.mxu1 }
0x1ae4   :  { %vm3040_vm7 = vcmp.ge.f32.partialorder %v3036_v11, 0.0  ;;  %v3042_v8 = vmul.f32 0.01, %v3036_v11 }
0x1ae6   :  { %v3044_v44 = vsel %vm3040_vm7, %v3036_v11, %v3042_v8 }
0x1ae7   :  { %v3045_v7 = vpack.c.bf16 %v3044_v44, %v3043_v18 }
0x1ae9   :  { %3718 = vmatmul.mubr.msk.bf16.vlgmr.msra.gmra.mxu0 %vm174_vm1, %v3045_v7  ;;  %vm1888_vm1 = vcmp.eq.s32.totalorder %v579_v53, 0 }
0x1aea   :  { %v1894_v56 = vsel %vm1888_vm1, %v1892_v22, 0.0 }
0x1ba9   :  { %v3083_v45 = vpop.f32.mrf.mxu0 }
0x1baa   :  { %v3084_v39 = vadd.f32 %v3911_v49, %v3083_v45 }
0x1bab   :  { %v3719_v52 = vpop.f32.mrf.mxu0 }
0x1bac   :  { %vm3090_vm4 = vcmp.ge.f32.partialorder %v3084_v39, 0.0  ;;  %v3092_v10 = vmul.f32 0.01, %v3084_v39 }
0x1bad   :  { %v3086_v33 = vpop.f32.mrf.mxu0 }
0x1bae   :  { %v3094_v12 = vsel %vm3090_vm4, %v3084_v39, %v3092_v10  ;;  %v3087_v5 = vadd.f32 %v3911_v49, %v3086_v33 }
0x1baf   :  { %v3720_v37 = vpop.f32.mrf.mxu0  ;;  %v3096_v47 = vmul.f32 %v3912_v13, %v3094_v12 }
0x1bb0   :  { %vm3091_vm8 = vcmp.ge.f32.partialorder %v3087_v5, 0.0  ;;  %v3093_v6 = vmul.f32 0.01, %v3087_v5 }
0x1bb1   :  { %v3098_v46 = vsel %vm1869_vm5, %v3096_v47, 0.0 }
0x1bb2   :  { %v3095_v26 = vsel %vm3091_vm8, %v3087_v5, %v3093_v6 }
0x1bb3   :  { %v3097_v29 = vmul.f32 %v3913_v38, %v3095_v26 }
0x1bb5   :  { %v3099_v16 = vsel %vm1871_vm6, %v3097_v29, 0.0 }
0x1bb6   :  { %v3100_v17 = vadd.f32 %v3099_v16, %v3098_v46 }
0x1bb8   :  { %v3101_v3 = vrot.slane %v3100_v17, 4 }
0x1bba   :  { %v3102_v27 = vadd.f32 %v3101_v3, %v3100_v17 }
0x1bbc   :  { %v3103_v9 = vrot.slane %v3102_v27, 2 }
0x1bbe   :  { %v3104_v15 = vadd.f32 %v3103_v9, %v3102_v27 }
0x1bc0   :  { %v3105_v30 = vrot.slane %v3104_v15, 1 }
0x1bc2   :  { %v3106_v23 = vadd.f32 %v3105_v30, %v3104_v15 }
0x1bc4   :  { %v3107_v31 = vadd.f32 %v3106_v23, %v4830_v25 }
0x1bc6   :  { %v3108_v35 = vsub.f32 0.0, %v3107_v31 }
0x1bc8   :  { %v3109_v2 = vmul.f32 1.442695, %v3108_v35 }
0x1bca   :  { %3903 = vpow2.f32 %v3109_v2 }
0x1bd7   :  { %v3904_v28 = vpop.eup %3903 }
0x1bd8   :  { %v3111_v32 = vadd.f32 1.0, %v3904_v28 }
0x1bda   :  { %3905 = vrcp.f32 %v3111_v32 }
0x1be7   :  { %v3906_v21 = vpop.eup %3905 }
0x1be8   :  { %3117 = vperm.xlu0 %3737, %v3906_v21  }
0x1c63   :  { %v3118_v50 = vpop.permute.xlu0 %3117 }
0x1c64   :  { %v3120_v57 = vsel %vm3114_vm15, %v3118_v50, 0.0 }
0x1c65   :  { %v3121_v25 = vadd.f32 %v3120_v57, %v1894_v56 }
0x1c67   :  { %3123 = vst.msk [vmem:[#allocation16] sm:$0x1] %vm3122_vm2, %v3121_v25 }
0x1c68   :  { %4065 = shalt.err (!%p4062_p11)
}
0x1c69   :  { %3133 = dma.vmem_to_hbm [thread:$0]  %s3131_s6, 16, %s4873_s22, [#allocation6]  }
0x1c6a   :  { %4082 = dma.done.wait [#allocation6], 16  }
0x1c6b   :  { %4083 = vsyncadd [#allocation6], 4294967280 }
0x1c6c   :  { %3137 = vsyncpa [#allocation5], 1 }
0x1c6d   :  { %3138 = vsyncpa [#allocation8], 1 }
0x1c6e   :  { %3139 = vsyncpa [#allocation11], 1 }
0x1c6f   :  { %3140 = vsyncpa [#allocation14], 1 }
0x1c70   :  { %3141 = vsyncpa [#allocation6], 1 }

</bundles_post_ra>
